<compile_context>
chip_gen: v7x
topology: tpu7x:2x2x1
jax: 0.10.0
libtpu: 0.0.40
codegen_flags: <defaults>
</compile_context>

<pallas_src>
import functools

import jax
import jax.numpy as jnp
from jax.experimental import pallas as pl
from jax.experimental.pallas import tpu as pltpu


# ----------------------------- parameter packing ----------------------------

def init_params(key, num_classes=10):
    """Torch-layout parameters (same layout as the nn.Module's state_dict)."""
    ks = jax.random.split(key, 8)
    s = 0.05
    return {
        "conv1_w": s * jax.random.normal(ks[0], (16, 1, 5, 5), jnp.float32),
        "conv1_b": s * jax.random.normal(ks[1], (16,), jnp.float32),
        "conv2_w": s * jax.random.normal(ks[2], (32, 16, 3, 3), jnp.float32),
        "conv2_b": s * jax.random.normal(ks[3], (32,), jnp.float32),
        "fc1_w": s * jax.random.normal(ks[4], (64, 32 * 7 * 7), jnp.float32),
        "fc1_b": s * jax.random.normal(ks[5], (64,), jnp.float32),
        "fc2_w": s * jax.random.normal(ks[6], (num_classes, 64), jnp.float32),
        "fc2_b": s * jax.random.normal(ks[7], (num_classes,), jnp.float32),
    }


def pack_params(p, num_classes=10):
    """One-time packing of torch-layout weights into kernel-friendly slabs.

    Activation layout inside the kernel is (H, W*C) per image:
      conv1 out: (28, 28*16)   pool1(+pad): (16, 16*16)
      conv2 out: (14, 14*32)   pool2:       (7,  7*32)
    """
    f32, bf16 = jnp.float32, jnp.bfloat16

    # conv1 (1->16, 5x5, pad 2): Toeplitz slabs T1[i] of shape (Wpad=32, 28*16)
    # out[h, w*16+co] = sum_i (padded_rows[h+i, :] @ T1[i])[w*16+co]
    w1 = p["conv1_w"].astype(f32)[:, 0]                               # (co, i, j)
    A = (jnp.arange(32)[None, :, None] ==
         jnp.arange(28)[None, None, :] + jnp.arange(5)[:, None, None]).astype(f32)
    t1 = jnp.einsum("jpw,cij->ipwc", A, w1).reshape(5, 32, 28 * 16).astype(bf16)
    b1row = jnp.tile(p["conv1_b"].astype(f32), 28).reshape(1, 28 * 16)

    # conv2 (16->32, 3x3, pad 1): Toeplitz slabs T2[i] of shape (16*16, 14*32)
    w2 = p["conv2_w"].astype(f32)                                     # (o, c, i, j)
    B2 = (jnp.arange(16)[None, :, None] ==
          jnp.arange(14)[None, None, :] + jnp.arange(3)[:, None, None]).astype(f32)
    t2 = jnp.einsum("jpw,ocij->ipcwo", B2, w2).reshape(3, 16 * 16, 14 * 32).astype(bf16)
    b2row = jnp.tile(p["conv2_b"].astype(f32), 14).reshape(1, 14 * 32)

    # pool1 selectors (2x2 max), with conv2's zero padding folded in:
    #   rows:  (16, 28)  -> rows 1..14 select even/odd conv1 rows, rows 0/15 = 0
    #   cols:  (448,256) -> padded pixel 1..14 select even/odd pixel blocks
    r = jnp.arange(16)[:, None]
    h = jnp.arange(28)[None, :]
    rvalid = (r >= 1) & (r <= 14)
    pe1 = (rvalid & (h == 2 * (r - 1))).astype(f32)
    po1 = (rvalid & (h == 2 * (r - 1) + 1)).astype(f32)
    q = jnp.arange(16 * 16)                    # padded lane index (pixel*16 + ch)
    wp_, cq = q // 16, q % 16
    src = jnp.arange(28 * 16)                  # conv1-output lane index
    w_, c_ = src // 16, src % 16
    qvalid = (wp_ >= 1) & (wp_ <= 14)
    se1 = ((c_[:, None] == cq[None, :]) & qvalid[None, :] &
           (w_[:, None] == 2 * (wp_[None, :] - 1))).astype(f32)
    so1 = ((c_[:, None] == cq[None, :]) & qvalid[None, :] &
           (w_[:, None] == 2 * (wp_[None, :] - 1) + 1)).astype(f32)

    # pool2 selectors (no padding afterwards): rows (7,14), cols (448,224)
    r2 = jnp.arange(7)[:, None]
    h2 = jnp.arange(14)[None, :]
    pe2 = (h2 == 2 * r2).astype(f32)
    po2 = (h2 == 2 * r2 + 1).astype(f32)
    qo = jnp.arange(7 * 32)
    wo_, co_ = qo // 32, qo % 32
    si = jnp.arange(14 * 32)
    wi_, ci_ = si // 32, si % 32
    se2 = ((ci_[:, None] == co_[None, :]) & (wi_[:, None] == 2 * wo_[None, :])).astype(f32)
    so2 = ((ci_[:, None] == co_[None, :]) & (wi_[:, None] == 2 * wo_[None, :] + 1)).astype(f32)

    # fc1: torch expects CHW-flatten; our pool2 layout is (h, w*32+c), so permute
    # the weight's input axis once here (no transpose in the hot path).
    w1fc = p["fc1_w"].astype(f32).reshape(64, 32, 7, 7)               # (d, c, h, w)
    w1fc = jnp.transpose(w1fc, (2, 3, 1, 0)).reshape(7, 7 * 32, 64).astype(bf16)
    b1fc = p["fc1_b"].astype(f32).reshape(1, 64)
    w2fc = p["fc2_w"].astype(f32).T.astype(bf16)                      # (64, ncls)
    b2fc = p["fc2_b"].astype(f32).reshape(1, num_classes)

    return dict(t1=t1, b1=b1row, pe1=pe1, po1=po1, se1=se1, so1=so1,
                t2=t2, b2=b2row, pe2=pe2, po2=po2, se2=se2, so2=so2,
                w1fc=w1fc, b1fc=b1fc, w2fc=w2fc, b2fc=b2fc)


# ------------------------------- fused kernel -------------------------------

def _fused_cnn_kernel(x_ref, t1_ref, b1_ref, pe1_ref, po1_ref, se1_ref, so1_ref,
                      t2_ref, b2_ref, pe2_ref, po2_ref, se2_ref, so2_ref,
                      w1fc_ref, b1fc_ref, w2fc_ref, b2fc_ref,
                      logits_ref, act_ref):
    f32, bf16 = jnp.float32, jnp.bfloat16

    # ---- conv1 (5x5, pad 2, 1 -> 16) + ReLU : sum of row-slab matmuls -------
    xp = x_ref[0]                                                    # (32, 32) f32
    acc1 = jnp.dot(xp[0:28, :].astype(bf16), t1_ref[0], preferred_element_type=f32)
    for i in range(1, 5):
        acc1 += jnp.dot(xp[i:i + 28, :].astype(bf16), t1_ref[i],
                        preferred_element_type=f32)                  # (28, 448)
    a1 = jnp.maximum(acc1 + b1_ref[...], 0.0)

    # ---- maxpool1 2x2 (conv2 zero-padding folded into the selectors) -------
    v1 = jnp.maximum(jnp.dot(pe1_ref[...], a1, preferred_element_type=f32),
                     jnp.dot(po1_ref[...], a1, preferred_element_type=f32))   # (16, 448)
    p1 = jnp.maximum(jnp.dot(v1, se1_ref[...], preferred_element_type=f32),
                     jnp.dot(v1, so1_ref[...], preferred_element_type=f32))   # (16, 256)

    # ---- conv2 (3x3, pad 1, 16 -> 32) + ReLU --------------------------------
    acc2 = jnp.dot(p1[0:14, :].astype(bf16), t2_ref[0], preferred_element_type=f32)
    for i in range(1, 3):
        acc2 += jnp.dot(p1[i:i + 14, :].astype(bf16), t2_ref[i],
                        preferred_element_type=f32)                  # (14, 448)
    a2 = jnp.maximum(acc2 + b2_ref[...], 0.0)

    # ---- maxpool2 2x2 -------------------------------------------------------
    v2 = jnp.maximum(jnp.dot(pe2_ref[...], a2, preferred_element_type=f32),
                     jnp.dot(po2_ref[...], a2, preferred_element_type=f32))   # (7, 448)
    p2 = jnp.maximum(jnp.dot(v2, se2_ref[...], preferred_element_type=f32),
                     jnp.dot(v2, so2_ref[...], preferred_element_type=f32))   # (7, 224)

    # ---- fc1 + ReLU (CHW flatten folded into pre-permuted weight slabs) -----
    x3 = jnp.dot(p2[0:1, :].astype(bf16), w1fc_ref[0], preferred_element_type=f32)
    for hh in range(1, 7):
        x3 += jnp.dot(p2[hh:hh + 1, :].astype(bf16), w1fc_ref[hh],
                      preferred_element_type=f32)                    # (1, 64)
    x3 = jnp.maximum(x3 + b1fc_ref[...], 0.0)
    act_ref[0] = x3                                                  # dropout3: identity (eval)

    # ---- fc2 ----------------------------------------------------------------
    logits = jnp.dot(x3.astype(bf16), w2fc_ref[...], preferred_element_type=f32)
    logits_ref[0] = logits + b2fc_ref[...]


# ------------------------------ forward wrapper ------------------------------

@functools.partial(jax.jit, static_argnames=("return_activation",))
def more_naive_cnn_forward(packed, x_nchw, return_activation=False):
    B = x_nchw.shape[0]
    # NCHW (B,1,28,28) -> (B,28,28), zero-pad spatially for conv1's pad=2.
    x = x_nchw.astype(jnp.float32).reshape(B, 28, 28)
    xp = jnp.pad(x, ((0, 0), (2, 2), (2, 2)))                        # (B, 32, 32)

    w = packed
    weight_args = (w["t1"], w["b1"], w["pe1"], w["po1"], w["se1"], w["so1"],
                   w["t2"], w["b2"], w["pe2"], w["po2"], w["se2"], w["so2"],
                   w["w1fc"], w["b1fc"], w["w2fc"], w["b2fc"])
    ncls = w["w2fc"].shape[1]

    def full_spec(a):
        return pl.BlockSpec(a.shape, lambda b, _nd=a.ndim: (0,) * _nd)

    logits3, act3 = pl.pallas_call(
        _fused_cnn_kernel,
        out_shape=(jax.ShapeDtypeStruct((B, 1, ncls), jnp.float32),
                   jax.ShapeDtypeStruct((B, 1, 64), jnp.float32)),
        grid=(B,),
        in_specs=[pl.BlockSpec((1, 32, 32), lambda b: (b, 0, 0))]
                 + [full_spec(a) for a in weight_args],
        out_specs=(pl.BlockSpec((1, 1, ncls), lambda b: (b, 0, 0)),
                   pl.BlockSpec((1, 1, 64), lambda b: (b, 0, 0))),
        compiler_params=pltpu.CompilerParams(
            dimension_semantics=("parallel",),
            vmem_limit_bytes=32 * 1024 * 1024),
    )(xp, *weight_args)

    logits = logits3.reshape(B, ncls)
    if return_activation:
        return logits, act3.reshape(B, 64)
    return logits


# --------------------------- pure-JAX reference ------------------------------

def reference_forward(params, x_nchw):
    x = x_nchw.astype(jnp.float32)

    def conv(z, wgt, bias, pad):
        y = jax.lax.conv_general_dilated(z, wgt, (1, 1), [(pad, pad), (pad, pad)],
                                         dimension_numbers=("NCHW", "OIHW", "NCHW"))
        return jax.nn.relu(y + bias[None, :, None, None])

    def pool(z):
        return jax.lax.reduce_window(z, -jnp.inf, jax.lax.max,
                                     (1, 1, 2, 2), (1, 1, 2, 2), "VALID")

    y = pool(conv(x, params["conv1_w"], params["conv1_b"], 2))
    y = pool(conv(y, params["conv2_w"], params["conv2_b"], 1))
    flat = y.reshape(y.shape[0], -1)
    h = jax.nn.relu(flat @ params["fc1_w"].T + params["fc1_b"])
    return h @ params["fc2_w"].T + params["fc2_b"]


# ----------------------------------- main ------------------------------------

if __name__ == "__main__":
    key = jax.random.PRNGKey(0)
    k_params, k_x = jax.random.split(key)

    params = init_params(k_params, num_classes=10)
    packed = pack_params(params, num_classes=10)          # one-time weight packing

    # Module implies 28x28 single-channel input (32*7*7 features after 2 pools).
    x = jax.random.normal(k_x, (2, 1, 28, 28), jnp.float32)

    logits, act = more_naive_cnn_forward(packed, x, return_activation=True)
    logits = jax.block_until_ready(logits)

    assert logits.shape == (2, 10), logits.shape
    assert act.shape == (2, 64), act.shape
    assert bool(jnp.all(jnp.isfinite(logits)))

    # bf16-operand / f32-accumulate kernel vs f32 reference (loose tolerance).
    ref = reference_forward(params, x)
    assert bool(jnp.allclose(logits, ref, rtol=2e-2, atol=2e-2)), (logits, ref)

    print("KERNEL_OK")
</pallas_src>

<mosaic_0001>
module attributes {stable_mosaic.version = 11 : i64} {
  func.func @_fused_cnn_kernel(%arg0: i32, %arg1: memref<1x32x32xf32, #tpu.memory_space<vmem>>, %arg2: memref<5x32x448xbf16, #tpu.memory_space<vmem>>, %arg3: memref<1x448xf32, #tpu.memory_space<vmem>>, %arg4: memref<16x28xf32, #tpu.memory_space<vmem>>, %arg5: memref<16x28xf32, #tpu.memory_space<vmem>>, %arg6: memref<448x256xf32, #tpu.memory_space<vmem>>, %arg7: memref<448x256xf32, #tpu.memory_space<vmem>>, %arg8: memref<3x256x448xbf16, #tpu.memory_space<vmem>>, %arg9: memref<1x448xf32, #tpu.memory_space<vmem>>, %arg10: memref<7x14xf32, #tpu.memory_space<vmem>>, %arg11: memref<7x14xf32, #tpu.memory_space<vmem>>, %arg12: memref<448x224xf32, #tpu.memory_space<vmem>>, %arg13: memref<448x224xf32, #tpu.memory_space<vmem>>, %arg14: memref<7x224x64xbf16, #tpu.memory_space<vmem>>, %arg15: memref<1x64xf32, #tpu.memory_space<vmem>>, %arg16: memref<64x10xbf16, #tpu.memory_space<vmem>>, %arg17: memref<1x10xf32, #tpu.memory_space<vmem>>, %arg18: memref<1x1x10xf32, #tpu.memory_space<vmem>>, %arg19: memref<1x1x64xf32, #tpu.memory_space<vmem>>) attributes {dimension_semantics = [#tpu.dimension_semantics<parallel>], iteration_bounds = array<i64: 2>, scalar_prefetch = 0 : i64, scratch_operands = 0 : i64, tpu.core_type = #tpu.core_type<tc>, window_params = [{transform_indices = @transform_0, window_bounds = array<i64: 1, 32, 32>}, {pipeline_mode = #tpu.pipeline_mode<synchronous>, transform_indices = @transform_1, window_bounds = array<i64: 5, 32, 448>}, {pipeline_mode = #tpu.pipeline_mode<synchronous>, transform_indices = @transform_2, window_bounds = array<i64: 1, 448>}, {pipeline_mode = #tpu.pipeline_mode<synchronous>, transform_indices = @transform_3, window_bounds = array<i64: 16, 28>}, {pipeline_mode = #tpu.pipeline_mode<synchronous>, transform_indices = @transform_4, window_bounds = array<i64: 16, 28>}, {pipeline_mode = #tpu.pipeline_mode<synchronous>, transform_indices = @transform_5, window_bounds = array<i64: 448, 256>}, {pipeline_mode = #tpu.pipeline_mode<synchronous>, transform_indices = @transform_6, window_bounds = array<i64: 448, 256>}, {pipeline_mode = #tpu.pipeline_mode<synchronous>, transform_indices = @transform_7, window_bounds = array<i64: 3, 256, 448>}, {pipeline_mode = #tpu.pipeline_mode<synchronous>, transform_indices = @transform_8, window_bounds = array<i64: 1, 448>}, {pipeline_mode = #tpu.pipeline_mode<synchronous>, transform_indices = @transform_9, window_bounds = array<i64: 7, 14>}, {pipeline_mode = #tpu.pipeline_mode<synchronous>, transform_indices = @transform_10, window_bounds = array<i64: 7, 14>}, {pipeline_mode = #tpu.pipeline_mode<synchronous>, transform_indices = @transform_11, window_bounds = array<i64: 448, 224>}, {pipeline_mode = #tpu.pipeline_mode<synchronous>, transform_indices = @transform_12, window_bounds = array<i64: 448, 224>}, {pipeline_mode = #tpu.pipeline_mode<synchronous>, transform_indices = @transform_13, window_bounds = array<i64: 7, 224, 64>}, {pipeline_mode = #tpu.pipeline_mode<synchronous>, transform_indices = @transform_14, window_bounds = array<i64: 1, 64>}, {pipeline_mode = #tpu.pipeline_mode<synchronous>, transform_indices = @transform_15, window_bounds = array<i64: 64, 10>}, {pipeline_mode = #tpu.pipeline_mode<synchronous>, transform_indices = @transform_16, window_bounds = array<i64: 1, 10>}, {transform_indices = @transform_17, window_bounds = array<i64: 1, 1, 10>}, {transform_indices = @transform_18, window_bounds = array<i64: 1, 1, 64>}]} {
    %c0 = arith.constant 0 : index
    %c0_0 = arith.constant 0 : index
    %c0_1 = arith.constant 0 : index
    %0 = vector.load %arg1[%c0, %c0_0, %c0_1] : memref<1x32x32xf32, #tpu.memory_space<vmem>>, vector<1x32x32xf32>
    %1 = vector.shape_cast %0 : vector<1x32x32xf32> to vector<32x32xf32>
    %2 = vector.extract_strided_slice %1 {offsets = [0, 0], sizes = [28, 32], strides = [1, 1]} : vector<32x32xf32> to vector<28x32xf32>
    %3 = arith.truncf %2 : vector<28x32xf32> to vector<28x32xbf16>
    %c0_2 = arith.constant 0 : index
    %c0_3 = arith.constant 0 : index
    %c0_4 = arith.constant 0 : index
    %4 = vector.load %arg2[%c0_2, %c0_3, %c0_4] : memref<5x32x448xbf16, #tpu.memory_space<vmem>>, vector<1x32x448xbf16>
    %5 = vector.shape_cast %4 : vector<1x32x448xbf16> to vector<32x448xbf16>
    %cst = arith.constant dense<0.000000e+00> : vector<28x448xf32>
    %6 = tpu.matmul %3, %5, %cst {dimension_numbers = #tpu.dot_dimension_numbers<[1], [0], [0], [1], [0, 0, 1, 1], [], []>} : vector<28x32xbf16>, vector<32x448xbf16>, vector<28x448xf32> -> vector<28x448xf32>
    %7 = vector.extract_strided_slice %1 {offsets = [1, 0], sizes = [28, 32], strides = [1, 1]} : vector<32x32xf32> to vector<28x32xf32>
    %8 = arith.truncf %7 : vector<28x32xf32> to vector<28x32xbf16>
    %c1 = arith.constant 1 : index
    %c0_5 = arith.constant 0 : index
    %c0_6 = arith.constant 0 : index
    %9 = vector.load %arg2[%c1, %c0_5, %c0_6] : memref<5x32x448xbf16, #tpu.memory_space<vmem>>, vector<1x32x448xbf16>
    %10 = vector.shape_cast %9 : vector<1x32x448xbf16> to vector<32x448xbf16>
    %cst_7 = arith.constant dense<0.000000e+00> : vector<28x448xf32>
    %11 = tpu.matmul %8, %10, %cst_7 {dimension_numbers = #tpu.dot_dimension_numbers<[1], [0], [0], [1], [0, 0, 1, 1], [], []>} : vector<28x32xbf16>, vector<32x448xbf16>, vector<28x448xf32> -> vector<28x448xf32>
    %12 = arith.addf %6, %11 : vector<28x448xf32>
    %13 = vector.extract_strided_slice %1 {offsets = [2, 0], sizes = [28, 32], strides = [1, 1]} : vector<32x32xf32> to vector<28x32xf32>
    %14 = arith.truncf %13 : vector<28x32xf32> to vector<28x32xbf16>
    %c2 = arith.constant 2 : index
    %c0_8 = arith.constant 0 : index
    %c0_9 = arith.constant 0 : index
    %15 = vector.load %arg2[%c2, %c0_8, %c0_9] : memref<5x32x448xbf16, #tpu.memory_space<vmem>>, vector<1x32x448xbf16>
    %16 = vector.shape_cast %15 : vector<1x32x448xbf16> to vector<32x448xbf16>
    %cst_10 = arith.constant dense<0.000000e+00> : vector<28x448xf32>
    %17 = tpu.matmul %14, %16, %cst_10 {dimension_numbers = #tpu.dot_dimension_numbers<[1], [0], [0], [1], [0, 0, 1, 1], [], []>} : vector<28x32xbf16>, vector<32x448xbf16>, vector<28x448xf32> -> vector<28x448xf32>
    %18 = arith.addf %12, %17 : vector<28x448xf32>
    %19 = vector.extract_strided_slice %1 {offsets = [3, 0], sizes = [28, 32], strides = [1, 1]} : vector<32x32xf32> to vector<28x32xf32>
    %20 = arith.truncf %19 : vector<28x32xf32> to vector<28x32xbf16>
    %c3 = arith.constant 3 : index
    %c0_11 = arith.constant 0 : index
    %c0_12 = arith.constant 0 : index
    %21 = vector.load %arg2[%c3, %c0_11, %c0_12] : memref<5x32x448xbf16, #tpu.memory_space<vmem>>, vector<1x32x448xbf16>
    %22 = vector.shape_cast %21 : vector<1x32x448xbf16> to vector<32x448xbf16>
    %cst_13 = arith.constant dense<0.000000e+00> : vector<28x448xf32>
    %23 = tpu.matmul %20, %22, %cst_13 {dimension_numbers = #tpu.dot_dimension_numbers<[1], [0], [0], [1], [0, 0, 1, 1], [], []>} : vector<28x32xbf16>, vector<32x448xbf16>, vector<28x448xf32> -> vector<28x448xf32>
    %24 = arith.addf %18, %23 : vector<28x448xf32>
    %25 = vector.extract_strided_slice %1 {offsets = [4, 0], sizes = [28, 32], strides = [1, 1]} : vector<32x32xf32> to vector<28x32xf32>
    %26 = arith.truncf %25 : vector<28x32xf32> to vector<28x32xbf16>
    %c4 = arith.constant 4 : index
    %c0_14 = arith.constant 0 : index
    %c0_15 = arith.constant 0 : index
    %27 = vector.load %arg2[%c4, %c0_14, %c0_15] : memref<5x32x448xbf16, #tpu.memory_space<vmem>>, vector<1x32x448xbf16>
    %28 = vector.shape_cast %27 : vector<1x32x448xbf16> to vector<32x448xbf16>
    %cst_16 = arith.constant dense<0.000000e+00> : vector<28x448xf32>
    %29 = tpu.matmul %26, %28, %cst_16 {dimension_numbers = #tpu.dot_dimension_numbers<[1], [0], [0], [1], [0, 0, 1, 1], [], []>} : vector<28x32xbf16>, vector<32x448xbf16>, vector<28x448xf32> -> vector<28x448xf32>
    %30 = arith.addf %24, %29 : vector<28x448xf32>
    %c0_17 = arith.constant 0 : index
    %c0_18 = arith.constant 0 : index
    %31 = vector.load %arg3[%c0_17, %c0_18] : memref<1x448xf32, #tpu.memory_space<vmem>>, vector<1x448xf32>
    %32 = vector.broadcast %31 : vector<1x448xf32> to vector<28x448xf32>
    %33 = arith.addf %30, %32 : vector<28x448xf32>
    %cst_19 = arith.constant 0.000000e+00 : f32
    %34 = vector.broadcast %cst_19 : f32 to vector<28x448xf32>
    %35 = arith.maximumf %33, %34 : vector<28x448xf32>
    %c0_20 = arith.constant 0 : index
    %c0_21 = arith.constant 0 : index
    %36 = vector.load %arg4[%c0_20, %c0_21] : memref<16x28xf32, #tpu.memory_space<vmem>>, vector<16x28xf32>
    %cst_22 = arith.constant dense<0.000000e+00> : vector<16x448xf32>
    %37 = tpu.matmul %36, %35, %cst_22 {dimension_numbers = #tpu.dot_dimension_numbers<[1], [0], [0], [1], [0, 0, 1, 1], [], []>} : vector<16x28xf32>, vector<28x448xf32>, vector<16x448xf32> -> vector<16x448xf32>
    %c0_23 = arith.constant 0 : index
    %c0_24 = arith.constant 0 : index
    %38 = vector.load %arg5[%c0_23, %c0_24] : memref<16x28xf32, #tpu.memory_space<vmem>>, vector<16x28xf32>
    %cst_25 = arith.constant dense<0.000000e+00> : vector<16x448xf32>
    %39 = tpu.matmul %38, %35, %cst_25 {dimension_numbers = #tpu.dot_dimension_numbers<[1], [0], [0], [1], [0, 0, 1, 1], [], []>} : vector<16x28xf32>, vector<28x448xf32>, vector<16x448xf32> -> vector<16x448xf32>
    %40 = arith.maximumf %37, %39 : vector<16x448xf32>
    %c0_26 = arith.constant 0 : index
    %c0_27 = arith.constant 0 : index
    %41 = vector.load %arg6[%c0_26, %c0_27] : memref<448x256xf32, #tpu.memory_space<vmem>>, vector<448x256xf32>
    %cst_28 = arith.constant dense<0.000000e+00> : vector<16x256xf32>
    %42 = tpu.matmul %40, %41, %cst_28 {dimension_numbers = #tpu.dot_dimension_numbers<[1], [0], [0], [1], [0, 0, 1, 1], [], []>} : vector<16x448xf32>, vector<448x256xf32>, vector<16x256xf32> -> vector<16x256xf32>
    %c0_29 = arith.constant 0 : index
    %c0_30 = arith.constant 0 : index
    %43 = vector.load %arg7[%c0_29, %c0_30] : memref<448x256xf32, #tpu.memory_space<vmem>>, vector<448x256xf32>
    %cst_31 = arith.constant dense<0.000000e+00> : vector<16x256xf32>
    %44 = tpu.matmul %40, %43, %cst_31 {dimension_numbers = #tpu.dot_dimension_numbers<[1], [0], [0], [1], [0, 0, 1, 1], [], []>} : vector<16x448xf32>, vector<448x256xf32>, vector<16x256xf32> -> vector<16x256xf32>
    %45 = arith.maximumf %42, %44 : vector<16x256xf32>
    %46 = vector.extract_strided_slice %45 {offsets = [0, 0], sizes = [14, 256], strides = [1, 1]} : vector<16x256xf32> to vector<14x256xf32>
    %47 = arith.truncf %46 : vector<14x256xf32> to vector<14x256xbf16>
    %c0_32 = arith.constant 0 : index
    %c0_33 = arith.constant 0 : index
    %c0_34 = arith.constant 0 : index
    %48 = vector.load %arg8[%c0_32, %c0_33, %c0_34] : memref<3x256x448xbf16, #tpu.memory_space<vmem>>, vector<1x256x448xbf16>
    %49 = vector.shape_cast %48 : vector<1x256x448xbf16> to vector<256x448xbf16>
    %cst_35 = arith.constant dense<0.000000e+00> : vector<14x448xf32>
    %50 = tpu.matmul %47, %49, %cst_35 {dimension_numbers = #tpu.dot_dimension_numbers<[1], [0], [0], [1], [0, 0, 1, 1], [], []>} : vector<14x256xbf16>, vector<256x448xbf16>, vector<14x448xf32> -> vector<14x448xf32>
    %51 = vector.extract_strided_slice %45 {offsets = [1, 0], sizes = [14, 256], strides = [1, 1]} : vector<16x256xf32> to vector<14x256xf32>
    %52 = arith.truncf %51 : vector<14x256xf32> to vector<14x256xbf16>
    %c1_36 = arith.constant 1 : index
    %c0_37 = arith.constant 0 : index
    %c0_38 = arith.constant 0 : index
    %53 = vector.load %arg8[%c1_36, %c0_37, %c0_38] : memref<3x256x448xbf16, #tpu.memory_space<vmem>>, vector<1x256x448xbf16>
    %54 = vector.shape_cast %53 : vector<1x256x448xbf16> to vector<256x448xbf16>
    %cst_39 = arith.constant dense<0.000000e+00> : vector<14x448xf32>
    %55 = tpu.matmul %52, %54, %cst_39 {dimension_numbers = #tpu.dot_dimension_numbers<[1], [0], [0], [1], [0, 0, 1, 1], [], []>} : vector<14x256xbf16>, vector<256x448xbf16>, vector<14x448xf32> -> vector<14x448xf32>
    %56 = arith.addf %50, %55 : vector<14x448xf32>
    %57 = vector.extract_strided_slice %45 {offsets = [2, 0], sizes = [14, 256], strides = [1, 1]} : vector<16x256xf32> to vector<14x256xf32>
    %58 = arith.truncf %57 : vector<14x256xf32> to vector<14x256xbf16>
    %c2_40 = arith.constant 2 : index
    %c0_41 = arith.constant 0 : index
    %c0_42 = arith.constant 0 : index
    %59 = vector.load %arg8[%c2_40, %c0_41, %c0_42] : memref<3x256x448xbf16, #tpu.memory_space<vmem>>, vector<1x256x448xbf16>
    %60 = vector.shape_cast %59 : vector<1x256x448xbf16> to vector<256x448xbf16>
    %cst_43 = arith.constant dense<0.000000e+00> : vector<14x448xf32>
    %61 = tpu.matmul %58, %60, %cst_43 {dimension_numbers = #tpu.dot_dimension_numbers<[1], [0], [0], [1], [0, 0, 1, 1], [], []>} : vector<14x256xbf16>, vector<256x448xbf16>, vector<14x448xf32> -> vector<14x448xf32>
    %62 = arith.addf %56, %61 : vector<14x448xf32>
    %c0_44 = arith.constant 0 : index
    %c0_45 = arith.constant 0 : index
    %63 = vector.load %arg9[%c0_44, %c0_45] : memref<1x448xf32, #tpu.memory_space<vmem>>, vector<1x448xf32>
    %64 = vector.broadcast %63 : vector<1x448xf32> to vector<14x448xf32>
    %65 = arith.addf %62, %64 : vector<14x448xf32>
    %cst_46 = arith.constant 0.000000e+00 : f32
    %66 = vector.broadcast %cst_46 : f32 to vector<14x448xf32>
    %67 = arith.maximumf %65, %66 : vector<14x448xf32>
    %c0_47 = arith.constant 0 : index
    %c0_48 = arith.constant 0 : index
    %68 = vector.load %arg10[%c0_47, %c0_48] : memref<7x14xf32, #tpu.memory_space<vmem>>, vector<7x14xf32>
    %cst_49 = arith.constant dense<0.000000e+00> : vector<7x448xf32>
    %69 = tpu.matmul %68, %67, %cst_49 {dimension_numbers = #tpu.dot_dimension_numbers<[1], [0], [0], [1], [0, 0, 1, 1], [], []>} : vector<7x14xf32>, vector<14x448xf32>, vector<7x448xf32> -> vector<7x448xf32>
    %c0_50 = arith.constant 0 : index
    %c0_51 = arith.constant 0 : index
    %70 = vector.load %arg11[%c0_50, %c0_51] : memref<7x14xf32, #tpu.memory_space<vmem>>, vector<7x14xf32>
    %cst_52 = arith.constant dense<0.000000e+00> : vector<7x448xf32>
    %71 = tpu.matmul %70, %67, %cst_52 {dimension_numbers = #tpu.dot_dimension_numbers<[1], [0], [0], [1], [0, 0, 1, 1], [], []>} : vector<7x14xf32>, vector<14x448xf32>, vector<7x448xf32> -> vector<7x448xf32>
    %72 = arith.maximumf %69, %71 : vector<7x448xf32>
    %c0_53 = arith.constant 0 : index
    %c0_54 = arith.constant 0 : index
    %73 = vector.load %arg12[%c0_53, %c0_54] : memref<448x224xf32, #tpu.memory_space<vmem>>, vector<448x224xf32>
    %cst_55 = arith.constant dense<0.000000e+00> : vector<7x224xf32>
    %74 = tpu.matmul %72, %73, %cst_55 {dimension_numbers = #tpu.dot_dimension_numbers<[1], [0], [0], [1], [0, 0, 1, 1], [], []>} : vector<7x448xf32>, vector<448x224xf32>, vector<7x224xf32> -> vector<7x224xf32>
    %c0_56 = arith.constant 0 : index
    %c0_57 = arith.constant 0 : index
    %75 = vector.load %arg13[%c0_56, %c0_57] : memref<448x224xf32, #tpu.memory_space<vmem>>, vector<448x224xf32>
    %cst_58 = arith.constant dense<0.000000e+00> : vector<7x224xf32>
    %76 = tpu.matmul %72, %75, %cst_58 {dimension_numbers = #tpu.dot_dimension_numbers<[1], [0], [0], [1], [0, 0, 1, 1], [], []>} : vector<7x448xf32>, vector<448x224xf32>, vector<7x224xf32> -> vector<7x224xf32>
    %77 = arith.maximumf %74, %76 : vector<7x224xf32>
    %78 = vector.extract_strided_slice %77 {offsets = [0, 0], sizes = [1, 224], strides = [1, 1]} : vector<7x224xf32> to vector<1x224xf32>
    %79 = arith.truncf %78 : vector<1x224xf32> to vector<1x224xbf16>
    %c0_59 = arith.constant 0 : index
    %c0_60 = arith.constant 0 : index
    %c0_61 = arith.constant 0 : index
    %80 = vector.load %arg14[%c0_59, %c0_60, %c0_61] : memref<7x224x64xbf16, #tpu.memory_space<vmem>>, vector<1x224x64xbf16>
    %81 = vector.shape_cast %80 : vector<1x224x64xbf16> to vector<224x64xbf16>
    %cst_62 = arith.constant dense<0.000000e+00> : vector<1x64xf32>
    %82 = tpu.matmul %79, %81, %cst_62 {dimension_numbers = #tpu.dot_dimension_numbers<[1], [0], [0], [1], [0, 0, 1, 1], [], []>} : vector<1x224xbf16>, vector<224x64xbf16>, vector<1x64xf32> -> vector<1x64xf32>
    %83 = vector.extract_strided_slice %77 {offsets = [1, 0], sizes = [1, 224], strides = [1, 1]} : vector<7x224xf32> to vector<1x224xf32>
    %84 = arith.truncf %83 : vector<1x224xf32> to vector<1x224xbf16>
    %c1_63 = arith.constant 1 : index
    %c0_64 = arith.constant 0 : index
    %c0_65 = arith.constant 0 : index
    %85 = vector.load %arg14[%c1_63, %c0_64, %c0_65] : memref<7x224x64xbf16, #tpu.memory_space<vmem>>, vector<1x224x64xbf16>
    %86 = vector.shape_cast %85 : vector<1x224x64xbf16> to vector<224x64xbf16>
    %cst_66 = arith.constant dense<0.000000e+00> : vector<1x64xf32>
    %87 = tpu.matmul %84, %86, %cst_66 {dimension_numbers = #tpu.dot_dimension_numbers<[1], [0], [0], [1], [0, 0, 1, 1], [], []>} : vector<1x224xbf16>, vector<224x64xbf16>, vector<1x64xf32> -> vector<1x64xf32>
    %88 = arith.addf %82, %87 : vector<1x64xf32>
    %89 = vector.extract_strided_slice %77 {offsets = [2, 0], sizes = [1, 224], strides = [1, 1]} : vector<7x224xf32> to vector<1x224xf32>
    %90 = arith.truncf %89 : vector<1x224xf32> to vector<1x224xbf16>
    %c2_67 = arith.constant 2 : index
    %c0_68 = arith.constant 0 : index
    %c0_69 = arith.constant 0 : index
    %91 = vector.load %arg14[%c2_67, %c0_68, %c0_69] : memref<7x224x64xbf16, #tpu.memory_space<vmem>>, vector<1x224x64xbf16>
    %92 = vector.shape_cast %91 : vector<1x224x64xbf16> to vector<224x64xbf16>
    %cst_70 = arith.constant dense<0.000000e+00> : vector<1x64xf32>
    %93 = tpu.matmul %90, %92, %cst_70 {dimension_numbers = #tpu.dot_dimension_numbers<[1], [0], [0], [1], [0, 0, 1, 1], [], []>} : vector<1x224xbf16>, vector<224x64xbf16>, vector<1x64xf32> -> vector<1x64xf32>
    %94 = arith.addf %88, %93 : vector<1x64xf32>
    %95 = vector.extract_strided_slice %77 {offsets = [3, 0], sizes = [1, 224], strides = [1, 1]} : vector<7x224xf32> to vector<1x224xf32>
    %96 = arith.truncf %95 : vector<1x224xf32> to vector<1x224xbf16>
    %c3_71 = arith.constant 3 : index
    %c0_72 = arith.constant 0 : index
    %c0_73 = arith.constant 0 : index
    %97 = vector.load %arg14[%c3_71, %c0_72, %c0_73] : memref<7x224x64xbf16, #tpu.memory_space<vmem>>, vector<1x224x64xbf16>
    %98 = vector.shape_cast %97 : vector<1x224x64xbf16> to vector<224x64xbf16>
    %cst_74 = arith.constant dense<0.000000e+00> : vector<1x64xf32>
    %99 = tpu.matmul %96, %98, %cst_74 {dimension_numbers = #tpu.dot_dimension_numbers<[1], [0], [0], [1], [0, 0, 1, 1], [], []>} : vector<1x224xbf16>, vector<224x64xbf16>, vector<1x64xf32> -> vector<1x64xf32>
    %100 = arith.addf %94, %99 : vector<1x64xf32>
    %101 = vector.extract_strided_slice %77 {offsets = [4, 0], sizes = [1, 224], strides = [1, 1]} : vector<7x224xf32> to vector<1x224xf32>
    %102 = arith.truncf %101 : vector<1x224xf32> to vector<1x224xbf16>
    %c4_75 = arith.constant 4 : index
    %c0_76 = arith.constant 0 : index
    %c0_77 = arith.constant 0 : index
    %103 = vector.load %arg14[%c4_75, %c0_76, %c0_77] : memref<7x224x64xbf16, #tpu.memory_space<vmem>>, vector<1x224x64xbf16>
    %104 = vector.shape_cast %103 : vector<1x224x64xbf16> to vector<224x64xbf16>
    %cst_78 = arith.constant dense<0.000000e+00> : vector<1x64xf32>
    %105 = tpu.matmul %102, %104, %cst_78 {dimension_numbers = #tpu.dot_dimension_numbers<[1], [0], [0], [1], [0, 0, 1, 1], [], []>} : vector<1x224xbf16>, vector<224x64xbf16>, vector<1x64xf32> -> vector<1x64xf32>
    %106 = arith.addf %100, %105 : vector<1x64xf32>
    %107 = vector.extract_strided_slice %77 {offsets = [5, 0], sizes = [1, 224], strides = [1, 1]} : vector<7x224xf32> to vector<1x224xf32>
    %108 = arith.truncf %107 : vector<1x224xf32> to vector<1x224xbf16>
    %c5 = arith.constant 5 : index
    %c0_79 = arith.constant 0 : index
    %c0_80 = arith.constant 0 : index
    %109 = vector.load %arg14[%c5, %c0_79, %c0_80] : memref<7x224x64xbf16, #tpu.memory_space<vmem>>, vector<1x224x64xbf16>
    %110 = vector.shape_cast %109 : vector<1x224x64xbf16> to vector<224x64xbf16>
    %cst_81 = arith.constant dense<0.000000e+00> : vector<1x64xf32>
    %111 = tpu.matmul %108, %110, %cst_81 {dimension_numbers = #tpu.dot_dimension_numbers<[1], [0], [0], [1], [0, 0, 1, 1], [], []>} : vector<1x224xbf16>, vector<224x64xbf16>, vector<1x64xf32> -> vector<1x64xf32>
    %112 = arith.addf %106, %111 : vector<1x64xf32>
    %113 = vector.extract_strided_slice %77 {offsets = [6, 0], sizes = [1, 224], strides = [1, 1]} : vector<7x224xf32> to vector<1x224xf32>
    %114 = arith.truncf %113 : vector<1x224xf32> to vector<1x224xbf16>
    %c6 = arith.constant 6 : index
    %c0_82 = arith.constant 0 : index
    %c0_83 = arith.constant 0 : index
    %115 = vector.load %arg14[%c6, %c0_82, %c0_83] : memref<7x224x64xbf16, #tpu.memory_space<vmem>>, vector<1x224x64xbf16>
    %116 = vector.shape_cast %115 : vector<1x224x64xbf16> to vector<224x64xbf16>
    %cst_84 = arith.constant dense<0.000000e+00> : vector<1x64xf32>
    %117 = tpu.matmul %114, %116, %cst_84 {dimension_numbers = #tpu.dot_dimension_numbers<[1], [0], [0], [1], [0, 0, 1, 1], [], []>} : vector<1x224xbf16>, vector<224x64xbf16>, vector<1x64xf32> -> vector<1x64xf32>
    %118 = arith.addf %112, %117 : vector<1x64xf32>
    %c0_85 = arith.constant 0 : index
    %c0_86 = arith.constant 0 : index
    %119 = vector.load %arg15[%c0_85, %c0_86] : memref<1x64xf32, #tpu.memory_space<vmem>>, vector<1x64xf32>
    %120 = arith.addf %118, %119 : vector<1x64xf32>
    %cst_87 = arith.constant 0.000000e+00 : f32
    %121 = vector.broadcast %cst_87 : f32 to vector<1x64xf32>
    %122 = arith.maximumf %120, %121 : vector<1x64xf32>
    %c0_88 = arith.constant 0 : index
    %c0_89 = arith.constant 0 : index
    %c0_90 = arith.constant 0 : index
    %123 = vector.load %arg19[%c0_88, %c0_89, %c0_90] : memref<1x1x64xf32, #tpu.memory_space<vmem>>, vector<1x1x64xf32>
    %124 = vector.shape_cast %123 : vector<1x1x64xf32> to vector<1x64xf32>
    %125 = vector.shape_cast %122 : vector<1x64xf32> to vector<1x1x64xf32>
    tpu.vector_store %arg19[%c0_88, %c0_89, %c0_90], %125 {strides = array<i32>} : memref<1x1x64xf32, #tpu.memory_space<vmem>>, vector<1x1x64xf32>,
    %126 = arith.truncf %122 : vector<1x64xf32> to vector<1x64xbf16>
    %c0_91 = arith.constant 0 : index
    %c0_92 = arith.constant 0 : index
    %127 = vector.load %arg16[%c0_91, %c0_92] : memref<64x10xbf16, #tpu.memory_space<vmem>>, vector<64x10xbf16>
    %cst_93 = arith.constant dense<0.000000e+00> : vector<1x10xf32>
    %128 = tpu.matmul %126, %127, %cst_93 {dimension_numbers = #tpu.dot_dimension_numbers<[1], [0], [0], [1], [0, 0, 1, 1], [], []>} : vector<1x64xbf16>, vector<64x10xbf16>, vector<1x10xf32> -> vector<1x10xf32>
    %c0_94 = arith.constant 0 : index
    %c0_95 = arith.constant 0 : index
    %129 = vector.load %arg17[%c0_94, %c0_95] : memref<1x10xf32, #tpu.memory_space<vmem>>, vector<1x10xf32>
    %130 = arith.addf %128, %129 : vector<1x10xf32>
    %c0_96 = arith.constant 0 : index
    %c0_97 = arith.constant 0 : index
    %c0_98 = arith.constant 0 : index
    %131 = vector.load %arg18[%c0_96, %c0_97, %c0_98] : memref<1x1x10xf32, #tpu.memory_space<vmem>>, vector<1x1x10xf32>
    %132 = vector.shape_cast %131 : vector<1x1x10xf32> to vector<1x10xf32>
    %133 = vector.shape_cast %130 : vector<1x10xf32> to vector<1x1x10xf32>
    tpu.vector_store %arg18[%c0_96, %c0_97, %c0_98], %133 {strides = array<i32>} : memref<1x1x10xf32, #tpu.memory_space<vmem>>, vector<1x1x10xf32>,
    return
  }
  func.func @transform_0(%arg0: i32) -> (i32, i32, i32) {
    %c0_i32 = arith.constant 0 : i32
    %c0_i32_0 = arith.constant 0 : i32
    %c0_i32_1 = arith.constant 0 : i32
    return %arg0, %c0_i32, %c0_i32_0 : i32, i32, i32
  }
  func.func @transform_1(%arg0: i32) -> (i32, i32, i32) {
    %c0_i32 = arith.constant 0 : i32
    %c0_i32_0 = arith.constant 0 : i32
    %c0_i32_1 = arith.constant 0 : i32
    %c0_i32_2 = arith.constant 0 : i32
    return %c0_i32, %c0_i32_0, %c0_i32_1 : i32, i32, i32
  }
  func.func @transform_2(%arg0: i32) -> (i32, i32) {
    %c0_i32 = arith.constant 0 : i32
    %c0_i32_0 = arith.constant 0 : i32
    %c0_i32_1 = arith.constant 0 : i32
    return %c0_i32, %c0_i32_0 : i32, i32
  }
  func.func @transform_3(%arg0: i32) -> (i32, i32) {
    %c0_i32 = arith.constant 0 : i32
    %c0_i32_0 = arith.constant 0 : i32
    %c0_i32_1 = arith.constant 0 : i32
    return %c0_i32, %c0_i32_0 : i32, i32
  }
  func.func @transform_4(%arg0: i32) -> (i32, i32) {
    %c0_i32 = arith.constant 0 : i32
    %c0_i32_0 = arith.constant 0 : i32
    %c0_i32_1 = arith.constant 0 : i32
    return %c0_i32, %c0_i32_0 : i32, i32
  }
  func.func @transform_5(%arg0: i32) -> (i32, i32) {
    %c0_i32 = arith.constant 0 : i32
    %c0_i32_0 = arith.constant 0 : i32
    %c0_i32_1 = arith.constant 0 : i32
    return %c0_i32, %c0_i32_0 : i32, i32
  }
  func.func @transform_6(%arg0: i32) -> (i32, i32) {
    %c0_i32 = arith.constant 0 : i32
    %c0_i32_0 = arith.constant 0 : i32
    %c0_i32_1 = arith.constant 0 : i32
    return %c0_i32, %c0_i32_0 : i32, i32
  }
  func.func @transform_7(%arg0: i32) -> (i32, i32, i32) {
    %c0_i32 = arith.constant 0 : i32
    %c0_i32_0 = arith.constant 0 : i32
    %c0_i32_1 = arith.constant 0 : i32
    %c0_i32_2 = arith.constant 0 : i32
    return %c0_i32, %c0_i32_0, %c0_i32_1 : i32, i32, i32
  }
  func.func @transform_8(%arg0: i32) -> (i32, i32) {
    %c0_i32 = arith.constant 0 : i32
    %c0_i32_0 = arith.constant 0 : i32
    %c0_i32_1 = arith.constant 0 : i32
    return %c0_i32, %c0_i32_0 : i32, i32
  }
  func.func @transform_9(%arg0: i32) -> (i32, i32) {
    %c0_i32 = arith.constant 0 : i32
    %c0_i32_0 = arith.constant 0 : i32
    %c0_i32_1 = arith.constant 0 : i32
    return %c0_i32, %c0_i32_0 : i32, i32
  }
  func.func @transform_10(%arg0: i32) -> (i32, i32) {
    %c0_i32 = arith.constant 0 : i32
    %c0_i32_0 = arith.constant 0 : i32
    %c0_i32_1 = arith.constant 0 : i32
    return %c0_i32, %c0_i32_0 : i32, i32
  }
  func.func @transform_11(%arg0: i32) -> (i32, i32) {
    %c0_i32 = arith.constant 0 : i32
    %c0_i32_0 = arith.constant 0 : i32
    %c0_i32_1 = arith.constant 0 : i32
    return %c0_i32, %c0_i32_0 : i32, i32
  }
  func.func @transform_12(%arg0: i32) -> (i32, i32) {
    %c0_i32 = arith.constant 0 : i32
    %c0_i32_0 = arith.constant 0 : i32
    %c0_i32_1 = arith.constant 0 : i32
    return %c0_i32, %c0_i32_0 : i32, i32
  }
  func.func @transform_13(%arg0: i32) -> (i32, i32, i32) {
    %c0_i32 = arith.constant 0 : i32
    %c0_i32_0 = arith.constant 0 : i32
    %c0_i32_1 = arith.constant 0 : i32
    %c0_i32_2 = arith.constant 0 : i32
    return %c0_i32, %c0_i32_0, %c0_i32_1 : i32, i32, i32
  }
  func.func @transform_14(%arg0: i32) -> (i32, i32) {
    %c0_i32 = arith.constant 0 : i32
    %c0_i32_0 = arith.constant 0 : i32
    %c0_i32_1 = arith.constant 0 : i32
    return %c0_i32, %c0_i32_0 : i32, i32
  }
  func.func @transform_15(%arg0: i32) -> (i32, i32) {
    %c0_i32 = arith.constant 0 : i32
    %c0_i32_0 = arith.constant 0 : i32
    %c0_i32_1 = arith.constant 0 : i32
    return %c0_i32, %c0_i32_0 : i32, i32
  }
  func.func @transform_16(%arg0: i32) -> (i32, i32) {
    %c0_i32 = arith.constant 0 : i32
    %c0_i32_0 = arith.constant 0 : i32
    %c0_i32_1 = arith.constant 0 : i32
    return %c0_i32, %c0_i32_0 : i32, i32
  }
  func.func @transform_17(%arg0: i32) -> (i32, i32, i32) {
    %c0_i32 = arith.constant 0 : i32
    %c0_i32_0 = arith.constant 0 : i32
    %c0_i32_1 = arith.constant 0 : i32
    return %arg0, %c0_i32, %c0_i32_0 : i32, i32, i32
  }
  func.func @transform_18(%arg0: i32) -> (i32, i32, i32) {
    %c0_i32 = arith.constant 0 : i32
    %c0_i32_0 = arith.constant 0 : i32
    %c0_i32_1 = arith.constant 0 : i32
    return %arg0, %c0_i32, %c0_i32_0 : i32, i32, i32
  }
}

</mosaic_0001>

<bundles_post_ra>
// kernel: more_naive_cnn_forward.1
= control target key start
LH: loop header
LB: loop body
LE: loop exit
PB: predicated region body
PF: predicated region fallthrough
CT: control target
= control target key end

     0   :  { %s10713_s0 = inlined_call_operand.vmem [shape: f32[2,32,32], index: 0, kind: input, shape index: {}]   ;;  %s10714_s1 = inlined_call_operand.vmem [shape: bf16[5,32,448], index: 1, kind: input, shape index: {}]   ;;  %s10715_s2 = inlined_call_operand.vmem [shape: f32[1,448], index: 2, kind: input, shape index: {}]   ;;  %s10716_s3 = inlined_call_operand.vmem [shape: f32[16,28], index: 3, kind: input, shape index: {}]   ;;  %s10717_s4 = inlined_call_operand.vmem [shape: f32[16,28], index: 4, kind: input, shape index: {}]   ;;  %s10718_s5 = inlined_call_operand.vmem [shape: f32[448,256], index: 5, kind: input, shape index: {}]   ;;  %s10719_s6 = inlined_call_operand.vmem [shape: f32[448,256], index: 6, kind: input, shape index: {}]   ;;  %s10720_s7 = inlined_call_operand.vmem [shape: bf16[3,256,448], index: 7, kind: input, shape index: {}]   ;;  %s10721_s8 = inlined_call_operand.vmem [shape: f32[1,448], index: 8, kind: input, shape index: {}]   ;;  %s10722_s9 = inlined_call_operand.vmem [shape: f32[7,14], index: 9, kind: input, shape index: {}]   ;;  %s10723_s10 = inlined_call_operand.vmem [shape: f32[7,14], index: 10, kind: input, shape index: {}]   ;;  %s10724_s11 = inlined_call_operand.vmem [shape: f32[448,224], index: 11, kind: input, shape index: {}]   ;;  %s10725_s12 = inlined_call_operand.hbm [shape: f32[448,224], index: 12, kind: input, shape index: {}]   ;;  %s10726_s13 = inlined_call_operand.vmem [shape: bf16[7,224,64], index: 13, kind: input, shape index: {}]   ;;  %s10727_s14 = inlined_call_operand.vmem [shape: f32[1,64], index: 14, kind: input, shape index: {}]   ;;  %s10728_s15 = inlined_call_operand.vmem [shape: bf16[64,10], index: 15, kind: input, shape index: {}]   ;;  %s10729_s16 = inlined_call_operand.vmem [shape: f32[1,10], index: 16, kind: input, shape index: {}]   ;;  %s10730_s17 = inlined_call_operand.hbm [shape: f32[2,1,10], index: 17, kind: output, shape index: {0}]   ;;  %s10731_s18 = inlined_call_operand.hbm [shape: f32[2,1,64], index: 18, kind: output, shape index: {1}]  }
   0x1   :  { %10743 = sst [smem:[#allocation17_spill]] %s10713_s0 }
   0x2   :  { %10744 = sst [smem:[#allocation18_spill]] %s10714_s1 }
   0x3   :  { %10745 = sst [smem:[#allocation19_spill]] %s10715_s2 }
   0x4   :  { %10746 = sst [smem:[#allocation20_spill]] %s10725_s12 }
   0x5   :  { %10747 = sst [smem:[#allocation21_spill]] %s10730_s17 }
   0x6   :  { %24 = vsyncpa [#allocation3], 0 }
   0x7   :  { %25 = vsyncpa [#allocation4], 0 }
   0x8   :  { %27 = vsyncpa [#allocation4 + $0x1], 0 }
   0x9   :  { %28 = vsyncpa [#allocation7], 0 }
   0xa   :  { %30 = vsyncpa [#allocation7 + $0x1], 0  ;;  %s8170_s27 = smov 0   ;;  %s8172_s28 = smov 0  }
   0xb   :  { %s8174_s29 = smov 0   ;;  %s8176_s30 = smov 0  }
   0xc LB: > { %10748 = sst [smem:[#allocation11_spill]] %s8052_s27  ;;  %s8191_s0 = sadd.s32 4294967295, %s8064_s30   ;;  %s8064_s30 = sphi %s8176_s30, %s10775_s30   ;;  %s8060_s29 = sphi %s8174_s29, %s10777_s29   ;;  %s8056_s28 = sphi %s8172_s28, %s10779_s28   ;;  %s8052_s27 = sphi %s8170_s27, %s10778_s27  }
   0xd   : > { %10749 = sst [smem:[#allocation12_spill]] %s8060_s29  ;;  %s6069_s19 = sadd.s32 4294967294, %s8064_s30  }
   0xe   : > { %10750 = sst [smem:[#allocation13_spill]] %s8064_s30  ;;  %s8195_s1 = sadd.s32 1, %s8064_s30  }
   0xf   : > { %10751 = sst [smem:[#allocation14_spill]] %s8195_s1  ;;  %s405_s20 = sadd.s32 1, %s8060_s29 }
  0x10   : > { %s402_s21 = ssub.s32 %s8064_s30, %s8195_s1  ;;  %p415_p0 = scmp.ne.s32.totalorder %s8060_s29, %s8056_s28 }
  0x11   : > { %p403_p1 = scmp.eq.s32.totalorder %s402_s21, 0  ;;  %p416_p2 = scmp.eq.s32.totalorder %s8191_s0, 1 }
  0x12   : > { %p421_p3 = scmp.ne.s32.totalorder %s8056_s28, %s8052_s27  ;;  %p422_p4 = scmp.eq.s32.totalorder %s6069_s19, 1 }
  0x13   : > { %s8206_s22 = scalar_select %p403_p1, %s8060_s29, %s405_s20  }
  0x14   : > { %p8208_p5 = por %p416_p2, %p415_p0  ;;  %p8212_p6 = por %p422_p4, %p421_p3 }
  0x15   : > { %10752 = sst [smem:[#allocation15_spill]] %s8206_s22  ;;  %p6070_p7 = scmp.ge.s32.totalorder %s8064_s30, 1 }
  0x16   : > { %s10753_s2 = scalar_select %p8208_p5, 1, 0 }
  0x17   : > { %s10754_s23 = scalar_select %p8212_p6, 1, 0 }
  0x18   : > { %p455_p8 = scmp.lt.s32.totalorder %s8064_s30, 3  ;;  %p10738_p9 = scmp.eq.s32.totalorder %s8191_s0, 0 }
  0x19   : > { %10755 = sst [smem:[#allocation16_spill]] %s10754_s23  ;;  %s8066_s25 = smov [#allocation2]  }
  0x1a   : > { %p8219_p10 = pnand %p6070_p7, %p455_p8  ;;  %s500_s26 = sshll.u32 %s8066_s25, 4  ;;  %s501_s26 = int_to_ptr.vmem [resolvable:$true] %s500_s26 }
  0x1b   : > { %s10758_s12 = sld [smem:[#allocation20_spill]] }
  0x1c   : > { %s10756_s24 = scalar_select %p8219_p10, 1, 0 }
  0x1d   : > { %p7435_p11 = pneg %p8219_p10 }
  0x1f   : > { %p8227_p12 = pnand %p10738_p9, %p7435_p11 }
  0x21   : > { %s7938_s22 = scalar_lea.hbm %s10758_s12, 14336  ;;  %p7940_p0 = pneg %p8227_p12 }
  0x22   : > { %p7939_p13 = scmp.ne.s32.totalorder %s10758_s12, %s7938_s22  ;;  %p7945_p3 = scmp.lt.u32.totalorder %s7938_s22, %s10758_s12 }
  0x24   : > { %p7941_p1 = pnand %p7940_p0, %p7939_p13 }
  0x26   : > { %p7942_p2 = pneg %p7941_p1 }
  0x28   : > { %p7947_p4 = pnand %p7945_p3, %p7942_p2 }
  0x2a   : > { %7950 = shalt.err (!%p7947_p4)
}
  0x2b   : > { %s7951_s27 = scalar_lea.vmem %s501_s26, 14336  ;;  %p7959_p9 = scmp.lt.s32.totalorder %s501_s26, %s501_s26 }
  0x2c   : > { %p7952_p7 = scmp.ne.s32.totalorder %s501_s26, %s7951_s27  ;;  %p7960_p6 = scmp.lt.s32.totalorder %s7951_s27, %s7951_s27 }
  0x2e   : > { %p7954_p8 = pnand %p7952_p7, %p7940_p0  ;;  %p7961_p5 = por %p7960_p6, %p7959_p9 }
  0x30   : > { %p7955_p11 = pneg %p7954_p8 }
  0x32   : > { %p7962_p10 = pnand %p7961_p5, %p7955_p11 }
  0x34   : > { %7965 = shalt.err (!%p7962_p10)
}
  0x35   : > { %s8067_s29 = smov 256   ;;  %s8068_s1 = smov 16  }
  0x36   : > { %7438 = dma.hbm_to_vmem [thread:$0]  (!%p8227_p12), %s10758_s12, 14336, %s501_s26, [#allocation3], %s8067_s29, %s8067_s29, %s8068_s1  }
  0x37   : > { %p10759_p13 = scmp.ne.s32.totalorder %s10756_s24, 0 }
  0x38   : > { %p10760_p1 = scmp.eq.s32.totalorder (!%p10759_p13), %s8191_s0, 0 }
  0x39   : > { %536 = sbr.rel (%p10759_p13) target bundleno = 2317 (0x90d), region = 88 }
  0x40   : > { %8039 = dma.done.wait (%p10760_p1), [#allocation3], 14336   ;;  %p10761_p0 = pmov %p10760_p1 }
  0x41   : > { %p593_p5 = scmp.lt.s32.totalorder %s8191_s0, 1  ;;  %v8069_v0 = vmov 0   ;;  %vm1318_vm0 = vcmask 1045504   ;;  %vm8070_vm1 = vmmov 1   ;;  %s10764_s26 = sld [smem:[#allocation18_spill]]  ;;  %vm678_vm3 = vcmask 261120  }
  0x42   : > { %8041 = vsyncadd (%p10761_p0), [#allocation3], 4294952960  ;;  %717 = vmatprep.mubr.bf16.mxu1 %v8069_v0  ;;  %867 = vmatprep.mubr.bf16.mxu0 %v8069_v0  ;;  %vm622_vm4 = vsmask.f32 7424  ;;  %vm952_vm5 = vcmask 1046528   ;;  %s10766_s30 = sld [smem:[#allocation19_spill]] }
  0x43   : > { %s594_s27 = scalar_select %p593_p5, %s8191_s0, 1  ;;  %vm8259_vm2 = vmpackc.low %vm1318_vm0, %vm8070_vm1  ;;  %vm1133_vm6 = vsmask.f32 6400  ;;  %vm1553_vm7 = vcmask 1043456   ;;  %vm1546_vm9 = vcmask 228352   ;;  %vm2002_vm10 = vcmask 523264  }
  0x44   : > { %vm8468_vm8 = vmpackc.low %vm1553_vm7, %vm8070_vm1  ;;  %vm3916_vm11 = vcmask 113664   ;;  %v4239_v1 = vld [vmem:[%s10724_s11 + $0x70] sm:$0xff]  ;;  %vm4888_vm12 = vcmask 785408   ;;  %vm8072_vm13 = vmmov 0   ;;  %vm5863_vm14 = vcmask 516096   ;;  %s6801_s24 = sshll.u32 %s8191_s0, 4 }
  0x45   : > { %s6805_s22 = sshll.u32 %s594_s27, 5  ;;  %s10765_s27 = sld [smem:[#allocation17_spill]] }
  0x46   : > { %s10641_s29 = scalar_lea.hbm %s10731_s18, %s6801_s24  ;;  %p10769_p9 = scmp.ne.s32.totalorder %s10753_s2, 0 }
  0x47   : > { %v7488_v2 = vld [vmem:[%s10764_s26 + $0x44] ss:$16 sps:$4 sm:$0xff]   ;;  %v7492_v4 = vld [vmem:[%s10764_s26 + $0x40] ss:$16 sps:$4 sm:$0xff]   ;;  %v7505_v21 = vld [vmem:[%s10764_s26 + $0x4c] ss:$16 sps:$4 sm:$0xff]  }
  0x48   : > { %v7490_v3 = vld [vmem:[%s10764_s26 + $0x4] ss:$16 sps:$4 sm:$0xff]   ;;  %685 = vmatprep.subr.bf16.mxu1 %v7488_v2  ;;  %v7493_v5 = vld [vmem:[%s10764_s26] ss:$16 sps:$4 sm:$0xff]   ;;  %v7503_v25 = vld [vmem:[%s10764_s26 + $0x48] ss:$16 sps:$4 sm:$0xff]  }
  0x49   : > { %835 = vmatprep.subr.bf16.mxu0 %v7490_v3  ;;  %v7494_v6 = vld [vmem:[%s10764_s26 + $0x64] ss:$16 sps:$4 sm:$0xff]   ;;  %686 = vmatpush1.bf16.msra.mxu1 %v7492_v4  ;;  %v7498_v8 = vld [vmem:[%s10764_s26 + $0x60] ss:$16 sps:$4 sm:$0xff]   ;;  %v7508_v26 = vld [vmem:[%s10764_s26 + $0x6c] ss:$16 sps:$4 sm:$0xff]  }
  0x4a   : > { %836 = vmatpush1.bf16.msra.mxu0 %v7493_v5  ;;  %v7496_v7 = vld [vmem:[%s10764_s26 + $0x24] ss:$16 sps:$4 sm:$0xff]   ;;  %687 = vmatprep.subr.bf16.mxu1 %v7494_v6  ;;  %v7499_v9 = vld [vmem:[%s10764_s26 + $0x20] ss:$16 sps:$4 sm:$0xff]   ;;  %v7506_v32 = vld [vmem:[%s10764_s26 + $0x68] ss:$16 sps:$4 sm:$0xff]  }
  0x4b   : > { %s597_s17 = scalar_lea.vmem %s10765_s27, %s6805_s22  ;;  %837 = vmatprep.subr.bf16.mxu0 %v7496_v7  ;;  %v7502_v16 = vld [vmem:[%s10764_s26 + $0x84] ss:$16 sps:$4 sm:$0xff]   ;;  %v7500_v19 = vld [vmem:[%s10764_s26 + $0x80] ss:$16 sps:$4 sm:$0xff]   ;;  %v7517_v33 = vld [vmem:[%s10764_s26 + $0xc] ss:$16 sps:$4 sm:$0xff]  }
  0x4c   : > { %v599_v10 = vld [vmem:[%s597_s17] sm:$0xff]  ;;  %v600_v11 = vld [vmem:[%s597_s17 + $0x8] sm:$0xff]  ;;  %v601_v12 = vld [vmem:[%s597_s17 + $0x10] sm:$0xff]  ;;  %s8073_s12 = smov [#allocation6]  }
  0x4d   : > { %v602_v13 = vld [vmem:[%s597_s17 + $0x18] sm:$0xff]  ;;  %v8290_v14 = vpack.c.bf16 %v600_v11, %v599_v10  ;;  %688 = vmatpush1.bf16.msra.mxu1 %v7498_v8  ;;  %v7511_v27 = vld [vmem:[%s10764_s26 + $0xa4] ss:$16 sps:$4 sm:$0xff]   ;;  %v7509_v28 = vld [vmem:[%s10764_s26 + $0xa0] ss:$16 sps:$4 sm:$0xff]   ;;  %v8071_v8 = vmov 0.0  }
  0x4e   : > { %v8292_v15 = vpack.c.bf16 %v602_v13, %v601_v12  ;;  %838 = vmatpush1.bf16.msra.mxu0 %v7499_v9  ;;  %738 = vmatprep.subr.bf16.mxu1 %v7505_v21  ;;  %v7514_v30 = vld [vmem:[%s10764_s26 + $0xc4] ss:$16 sps:$4 sm:$0xff]   ;;  %v7512_v38 = vld [vmem:[%s10764_s26 + $0xc0] ss:$16 sps:$4 sm:$0xff]   ;;  %v7515_v40 = vld [vmem:[%s10764_s26 + $0x8] ss:$16 sps:$4 sm:$0xff]  }
  0x4f   : > { %v624_v17 = vshrl.u32 %v8290_v14, 16  ;;  %v626_v18 = vshll.u32 %v8290_v14, 16  ;;  %1002 = vmatprep.subr.bf16.mxu0 %v7502_v16  ;;  %v953_v35 = vrot.slane %v8290_v14, 1  ;;  %v7523_v39 = vld [vmem:[%s10764_s26 + $0xe4] ss:$16 sps:$4 sm:$0xff]   ;;  %v1319_v60 = vrot.slane %v8290_v14, 2 }
  0x50   : > { %v631_v20 = vshll.u32 %v8292_v15, 16  ;;  %v635_v31 = vshrl.u32 %v8292_v15, 16  ;;  %v8338_v36 = vrot.slane %v8292_v15, 1  ;;  %v7520_v41 = vld [vmem:[%s10764_s26 + $0x2c] ss:$16 sps:$4 sm:$0xff]   ;;  %v1320_v61 = vrot.slane %v8292_v15, 2 }
  0x51   : > { %v628_v22 = vrot.slane %v626_v18, 1  ;;  %6105 = vmatmul.mubr.msk.bf16.vlgmr.msra.gmra.mrb[0].mxu0 %vm678_vm3, %v8290_v14  ;;  %v7521_v42 = vld [vmem:[%s10764_s26 + $0xe0] ss:$16 sps:$4 sm:$0xff]   ;;  %v7526_v43 = vld [vmem:[%s10764_s26 + $0x104] ss:$16 sps:$4 sm:$0xff]   ;;  %v1134_v45 = vrot.slane %v624_v17, 1 }
  0x52   : > { %v633_v23 = vrot.slane %v631_v20, 1  ;;  %1003 = vmatpush1.bf16.msra.mxu0 %v7500_v19  ;;  %877 = vmatprep.mubr.bf16.mxu0 %v8069_v0  ;;  %v8343_v37 = vsel %vm952_vm5, %v953_v35, %v8338_v36  ;;  %v7518_v44 = vld [vmem:[%s10764_s26 + $0x28] ss:$16 sps:$4 sm:$0xff]   ;;  %v7529_v46 = vld [vmem:[%s10764_s26 + $0x8c] ss:$16 sps:$4 sm:$0xff]   ;;  %v1135_v47 = vrot.slane %v626_v18, 2  ;;  %v1321_v62 = vsel %vm1318_vm0, %v1319_v60, %v1320_v61 }
  0x53   : > { %v629_v24 = vor.u32 %v628_v22, %v624_v17  ;;  %1004 = vmatprep.subr.bf16.mxu0 %v7511_v27  ;;  %v1138_v48 = vrot.slane %v631_v20, 2  ;;  %v1137_v49 = vrot.slane %v635_v31, 1  ;;  %v7524_v52 = vld [vmem:[%s10764_s26 + $0x100] ss:$16 sps:$4 sm:$0xff]   ;;  %v7535_v53 = vld [vmem:[%s10764_s26 + $0x124] ss:$16 sps:$4 sm:$0xff]   ;;  %v1492_v17 = vlaneseq }
  0x54   : > { %v637_v34 = vor.u32 %v635_v31, %v633_v23  ;;  %v1136_v50 = vor.u32 %v1135_v47, %v1134_v45  ;;  %v7527_v55 = vld [vmem:[%s10764_s26 + $0x88] ss:$16 sps:$4 sm:$0xff]   ;;  %v7532_v56 = vld [vmem:[%s10764_s26 + $0xac] ss:$16 sps:$4 sm:$0xff]   ;;  %v7533_v57 = vld [vmem:[%s10764_s26 + $0x120] ss:$16 sps:$4 sm:$0xff]  }
  0x55   : > { %v634_v29 = vsel %vm622_vm4, %v629_v24, %v633_v23  ;;  %v1139_v51 = vor.u32 %v1138_v48, %v1137_v49  ;;  %v7530_v58 = vld [vmem:[%s10764_s26 + $0xa8] ss:$16 sps:$4 sm:$0xff]   ;;  %v7538_v59 = vld [vmem:[%s10764_s26 + $0xcc] ss:$16 sps:$4 sm:$0xff]   ;;  %v8452_v18 = vshrl.u32 %v1492_v17, 7  ;;  %s10631_s17 = sand.u32 1, %s8056_s28  }
  0x56   : > { %6093 = vmatmul.mubr.msk.bf16.vlgmr.msra.gmra.mrb[0].mxu1 %vm678_vm3, %v634_v29  ;;  %1005 = vmatpush1.bf16.msra.mxu0 %v7509_v28  ;;  %v7536_v63 = vld [vmem:[%s10764_s26 + $0xc8] ss:$16 sps:$4 sm:$0xff]   ;;  %v7541_v2 = vld [vmem:[%s10764_s26 + $0xec] ss:$16 sps:$4 sm:$0xff]   ;;  %v8458_v20 = vld [vmem:[%s10766_s30] sm:$0xf] }
  0x57   : > { %727 = vmatprep.mubr.bf16.mxu1 %v8069_v0  ;;  %739 = vmatpush1.bf16.msra.mxu1 %v7503_v25  ;;  %v1140_v54 = vsel %vm1133_vm6, %v1136_v50, %v1139_v51  ;;  %v7539_v3 = vld [vmem:[%s10764_s26 + $0xe8] ss:$16 sps:$4 sm:$0xff]   ;;  %v7544_v4 = vld [vmem:[%s10764_s26 + $0x10c] ss:$16 sps:$4 sm:$0xff]   ;;  %v1494_v19 = vsub.s32 0, %v8452_v18  ;;  %v1498_v21 = vsub.s32 1, %v8452_v18 }
  0x58   : > { %740 = vmatprep.subr.bf16.mxu1 %v7508_v26  ;;  %1187 = vmatprep.subr.bf16.mxu0 %v7514_v30  ;;  %v7542_v5 = vld [vmem:[%s10764_s26 + $0x108] ss:$16 sps:$4 sm:$0xff]   ;;  %v7547_v6 = vld [vmem:[%s10764_s26 + $0x12c] ss:$16 sps:$4 sm:$0xff]   ;;  %s592_s23 = scalar_lea.vmem [#allocation6], %s10631_s17  ;;  %s5949_s20 = scalar_lea.sflag [#allocation7], %s10631_s17 }
  0x59   : > { %6106 = vmatmul.mubr.msk.bf16.gmra.mrb[4].mxu0 %vm678_vm3, %v8292_v15  ;;  %v7545_v7 = vld [vmem:[%s10764_s26 + $0x128] ss:$16 sps:$4 sm:$0xff]   ;;  %v1495_v22 = vrot.slane %v8458_v20, %v1494_v19  ;;  %v1499_v24 = vrot.slane %v8458_v20, %v1498_v21  ;;  %s5974_s1 = sshll.u32 %s592_s23, 4  ;;  %s7970_s30 = sshll.u32 %s8073_s12, 4  ;;  %s5975_s1 = int_to_ptr.vmem [resolvable:$true] %s5974_s1  ;;  %s7971_s30 = int_to_ptr.vmem [resolvable:$false] %s7970_s30 }
  0x5a   : > { %1034 = vmatprep.mubr.bf16.mxu0 %v8069_v0  ;;  %v1901_v17 = vld [vmem:[%s10718_s5 + $0x58] sm:$0xff]  ;;  %s7966_s21 = scalar_lea.vmem %s5975_s1, 16  ;;  %s7972_s22 = scalar_lea.vmem %s7971_s30, 32 }
  0x5b   : > { %741 = vmatpush1.bf16.msra.mxu1 %v7506_v32  ;;  %p7967_p6 = scmp.ne.s32.totalorder %s5975_s1, %s7966_s21  ;;  %p7973_p2 = scmp.lt.s32.totalorder %s5975_s1, %s7971_s30 }
  0x5c   : > { %888 = vmatprep.subr.bf16.mxu1 %v7517_v33  ;;  %p7974_p3 = scmp.lt.s32.totalorder %s7972_s22, %s7966_s21 }
  0x5d   : > { %p7968_p10 = pnand %p7967_p6, %p10769_p9 }
  0x5e   : > { %6094 = vmatmul.mubr.msk.bf16.gmra.mrb[4].mxu1 %vm678_vm3, %v637_v34  ;;  %p7975_p4 = por %p7974_p3, %p7973_p2 }
  0x5f   : > { %770 = vmatprep.mubr.bf16.mxu1 %v8069_v0  ;;  %p7969_p12 = pneg %p7968_p10 }
  0x61   : > { %6125 = vmatmul.mubr.msk.bf16.vlgmr.msra.gmra.mrb[0].mxu0 %vm678_vm3, %v8343_v37  ;;  %p7976_p7 = pnand %p7975_p4, %p7969_p12 }
  0x62   : > { %1188 = vmatpush1.bf16.msra.mxu0 %v7512_v38  ;;  %1044 = vmatprep.mubr.bf16.mxu0 %v8069_v0 }
  0x63   : > { %1189 = vmatprep.subr.bf16.mxu0 %v7523_v39 }
  0x66   : > { %6095 = vmatmul.mubr.msk.bf16.vlgmr.msra.gmra.mrb[8].mxu1 %vm678_vm3, %v634_v29  ;;  %1190 = vmatpush1.bf16.msra.mxu0 %v7521_v42 }
  0x67   : > { %780 = vmatprep.mubr.bf16.mxu1 %v8069_v0  ;;  %889 = vmatpush1.bf16.msra.mxu1 %v7515_v40 }
  0x68   : > { %890 = vmatprep.subr.bf16.mxu1 %v7520_v41  ;;  %1368 = vmatprep.subr.bf16.mxu0 %v7526_v43 }
  0x69   : > { %6126 = vmatmul.mubr.msk.bf16.gmra.mrb[4].mxu0 %vm678_vm3, %v8338_v36 }
  0x6a   : > { %1219 = vmatprep.mubr.bf16.mxu0 %v8069_v0 }
  0x6b   : > { %891 = vmatpush1.bf16.msra.mxu1 %v7518_v44 }
  0x6c   : > { %1055 = vmatprep.subr.bf16.mxu1 %v7529_v46 }
  0x6e   : > { %6096 = vmatmul.mubr.msk.bf16.gmra.mrb[12].mxu1 %vm678_vm3, %v637_v34 }
  0x6f   : > { %920 = vmatprep.mubr.bf16.mxu1 %v8069_v0 }
  0x71   : > { %6145 = vmatmul.mubr.msk.bf16.vlgmr.msra.gmra.mrb[0].mxu0 %vm678_vm3, %v1140_v54 }
  0x72   : > { %1369 = vmatpush1.bf16.msra.mxu0 %v7524_v52  ;;  %1229 = vmatprep.mubr.bf16.mxu0 %v8069_v0 }
  0x73   : > { %1370 = vmatprep.subr.bf16.mxu0 %v7535_v53 }
  0x76   : > { %6107 = vmatmul.mubr.msk.bf16.vlgmr.msra.gmra.mrb[8].mxu1 %vm678_vm3, %v8290_v14  ;;  %1371 = vmatpush1.bf16.msra.mxu0 %v7533_v57 }
  0x77   : > { %930 = vmatprep.mubr.bf16.mxu1 %v8069_v0  ;;  %1056 = vmatpush1.bf16.msra.mxu1 %v7527_v55 }
  0x78   : > { %1057 = vmatprep.subr.bf16.mxu1 %v7532_v56 }
  0x79   : > { %6146 = vmatmul.mubr.msk.bf16.gmra.mrb[4].mxu0 %vm678_vm3, %v1139_v51 }
  0x7a   : > { %1400 = vmatprep.mubr.bf16.mxu0 %v8069_v0 }
  0x7b   : > { %1058 = vmatpush1.bf16.msra.mxu1 %v7530_v58  ;;  %v2169_v58 = vld [vmem:[%s10719_s6 + $0x30] sm:$0xff] }
  0x7c   : > { %1240 = vmatprep.subr.bf16.mxu1 %v7538_v59 }
  0x7e   : > { %6108 = vmatmul.mubr.msk.bf16.gmra.mrb[12].mxu1 %vm678_vm3, %v8292_v15 }
  0x7f   : > { %1087 = vmatprep.mubr.bf16.mxu1 %v8069_v0 }
  0x81   : > { %6165 = vmatmul.mubr.msk.bf16.vlgmr.msra.gmra.mrb[0].mxu0 %vm678_vm3, %v1321_v62 }
  0x82   : > { %1410 = vmatprep.mubr.bf16.mxu0 %v8069_v0 }
  0x86   : > { %6127 = vmatmul.mubr.msk.bf16.vlgmr.msra.gmra.mrb[8].mxu1 %vm678_vm3, %v8343_v37 }
  0x87   : > { %1097 = vmatprep.mubr.bf16.mxu1 %v8069_v0  ;;  %1241 = vmatpush1.bf16.msra.mxu1 %v7536_v63  ;;  %v1893_v63 = vld [vmem:[%s10718_s5 + $0x18] sm:$0xff] }
  0x88   : > { %1242 = vmatprep.subr.bf16.mxu1 %v7541_v2  ;;  %v8493_v2 = vld [vmem:[%s10716_s3 + $0x8] sm:$0xff] }
  0x89   : > { %6166 = vmatmul.mubr.msk.bf16.gmra.mrb[4].mxu0 %vm678_vm3, %v1320_v61 }
  0x8a   : > { %1630 = vmatprep.mubr.f32.mxu0 %v8071_v8 }
  0x8b   : > { %1243 = vmatpush1.bf16.msra.mxu1 %v7539_v3 }
  0x8c   : > { %1421 = vmatprep.subr.bf16.mxu1 %v7544_v4  ;;  %v1890_v4 = vld [vmem:[%s10718_s5] sm:$0xff] }
  0x8e   : > { %6128 = vmatmul.mubr.msk.bf16.gmra.mrb[12].mxu1 %vm678_vm3, %v8338_v36 }
  0x8f   : > { %1272 = vmatprep.mubr.bf16.mxu1 %v8069_v0 }
  0x96   : > { %6147 = vmatmul.mubr.msk.bf16.vlgmr.msra.gmra.mrb[8].mxu1 %vm678_vm3, %v1140_v54 }
  0x97   : > { %1282 = vmatprep.mubr.bf16.mxu1 %v8069_v0  ;;  %1422 = vmatpush1.bf16.msra.mxu1 %v7542_v5  ;;  %v1892_v5 = vld [vmem:[%s10718_s5 + $0x10] sm:$0xff] }
  0x98   : > { %1423 = vmatprep.subr.bf16.mxu1 %v7547_v6  ;;  %v1895_v6 = vld [vmem:[%s10718_s5 + $0x28] sm:$0xff] }
  0x9b   : > { %1424 = vmatpush1.bf16.msra.mxu1 %v7545_v7  ;;  %v1897_v7 = vld [vmem:[%s10718_s5 + $0x38] sm:$0xff] }
  0x9e   : > { %6148 = vmatmul.mubr.msk.bf16.gmra.mrb[12].mxu1 %vm678_vm3, %v1139_v51 }
  0x9f   : > { %1453 = vmatprep.mubr.bf16.mxu1 %v8069_v0 }
  0xa6   : > { %6167 = vmatmul.mubr.msk.bf16.vlgmr.msra.gmra.mrb[8].mxu1 %vm678_vm3, %v1321_v62  ;;  %v1891_v62 = vld [vmem:[%s10718_s5 + $0x8] sm:$0xff] }
  0xa7   : > { %1463 = vmatprep.mubr.bf16.mxu1 %v8069_v0  ;;  %v6863_v3 = vpack.c.bf16 %v1893_v63, %v1891_v62 }
  0xae   : > { %6168 = vmatmul.mubr.msk.bf16.gmra.mrb[12].mxu1 %vm678_vm3, %v1320_v61  ;;  %v8479_v61 = vld [vmem:[%s10716_s3] sm:$0xff] }
  0xaf   : > { %1707 = vmatprep.mubr.f32.mxu1 %v8071_v8 }
 0x129   : > { %v719_v9 = vpop.f32.mrb[0].mxu1 }
 0x12a   : > { %v721_v10 = vpop.f32.mrb[1].mxu1 }
 0x12b   : > { %v723_v11 = vpop.f32.mrb[2].mxu1 }
 0x12c   : > { %v725_v12 = vpop.f32.mrb[3].mxu1 }
 0x131   : > { %v729_v13 = vpop.f32.mrb[4].mxu1 }
 0x132   : > { %v731_v14 = vpop.f32.mrb[5].mxu1 }
 0x133   : > { %v733_v15 = vpop.f32.mrb[6].mxu1 }
 0x134   : > { %v735_v16 = vpop.f32.mrb[7].mxu1 }
 0x154   : > { %v1402_v23 = vpop.f32.mrb[0].mxu0 }
 0x155   : > { %v7335_v25 = vadd.f32 %v1402_v23, %v719_v9  ;;  %v1404_v26 = vpop.f32.mrb[1].mxu0  ;;  %v1502_v9 = vsub.s32 2, %v8452_v18  ;;  %v8542_v23 = vld [vmem:[%s10717_s4 + $0x8] sm:$0xff] }
 0x156   : > { %v7336_v27 = vadd.f32 %v1404_v26, %v721_v10  ;;  %v1406_v28 = vpop.f32.mrb[2].mxu0  ;;  %v8518_v10 = vld [vmem:[%s10717_s4] sm:$0xff] }
 0x157   : > { %v1512_v29 = vadd.f32 %v7335_v25, %v1495_v22  ;;  %v7337_v30 = vadd.f32 %v1406_v28, %v723_v11  ;;  %v1408_v31 = vpop.f32.mrb[3].mxu0  ;;  %v6865_v11 = vpack.c.bf16 %v1892_v5, %v1890_v4  ;;  %v1900_v28 = vld [vmem:[%s10718_s5 + $0x50] sm:$0xff]  ;;  %v1910_v4 = vld [vmem:[%s10718_s5 + $0xa0] sm:$0xff] }
 0x158   : > { %v1513_v32 = vadd.f32 %v7336_v27, %v1499_v24  ;;  %v7338_v33 = vadd.f32 %v1408_v31, %v725_v12  ;;  %v1506_v12 = vsub.s32 3, %v8452_v18  ;;  %v1898_v27 = vld [vmem:[%s10718_s5 + $0x40] sm:$0xff]  ;;  %v1912_v5 = vld [vmem:[%s10718_s5 + $0xb0] sm:$0xff]  ;;  %v4226_v18 = vld [vmem:[%s10724_s11 + $0x8] sm:$0xff] }
 0x159   : > { %v1516_v34 = vadd.f32 %v7337_v30, %v1495_v22  ;;  %v1528_v36 = vmax.f32 %v1512_v29, 0.0  ;;  %v1903_v29 = vld [vmem:[%s10718_s5 + $0x68] sm:$0xff]  ;;  %v1905_v30 = vld [vmem:[%s10718_s5 + $0x78] sm:$0xff] }
 0x15a   : > { %v1517_v35 = vadd.f32 %v7338_v33, %v1499_v24  ;;  %v1529_v38 = vmax.f32 %v1513_v32, 0.0  ;;  %v1507_v25 = vrot.slane %v8458_v20, %v1506_v12  ;;  %v6873_v33 = vpack.c.bf16 %v1900_v28, %v1898_v27  ;;  %v1916_v28 = vld [vmem:[%s10718_s5 + $0xd0] sm:$0xff] }
 0x15b   : > { %v1532_v37 = vmax.f32 %v1516_v34, 0.0 }
 0x15c   : > { %v1533_v39 = vmax.f32 %v1517_v35, 0.0  ;;  %v1412_v40 = vpop.f32.mrb[4].mxu0 }
 0x15d   : > { %v6825_v41 = vpack.c.bf16 %v1532_v37, %v1528_v36  ;;  %v7339_v42 = vadd.f32 %v1412_v40, %v729_v13  ;;  %v1414_v43 = vpop.f32.mrb[5].mxu0  ;;  %v6867_v13 = vpack.c.bf16 %v1897_v7, %v1895_v6  ;;  %v6875_v36 = vpack.c.bf16 %v1905_v30, %v1903_v29  ;;  %v1902_v37 = vld [vmem:[%s10718_s5 + $0x60] sm:$0xff]  ;;  %v1921_v30 = vld [vmem:[%s10718_s5 + $0xf8] sm:$0xff] }
 0x15e   : > { %v7340_v44 = vadd.f32 %v1414_v43, %v731_v14  ;;  %v1416_v45 = vpop.f32.mrb[6].mxu0  ;;  %v6823_v46 = vpack.c.bf16 %v1533_v39, %v1529_v38  ;;  %v1894_v14 = vld [vmem:[%s10718_s5 + $0x20] sm:$0xff]  ;;  %v1904_v38 = vld [vmem:[%s10718_s5 + $0x70] sm:$0xff] }
 0x15f   : > { %v1520_v47 = vadd.f32 %v7339_v42, %v1495_v22  ;;  %v7341_v48 = vadd.f32 %v1416_v45, %v733_v15  ;;  %v1418_v49 = vpop.f32.mrb[7].mxu0  ;;  %v1896_v15 = vld [vmem:[%s10718_s5 + $0x30] sm:$0xff]  ;;  %v1909_v42 = vld [vmem:[%s10718_s5 + $0x98] sm:$0xff] }
 0x160   : > { %v1521_v50 = vadd.f32 %v7340_v44, %v1499_v24  ;;  %v7342_v51 = vadd.f32 %v1418_v49, %v735_v16  ;;  %6824 = vmatprep.subr.bf16.mxu0 %v6823_v46  ;;  %v1899_v16 = vld [vmem:[%s10718_s5 + $0x48] sm:$0xff] }
 0x161   : > { %v1524_v52 = vadd.f32 %v7341_v48, %v1495_v22  ;;  %6826 = vmatpush1.bf16.msra.mxu0 %v6825_v41  ;;  %v1536_v54 = vmax.f32 %v1520_v47, 0.0  ;;  %v1503_v22 = vrot.slane %v8458_v20, %v1502_v9  ;;  %v6871_v26 = vpack.c.bf16 %v1901_v17, %v1899_v16 }
 0x162   : > { %v1525_v53 = vadd.f32 %v7342_v51, %v1499_v24  ;;  %v1537_v56 = vmax.f32 %v1521_v50, 0.0  ;;  %v6869_v24 = vpack.c.bf16 %v1896_v15, %v1894_v14  ;;  %v1906_v50 = vld [vmem:[%s10718_s5 + $0x80] sm:$0xff]  ;;  %v1908_v51 = vld [vmem:[%s10718_s5 + $0x90] sm:$0xff]  ;;  %v6885_v17 = vpack.c.bf16 %v1912_v5, %v1910_v4  ;;  %v1935_v5 = vld [vmem:[%s10718_s5 + $0x168] sm:$0xff] }
 0x163   : > { %v1540_v55 = vmax.f32 %v1524_v52, 0.0 }
 0x164   : > { %v1541_v57 = vmax.f32 %v1525_v53, 0.0  ;;  %v1911_v53 = vld [vmem:[%s10718_s5 + $0xa8] sm:$0xff] }
 0x165   : > { %v6830_v59 = vpack.c.bf16 %v1540_v55, %v1536_v54  ;;  %v1913_v54 = vld [vmem:[%s10718_s5 + $0xb8] sm:$0xff] }
 0x166   : > { %v6827_v60 = vpack.c.bf16 %v1541_v57, %v1537_v56 }
 0x168   : > { %6829 = vmatprep.subr.msk.bf16.mxu0 %vm8468_vm8, %v6827_v60 }
 0x169   : > { %6832 = vmatpush1.bf16.msk.msra.mxu0 %vm8468_vm8, %v6830_v59 }
 0x16a   : > { %6844 = vmatprep.subr.bf16.mxu0 %v6823_v46  ;;  %v6877_v46 = vpack.c.bf16 %v1904_v38, %v1902_v37  ;;  %v2164_v37 = vld [vmem:[%s10719_s6 + $0x8] sm:$0xff]  ;;  %v2166_v38 = vld [vmem:[%s10719_s6 + $0x18] sm:$0xff] }
 0x16c   : > { %6171 = vmatmul.mubr.msk.f32.vlgmr.msra.gmra.mrb[8].mxu0 %vm1546_vm9, %v8479_v61 }
 0x16d   : > { %6846 = vmatpush1.bf16.msra.mxu0 %v6825_v41  ;;  %1636 = vmatprep.mubr.f32.mxu0 %v8071_v8  ;;  %v1907_v41 = vld [vmem:[%s10718_s5 + $0x88] sm:$0xff] }
 0x16e   : > { %6849 = vmatprep.subr.msk.bf16.mxu0 %vm8468_vm8, %v6827_v60  ;;  %v6879_v49 = vpack.c.bf16 %v1909_v42, %v1907_v41  ;;  %v6881_v60 = vpack.c.bf16 %v1908_v51, %v1906_v50  ;;  %v1922_v41 = vld [vmem:[%s10718_s5 + $0x100] sm:$0xff]  ;;  %v1924_v42 = vld [vmem:[%s10718_s5 + $0x110] sm:$0xff] }
 0x16f   : > { %v1926_v51 = vld [vmem:[%s10718_s5 + $0x120] sm:$0xff] }
 0x170   : > { %6172 = vmatmul.mubr.msk.f32.gmra.mrb[10].mxu0 %vm1546_vm9, %v8493_v2 }
 0x171   : > { %6852 = vmatpush1.bf16.msk.msra.mxu0 %vm8468_vm8, %v6830_v59  ;;  %1792 = vmatprep.mubr.f32.mxu0 %v8071_v8 }
 0x172   : > { %6864 = vmatprep.subr.bf16.mxu0 %v6863_v3  ;;  %v6883_v3 = vpack.c.bf16 %v1913_v54, %v1911_v53  ;;  %v1933_v54 = vld [vmem:[%s10718_s5 + $0x158] sm:$0xff] }
 0x174   : > { %6179 = vmatmul.mubr.msk.f32.vlgmr.msra.gmra.mrb[12].mxu0 %vm1546_vm9, %v8518_v10 }
 0x175   : > { %1798 = vmatprep.mubr.f32.mxu0 %v8071_v8  ;;  %6866 = vmatpush1.bf16.msra.mxu0 %v6865_v11  ;;  %v1915_v11 = vld [vmem:[%s10718_s5 + $0xc8] sm:$0xff] }
 0x176   : > { %6868 = vmatprep.subr.bf16.mxu0 %v6867_v13  ;;  %v1917_v13 = vld [vmem:[%s10718_s5 + $0xd8] sm:$0xff] }
 0x177   : > { %v6887_v27 = vpack.c.bf16 %v1917_v13, %v1915_v11  ;;  %v2173_v11 = vld [vmem:[%s10719_s6 + $0x50] sm:$0xff]  ;;  %v2176_v13 = vld [vmem:[%s10719_s6 + $0x68] sm:$0xff] }
 0x178   : > { %6180 = vmatmul.mubr.msk.f32.gmra.mrb[14].mxu0 %vm1546_vm9, %v8542_v23 }
 0x179   : > { %v1455_v31 = vpop.f32.mrb[8].mxu1  ;;  %6870 = vmatpush1.bf16.msra.mxu0 %v6869_v24 }
 0x17a   : > { %v1514_v20 = vadd.f32 %v1503_v22, %v1455_v31  ;;  %v1457_v32 = vpop.f32.mrb[9].mxu1  ;;  %6872 = vmatprep.subr.bf16.mxu0 %v6871_v26 }
 0x17b   : > { %v1515_v34 = vadd.f32 %v1507_v25, %v1457_v32  ;;  %v1459_v35 = vpop.f32.mrb[10].mxu1 }
 0x17c   : > { %v1518_v39 = vadd.f32 %v1503_v22, %v1459_v35  ;;  %v1461_v40 = vpop.f32.mrb[11].mxu1  ;;  %v1530_v44 = vmax.f32 %v1514_v20, 0.0  ;;  %v1923_v35 = vld [vmem:[%s10718_s5 + $0x108] sm:$0xff] }
 0x17d   : > { %v1519_v43 = vadd.f32 %v1507_v25, %v1461_v40  ;;  %6874 = vmatpush1.bf16.msra.mxu0 %v6873_v33  ;;  %v1531_v47 = vmax.f32 %v1515_v34, 0.0  ;;  %v1918_v33 = vld [vmem:[%s10718_s5 + $0xe0] sm:$0xff]  ;;  %v1920_v34 = vld [vmem:[%s10718_s5 + $0xf0] sm:$0xff] }
 0x17e   : > { %v1534_v45 = vmax.f32 %v1518_v39, 0.0  ;;  %6876 = vmatprep.subr.bf16.mxu0 %v6875_v36  ;;  %v1925_v36 = vld [vmem:[%s10718_s5 + $0x118] sm:$0xff]  ;;  %v6893_v39 = vpack.c.bf16 %v1920_v34, %v1918_v33  ;;  %v1940_v33 = vld [vmem:[%s10718_s5 + $0x190] sm:$0xff] }
 0x17f   : > { %v1535_v48 = vmax.f32 %v1519_v43, 0.0  ;;  %v6895_v40 = vpack.c.bf16 %v1925_v36, %v1923_v35  ;;  %v1927_v43 = vld [vmem:[%s10718_s5 + $0x128] sm:$0xff]  ;;  %v2179_v36 = vld [vmem:[%s10719_s6 + $0x80] sm:$0xff] }
 0x180   : > { %v6835_v52 = vpack.c.bf16 %v1534_v45, %v1530_v44  ;;  %v6975_v44 = vpack.c.bf16 %v2166_v38, %v2164_v37  ;;  %v2163_v45 = vld [vmem:[%s10719_s6] sm:$0xff]  ;;  %v2181_v37 = vld [vmem:[%s10719_s6 + $0x90] sm:$0xff]  ;;  %v2184_v38 = vld [vmem:[%s10719_s6 + $0xa8] sm:$0xff] }
 0x181   : > { %v6833_v55 = vpack.c.bf16 %v1535_v48, %v1531_v47  ;;  %v1465_v56 = vpop.f32.mrb[12].mxu1  ;;  %6878 = vmatpush1.bf16.msra.mxu0 %v6877_v46  ;;  %v2165_v46 = vld [vmem:[%s10719_s6 + $0x10] sm:$0xff]  ;;  %v2168_v47 = vld [vmem:[%s10719_s6 + $0x28] sm:$0xff]  ;;  %v2170_v48 = vld [vmem:[%s10719_s6 + $0x38] sm:$0xff] }
 0x182   : > { %v1522_v57 = vadd.f32 %v1503_v22, %v1465_v56  ;;  %v1467_v59 = vpop.f32.mrb[13].mxu1  ;;  %6880 = vmatprep.subr.bf16.mxu0 %v6879_v49  ;;  %v6897_v49 = vpack.c.bf16 %v1924_v42, %v1922_v41  ;;  %v6977_v53 = vpack.c.bf16 %v2165_v46, %v2163_v45  ;;  %v2167_v56 = vld [vmem:[%s10719_s6 + $0x20] sm:$0xff]  ;;  %v6993_v41 = vpack.c.bf16 %v2181_v37, %v2179_v36  ;;  %v2190_v45 = vld [vmem:[%s10719_s6 + $0xd8] sm:$0xff]  ;;  %v2216_v36 = vld [vmem:[%s10719_s6 + $0x1a8] sm:$0xff] }
 0x183   : > { %v1523_v62 = vadd.f32 %v1507_v25, %v1467_v59  ;;  %v1469_v63 = vpop.f32.mrb[14].mxu1  ;;  %6834 = vmatprep.subr.bf16.mxu1 %v6833_v55  ;;  %v2174_v59 = vld [vmem:[%s10719_s6 + $0x58] sm:$0xff]  ;;  %v6981_v4 = vpack.c.bf16 %v2169_v58, %v2167_v56 }
 0x184   : > { %v1526_v6 = vadd.f32 %v1503_v22, %v1469_v63  ;;  %v1471_v7 = vpop.f32.mrb[15].mxu1  ;;  %6836 = vmatpush1.bf16.msra.mxu1 %v6835_v52  ;;  %v1538_v15 = vmax.f32 %v1522_v57, 0.0  ;;  %v1914_v22 = vld [vmem:[%s10718_s5 + $0xc0] sm:$0xff]  ;;  %v2172_v57 = vld [vmem:[%s10719_s6 + $0x48] sm:$0xff]  ;;  %v2198_v56 = vld [vmem:[%s10719_s6 + $0x118] sm:$0xff] }
 0x185   : > { %v1527_v14 = vadd.f32 %v1507_v25, %v1471_v7  ;;  %6882 = vmatpush1.bf16.msra.mxu0 %v6881_v60  ;;  %v1539_v24 = vmax.f32 %v1523_v62, 0.0  ;;  %v1919_v25 = vld [vmem:[%s10718_s5 + $0xe8] sm:$0xff]  ;;  %v6889_v20 = vpack.c.bf16 %v1916_v28, %v1914_v22  ;;  %v1930_v63 = vld [vmem:[%s10718_s5 + $0x140] sm:$0xff]  ;;  %v2218_v37 = vld [vmem:[%s10719_s6 + $0x1b8] sm:$0xff] }
 0x186   : > { %v1542_v16 = vmax.f32 %v1526_v6, 0.0  ;;  %6884 = vmatprep.subr.bf16.mxu0 %v6883_v3  ;;  %v6891_v32 = vpack.c.bf16 %v1921_v30, %v1919_v25  ;;  %v1932_v3 = vld [vmem:[%s10718_s5 + $0x150] sm:$0xff]  ;;  %v6983_v6 = vpack.c.bf16 %v2174_v59, %v2172_v57  ;;  %v2171_v7 = vld [vmem:[%s10719_s6 + $0x40] sm:$0xff]  ;;  %v2180_v25 = vld [vmem:[%s10719_s6 + $0x88] sm:$0xff] }
 0x187   : > { %v1543_v26 = vmax.f32 %v1527_v14, 0.0  ;;  %v2178_v14 = vld [vmem:[%s10719_s6 + $0x78] sm:$0xff]  ;;  %v2175_v28 = vld [vmem:[%s10719_s6 + $0x60] sm:$0xff] }
 0x188   : > { %v6840_v29 = vpack.c.bf16 %v1542_v16, %v1538_v15  ;;  %v6905_v15 = vpack.c.bf16 %v1932_v3, %v1930_v63  ;;  %v6987_v22 = vpack.c.bf16 %v2178_v14, %v2176_v13  ;;  %v2182_v30 = vld [vmem:[%s10719_s6 + $0x98] sm:$0xff]  ;;  %v2195_v59 = vld [vmem:[%s10719_s6 + $0x100] sm:$0xff] }
 0x189   : > { %v6837_v31 = vpack.c.bf16 %v1543_v26, %v1539_v24  ;;  %6886 = vmatpush1.bf16.msra.mxu0 %v6885_v17  ;;  %v1934_v17 = vld [vmem:[%s10718_s5 + $0x160] sm:$0xff]  ;;  %v1936_v24 = vld [vmem:[%s10718_s5 + $0x170] sm:$0xff]  ;;  %v6985_v26 = vpack.c.bf16 %v2173_v11, %v2171_v7  ;;  %v6991_v35 = vpack.c.bf16 %v2182_v30, %v2180_v25  ;;  %v2202_v63 = vld [vmem:[%s10719_s6 + $0x138] sm:$0xff] }
 0x18a   : > { %6888 = vmatprep.subr.bf16.mxu0 %v6887_v27  ;;  %v1939_v27 = vld [vmem:[%s10718_s5 + $0x188] sm:$0xff]  ;;  %v2206_v7 = vld [vmem:[%s10719_s6 + $0x158] sm:$0xff]  ;;  %v2203_v14 = vld [vmem:[%s10719_s6 + $0x140] sm:$0xff] }
 0x18b   : > { %6839 = vmatprep.subr.msk.bf16.mxu1 %vm8468_vm8, %v6837_v31  ;;  %v2211_v25 = vld [vmem:[%s10719_s6 + $0x180] sm:$0xff]  ;;  %v1943_v30 = vld [vmem:[%s10718_s5 + $0x1a8] sm:$0xff] }
 0x18c   : > { %6842 = vmatpush1.bf16.msk.msra.mxu1 %vm8468_vm8, %v6840_v29 }
 0x18d   : > { %6854 = vmatprep.subr.bf16.mxu1 %v6833_v55  ;;  %6890 = vmatpush1.bf16.msra.mxu0 %v6889_v20  ;;  %v6979_v55 = vpack.c.bf16 %v2170_v48, %v2168_v47  ;;  %v2187_v48 = vld [vmem:[%s10719_s6 + $0xc0] sm:$0xff] }
 0x18e   : > { %6892 = vmatprep.subr.bf16.mxu0 %v6891_v32  ;;  %v1938_v32 = vld [vmem:[%s10718_s5 + $0x180] sm:$0xff] }
 0x18f   : > { %6175 = vmatmul.mubr.msk.f32.vlgmr.msra.gmra.mrb[16].mxu1 %vm1546_vm9, %v8479_v61  ;;  %v1929_v61 = vld [vmem:[%s10718_s5 + $0x138] sm:$0xff] }
 0x190   : > { %6856 = vmatpush1.bf16.msra.mxu1 %v6835_v52  ;;  %1713 = vmatprep.mubr.f32.mxu1 %v8071_v8  ;;  %v6899_v50 = vpack.c.bf16 %v1929_v61, %v1927_v43  ;;  %v1928_v52 = vld [vmem:[%s10718_s5 + $0x130] sm:$0xff]  ;;  %v2183_v43 = vld [vmem:[%s10719_s6 + $0xa0] sm:$0xff] }
 0x191   : > { %6859 = vmatprep.subr.msk.bf16.mxu1 %vm8468_vm8, %v6837_v31  ;;  %6894 = vmatpush1.bf16.msra.mxu0 %v6893_v39  ;;  %v6901_v60 = vpack.c.bf16 %v1928_v52, %v1926_v51  ;;  %v6909_v31 = vpack.c.bf16 %v1936_v24, %v1934_v17  ;;  %v2186_v39 = vld [vmem:[%s10719_s6 + $0xb8] sm:$0xff]  ;;  %v2185_v61 = vld [vmem:[%s10719_s6 + $0xb0] sm:$0xff] }
 0x192   : > { %6896 = vmatprep.subr.bf16.mxu0 %v6895_v40  ;;  %v6913_v40 = vpack.c.bf16 %v1940_v33, %v1938_v32  ;;  %v6995_v42 = vpack.c.bf16 %v2186_v39, %v2184_v38  ;;  %v6997_v46 = vpack.c.bf16 %v2185_v61, %v2183_v43  ;;  %v2194_v51 = vld [vmem:[%s10719_s6 + $0xf8] sm:$0xff]  ;;  %v2213_v32 = vld [vmem:[%s10719_s6 + $0x190] sm:$0xff]  ;;  %v7027_v43 = vpack.c.bf16 %v2218_v37, %v2216_v36  ;;  %v1958_v36 = vld [vmem:[%s10718_s5 + $0x220] sm:$0xff] }
 0x193   : > { %6176 = vmatmul.mubr.msk.f32.gmra.mrb[18].mxu1 %vm1546_vm9, %v8493_v2  ;;  %v1931_v2 = vld [vmem:[%s10718_s5 + $0x148] sm:$0xff]  ;;  %v2210_v17 = vld [vmem:[%s10719_s6 + $0x178] sm:$0xff]  ;;  %v7025_v39 = vpack.c.bf16 %v2213_v32, %v2211_v25  ;;  %v2217_v61 = vld [vmem:[%s10719_s6 + $0x1b0] sm:$0xff] }
 0x194   : > { %6862 = vmatpush1.bf16.msk.msra.mxu1 %vm8468_vm8, %v6840_v29  ;;  %1869 = vmatprep.mubr.f32.mxu1 %v8071_v8  ;;  %v6903_v62 = vpack.c.bf16 %v1933_v54, %v1931_v2  ;;  %v2177_v29 = vld [vmem:[%s10719_s6 + $0x70] sm:$0xff]  ;;  %v2191_v2 = vld [vmem:[%s10719_s6 + $0xe0] sm:$0xff]  ;;  %v1961_v25 = vld [vmem:[%s10718_s5 + $0x238] sm:$0xff] }
 0x195   : > { %6976 = vmatprep.subr.bf16.mxu1 %v6975_v44  ;;  %6898 = vmatpush1.bf16.msra.mxu0 %v6897_v49  ;;  %v6989_v34 = vpack.c.bf16 %v2177_v29, %v2175_v28  ;;  %v2188_v44 = vld [vmem:[%s10719_s6 + $0xc8] sm:$0xff]  ;;  %v2189_v49 = vld [vmem:[%s10719_s6 + $0xd0] sm:$0xff]  ;;  %v2214_v28 = vld [vmem:[%s10719_s6 + $0x198] sm:$0xff] }
 0x196   : > { %6900 = vmatprep.subr.bf16.mxu0 %v6899_v50  ;;  %v6999_v47 = vpack.c.bf16 %v2190_v45, %v2188_v44  ;;  %v2192_v50 = vld [vmem:[%s10719_s6 + $0xe8] sm:$0xff]  ;;  %v7001_v52 = vpack.c.bf16 %v2189_v49, %v2187_v48  ;;  %v2193_v54 = vld [vmem:[%s10719_s6 + $0xf0] sm:$0xff]  ;;  %v1946_v45 = vld [vmem:[%s10718_s5 + $0x1c0] sm:$0xff] }
 0x197   : > { %6183 = vmatmul.mubr.msk.f32.vlgmr.msra.gmra.mrb[20].mxu1 %vm1546_vm9, %v8518_v10  ;;  %v1937_v10 = vld [vmem:[%s10718_s5 + $0x178] sm:$0xff]  ;;  %v7005_v58 = vpack.c.bf16 %v2193_v54, %v2191_v2  ;;  %v1951_v2 = vld [vmem:[%s10718_s5 + $0x1e8] sm:$0xff]  ;;  %v1960_v37 = vld [vmem:[%s10718_s5 + $0x230] sm:$0xff] }
 0x198   : > { %1875 = vmatprep.mubr.f32.mxu1 %v8071_v8  ;;  %6978 = vmatpush1.bf16.msra.mxu1 %v6977_v53  ;;  %v6907_v16 = vpack.c.bf16 %v1937_v10, %v1935_v5  ;;  %v7003_v53 = vpack.c.bf16 %v2194_v51, %v2192_v50  ;;  %v2199_v5 = vld [vmem:[%s10719_s6 + $0x120] sm:$0xff]  ;;  %v2201_v10 = vld [vmem:[%s10719_s6 + $0x130] sm:$0xff]  ;;  %v2222_v48 = vld [vmem:[%s10719_s6 + $0x1d8] sm:$0xff] }
 0x199   : > { %6980 = vmatprep.subr.bf16.mxu1 %v6979_v55  ;;  %6902 = vmatpush1.bf16.msra.mxu0 %v6901_v60  ;;  %v2196_v55 = vld [vmem:[%s10719_s6 + $0x108] sm:$0xff]  ;;  %v2197_v60 = vld [vmem:[%s10719_s6 + $0x110] sm:$0xff]  ;;  %v7013_v11 = vpack.c.bf16 %v2201_v10, %v2199_v5  ;;  %v2219_v51 = vld [vmem:[%s10719_s6 + $0x1c0] sm:$0xff] }
 0x19a   : > { %6904 = vmatprep.subr.bf16.mxu0 %v6903_v62  ;;  %v7007_v57 = vpack.c.bf16 %v2198_v56, %v2196_v55  ;;  %v2200_v62 = vld [vmem:[%s10719_s6 + $0x128] sm:$0xff]  ;;  %v7009_v3 = vpack.c.bf16 %v2197_v60, %v2195_v59  ;;  %v1953_v54 = vld [vmem:[%s10718_s5 + $0x1f8] sm:$0xff]  ;;  %v1952_v59 = vld [vmem:[%s10718_s5 + $0x1f0] sm:$0xff] }
 0x19b   : > { %6184 = vmatmul.mubr.msk.f32.gmra.mrb[22].mxu1 %vm1546_vm9, %v8542_v23  ;;  %v1941_v23 = vld [vmem:[%s10718_s5 + $0x198] sm:$0xff]  ;;  %v2224_v55 = vld [vmem:[%s10719_s6 + $0x1e8] sm:$0xff]  ;;  %v6923_v56 = vpack.c.bf16 %v1953_v54, %v1951_v2  ;;  %v2235_v54 = vld [vmem:[%s10719_s6 + $0x240] sm:$0xff] }
 0x19c   : > { %6982 = vmatpush1.bf16.msra.mxu1 %v6981_v4  ;;  %v6911_v20 = vpack.c.bf16 %v1941_v23, %v1939_v27  ;;  %v7011_v4 = vpack.c.bf16 %v2202_v63, %v2200_v62  ;;  %v2207_v27 = vld [vmem:[%s10719_s6 + $0x160] sm:$0xff]  ;;  %v2209_v23 = vld [vmem:[%s10719_s6 + $0x170] sm:$0xff]  ;;  %v1955_v5 = vld [vmem:[%s10718_s5 + $0x208] sm:$0xff] }
 0x19d   : > { %6984 = vmatprep.subr.bf16.mxu1 %v6983_v6  ;;  %6906 = vmatpush1.bf16.msra.mxu0 %v6905_v15  ;;  %v2204_v6 = vld [vmem:[%s10719_s6 + $0x148] sm:$0xff]  ;;  %v2205_v15 = vld [vmem:[%s10719_s6 + $0x150] sm:$0xff]  ;;  %v7021_v29 = vpack.c.bf16 %v2209_v23, %v2207_v27  ;;  %v2223_v63 = vld [vmem:[%s10719_s6 + $0x1e0] sm:$0xff] }
 0x19e   : > { %6908 = vmatprep.subr.bf16.mxu0 %v6907_v16  ;;  %v7015_v13 = vpack.c.bf16 %v2206_v7, %v2204_v6  ;;  %v2208_v16 = vld [vmem:[%s10719_s6 + $0x168] sm:$0xff]  ;;  %v7017_v24 = vpack.c.bf16 %v2205_v15, %v2203_v14  ;;  %v1957_v10 = vld [vmem:[%s10718_s5 + $0x218] sm:$0xff]  ;;  %v1956_v27 = vld [vmem:[%s10718_s5 + $0x210] sm:$0xff] }
 0x19f   : > { %v6927_v6 = vpack.c.bf16 %v1957_v10, %v1955_v5  ;;  %v2228_v7 = vld [vmem:[%s10719_s6 + $0x208] sm:$0xff]  ;;  %v2227_v23 = vld [vmem:[%s10719_s6 + $0x200] sm:$0xff] }
 0x1a0   : > { %6986 = vmatpush1.bf16.msra.mxu1 %v6985_v26  ;;  %v7019_v26 = vpack.c.bf16 %v2210_v17, %v2208_v16  ;;  %v2239_v10 = vld [vmem:[%s10719_s6 + $0x260] sm:$0xff] }
 0x1a1   : > { %6988 = vmatprep.subr.bf16.mxu1 %v6987_v22  ;;  %6910 = vmatpush1.bf16.msra.mxu0 %v6909_v31  ;;  %v2212_v22 = vld [vmem:[%s10719_s6 + $0x188] sm:$0xff]  ;;  %v1945_v31 = vld [vmem:[%s10718_s5 + $0x1b8] sm:$0xff] }
 0x1a2   : > { %6912 = vmatprep.subr.bf16.mxu0 %v6911_v20  ;;  %v7023_v20 = vpack.c.bf16 %v2214_v28, %v2212_v22  ;;  %v6915_v33 = vpack.c.bf16 %v1945_v31, %v1943_v30  ;;  %v2229_v22 = vld [vmem:[%s10719_s6 + $0x210] sm:$0xff]  ;;  %v1959_v28 = vld [vmem:[%s10718_s5 + $0x228] sm:$0xff]  ;;  %v2234_v31 = vld [vmem:[%s10719_s6 + $0x238] sm:$0xff] }
 0x1a3   : > { %v2232_v30 = vld [vmem:[%s10719_s6 + $0x228] sm:$0xff] }
 0x1a4   : > { %6990 = vmatpush1.bf16.msra.mxu1 %v6989_v34  ;;  %v1942_v34 = vld [vmem:[%s10718_s5 + $0x1a0] sm:$0xff] }
 0x1a5   : > { %6992 = vmatprep.subr.bf16.mxu1 %v6991_v35  ;;  %6914 = vmatpush1.bf16.msra.mxu0 %v6913_v40  ;;  %v1944_v35 = vld [vmem:[%s10718_s5 + $0x1b0] sm:$0xff]  ;;  %v2215_v40 = vld [vmem:[%s10719_s6 + $0x1a0] sm:$0xff] }
 0x1a6   : > { %v6917_v38 = vpack.c.bf16 %v1944_v35, %v1942_v34  ;;  %6916 = vmatprep.subr.bf16.mxu0 %v6915_v33  ;;  %v7029_v50 = vpack.c.bf16 %v2217_v61, %v2215_v40  ;;  %v7041_v35 = vpack.c.bf16 %v2229_v22, %v2227_v23  ;;  %v2231_v40 = vld [vmem:[%s10719_s6 + $0x220] sm:$0xff]  ;;  %v1965_v61 = vld [vmem:[%s10718_s5 + $0x258] sm:$0xff]  ;;  %v2245_v22 = vld [vmem:[%s10719_s6 + $0x290] sm:$0xff] }
 0x1a7   : > { %v2243_v23 = vld [vmem:[%s10719_s6 + $0x280] sm:$0xff] }
 0x1a8   : > { %6994 = vmatpush1.bf16.msra.mxu1 %v6993_v41  ;;  %v1947_v41 = vld [vmem:[%s10718_s5 + $0x1c8] sm:$0xff] }
 0x1a9   : > { %6996 = vmatprep.subr.bf16.mxu1 %v6995_v42  ;;  %6918 = vmatpush1.bf16.msra.mxu0 %v6917_v38  ;;  %v1949_v42 = vld [vmem:[%s10718_s5 + $0x1d8] sm:$0xff]  ;;  %v6931_v38 = vpack.c.bf16 %v1961_v25, %v1959_v28  ;;  %v1975_v28 = vld [vmem:[%s10718_s5 + $0x2a8] sm:$0xff] }
 0x1aa   : > { %v6919_v44 = vpack.c.bf16 %v1949_v42, %v1947_v41  ;;  %v2233_v41 = vld [vmem:[%s10719_s6 + $0x230] sm:$0xff]  ;;  %v1963_v42 = vld [vmem:[%s10718_s5 + $0x248] sm:$0xff] }
 0x1ab   : > { %v2248_v25 = vld [vmem:[%s10719_s6 + $0x2a8] sm:$0xff] }
 0x1ac   : > { %6998 = vmatpush1.bf16.msra.mxu1 %v6997_v46  ;;  %v1948_v46 = vld [vmem:[%s10718_s5 + $0x1d0] sm:$0xff]  ;;  %6920 = vmatprep.subr.bf16.mxu0 %v6919_v44  ;;  %v2236_v44 = vld [vmem:[%s10719_s6 + $0x248] sm:$0xff] }
 0x1ad   : > { %7000 = vmatprep.subr.bf16.mxu1 %v6999_v47  ;;  %v2220_v47 = vld [vmem:[%s10719_s6 + $0x1c8] sm:$0xff]  ;;  %v6921_v49 = vpack.c.bf16 %v1948_v46, %v1946_v45  ;;  %v2238_v45 = vld [vmem:[%s10719_s6 + $0x258] sm:$0xff] }
 0x1ae   : > { %v7047_v2 = vpack.c.bf16 %v2238_v45, %v2236_v44  ;;  %v1980_v44 = vld [vmem:[%s10718_s5 + $0x2d0] sm:$0xff] }
 0x1af   : > { %6922 = vmatpush1.bf16.msra.mxu0 %v6921_v49  ;;  %v6933_v49 = vpack.c.bf16 %v1960_v37, %v1958_v36  ;;  %v2247_v36 = vld [vmem:[%s10719_s6 + $0x2a0] sm:$0xff]  ;;  %v2249_v37 = vld [vmem:[%s10719_s6 + $0x2b0] sm:$0xff] }
 0x1b0   : > { %7002 = vmatpush1.bf16.msra.mxu1 %v7001_v52  ;;  %v2221_v52 = vld [vmem:[%s10719_s6 + $0x1d0] sm:$0xff]  ;;  %6924 = vmatprep.subr.bf16.mxu0 %v6923_v56  ;;  %v1967_v56 = vld [vmem:[%s10718_s5 + $0x268] sm:$0xff] }
 0x1b1   : > { %7004 = vmatprep.subr.bf16.mxu1 %v7003_v53  ;;  %v7031_v53 = vpack.c.bf16 %v2222_v48, %v2220_v47  ;;  %v7033_v62 = vpack.c.bf16 %v2221_v52, %v2219_v51  ;;  %v1962_v51 = vld [vmem:[%s10718_s5 + $0x240] sm:$0xff]  ;;  %v1964_v52 = vld [vmem:[%s10718_s5 + $0x250] sm:$0xff] }
 0x1b4   : > { %7006 = vmatpush1.bf16.msra.mxu1 %v7005_v58  ;;  %v2226_v58 = vld [vmem:[%s10719_s6 + $0x1f8] sm:$0xff] }
 0x1b5   : > { %7008 = vmatprep.subr.bf16.mxu1 %v7007_v57  ;;  %v1950_v57 = vld [vmem:[%s10718_s5 + $0x1e0] sm:$0xff] }
 0x1b6   : > { %v6925_v60 = vpack.c.bf16 %v1952_v59, %v1950_v57  ;;  %v2240_v57 = vld [vmem:[%s10719_s6 + $0x268] sm:$0xff]  ;;  %v2242_v59 = vld [vmem:[%s10719_s6 + $0x278] sm:$0xff] }
 0x1b7   : > { %v7051_v5 = vpack.c.bf16 %v2242_v59, %v2240_v57  ;;  %v2255_v59 = vld [vmem:[%s10719_s6 + $0x2e0] sm:$0xff] }
 0x1b8   : > { %7010 = vmatpush1.bf16.msra.mxu1 %v7009_v3  ;;  %v7035_v3 = vpack.c.bf16 %v2226_v58, %v2224_v55  ;;  %6926 = vmatpush1.bf16.msra.mxu0 %v6925_v60  ;;  %v2237_v55 = vld [vmem:[%s10719_s6 + $0x250] sm:$0xff]  ;;  %v1969_v58 = vld [vmem:[%s10718_s5 + $0x278] sm:$0xff]  ;;  %v6937_v60 = vpack.c.bf16 %v1964_v52, %v1962_v51  ;;  %v2256_v51 = vld [vmem:[%s10719_s6 + $0x2e8] sm:$0xff] }
 0x1b9   : > { %7012 = vmatprep.subr.bf16.mxu1 %v7011_v4  ;;  %v2225_v4 = vld [vmem:[%s10719_s6 + $0x1f0] sm:$0xff]  ;;  %6928 = vmatprep.subr.bf16.mxu0 %v6927_v6  ;;  %v2258_v52 = vld [vmem:[%s10719_s6 + $0x2f8] sm:$0xff] }
 0x1ba   : > { %v2241_v6 = vld [vmem:[%s10719_s6 + $0x270] sm:$0xff]  ;;  %v7067_v57 = vpack.c.bf16 %v2258_v52, %v2256_v51  ;;  %v1999_v52 = vld [vmem:[%s10718_s5 + $0x368] sm:$0xff] }
 0x1bb   : > { %v2269_v51 = vld [vmem:[%s10719_s6 + $0x350] sm:$0xff] }
 0x1bc   : > { %7014 = vmatpush1.bf16.msra.mxu1 %v7013_v11  ;;  %v2230_v11 = vld [vmem:[%s10719_s6 + $0x218] sm:$0xff] }
 0x1bd   : > { %7016 = vmatprep.subr.bf16.mxu1 %v7015_v13  ;;  %v7037_v13 = vpack.c.bf16 %v2225_v4, %v2223_v63  ;;  %v7039_v14 = vpack.c.bf16 %v2230_v11, %v2228_v7  ;;  %v1966_v63 = vld [vmem:[%s10718_s5 + $0x260] sm:$0xff]  ;;  %v6939_v4 = vpack.c.bf16 %v1969_v58, %v1967_v56  ;;  %v1971_v7 = vld [vmem:[%s10718_s5 + $0x288] sm:$0xff]  ;;  %v1973_v11 = vld [vmem:[%s10718_s5 + $0x298] sm:$0xff] }
 0x1c0   : > { %7018 = vmatpush1.bf16.msra.mxu1 %v7017_v24 }
 0x1c1   : > { %7020 = vmatprep.subr.bf16.mxu1 %v7019_v26  ;;  %v1954_v26 = vld [vmem:[%s10718_s5 + $0x200] sm:$0xff] }
 0x1c2   : > { %v6929_v34 = vpack.c.bf16 %v1956_v27, %v1954_v26  ;;  %v6943_v26 = vpack.c.bf16 %v1973_v11, %v1971_v7  ;;  %v1986_v11 = vld [vmem:[%s10718_s5 + $0x300] sm:$0xff] }
 0x1c4   : > { %7022 = vmatpush1.bf16.msra.mxu1 %v7021_v29 }
 0x1c5   : > { %7024 = vmatprep.subr.bf16.mxu1 %v7023_v20 }
 0x1c8   : > { %7026 = vmatpush1.bf16.msra.mxu1 %v7025_v39  ;;  %v7043_v39 = vpack.c.bf16 %v2234_v31, %v2232_v30  ;;  %v2250_v30 = vld [vmem:[%s10719_s6 + $0x2b8] sm:$0xff] }
 0x1c9   : > { %7028 = vmatprep.subr.bf16.mxu1 %v7027_v43 }
 0x1cc   : > { %7030 = vmatpush1.bf16.msra.mxu1 %v7029_v50  ;;  %v7045_v50 = vpack.c.bf16 %v2233_v41, %v2231_v40  ;;  %v2252_v40 = vld [vmem:[%s10719_s6 + $0x2c8] sm:$0xff]  ;;  %v2254_v41 = vld [vmem:[%s10719_s6 + $0x2d8] sm:$0xff] }
 0x1cd   : > { %7032 = vmatprep.subr.bf16.mxu1 %v7031_v53  ;;  %v6935_v53 = vpack.c.bf16 %v1965_v61, %v1963_v42  ;;  %v1978_v61 = vld [vmem:[%s10718_s5 + $0x2c0] sm:$0xff] }
 0x1d0   : > { %7034 = vmatpush1.bf16.msra.mxu1 %v7033_v62  ;;  %v7049_v62 = vpack.c.bf16 %v2237_v55, %v2235_v54  ;;  %v1982_v54 = vld [vmem:[%s10718_s5 + $0x2e0] sm:$0xff]  ;;  %v1984_v55 = vld [vmem:[%s10718_s5 + $0x2f0] sm:$0xff] }
 0x1d1   : > { %7036 = vmatprep.subr.bf16.mxu1 %v7035_v3  ;;  %v1968_v3 = vld [vmem:[%s10718_s5 + $0x270] sm:$0xff] }
 0x1d4   : > { %7038 = vmatpush1.bf16.msra.mxu1 %v7037_v13  ;;  %v2244_v13 = vld [vmem:[%s10719_s6 + $0x288] sm:$0xff] }
 0x1d5   : > { %7040 = vmatprep.subr.bf16.mxu1 %v7039_v14  ;;  %v2246_v14 = vld [vmem:[%s10719_s6 + $0x298] sm:$0xff] }
 0x1d6   : > { %v7055_v27 = vpack.c.bf16 %v2246_v14, %v2244_v13  ;;  %v1988_v13 = vld [vmem:[%s10718_s5 + $0x310] sm:$0xff] }
 0x23f   : > { %v1632_v15 = vpop.f32.mrb[8].mxu0 }
 0x240   : > { %v1634_v16 = vpop.f32.mrb[9].mxu0 }
 0x243   : > { %v1638_v17 = vpop.f32.mrb[10].mxu0 }
 0x244   : > { %v1640_v24 = vpop.f32.mrb[11].mxu0 }
 0x247   : > { %v1794_v29 = vpop.f32.mrb[12].mxu0 }
 0x248   : > { %v1882_v20 = vmax.f32 %v1632_v15, %v1794_v29  ;;  %v1796_v32 = vpop.f32.mrb[13].mxu0  ;;  %v6941_v15 = vpack.c.bf16 %v1968_v3, %v1966_v63  ;;  %v1977_v29 = vld [vmem:[%s10718_s5 + $0x2b8] sm:$0xff]  ;;  %v1987_v63 = vld [vmem:[%s10718_s5 + $0x308] sm:$0xff] }
 0x249   : > { %v1883_v33 = vmax.f32 %v1634_v16, %v1796_v32  ;;  %v7053_v16 = vpack.c.bf16 %v2241_v6, %v2239_v10  ;;  %v1974_v32 = vld [vmem:[%s10718_s5 + $0x2a0] sm:$0xff]  ;;  %v1989_v3 = vld [vmem:[%s10718_s5 + $0x318] sm:$0xff]  ;;  %v6957_v10 = vpack.c.bf16 %v1984_v55, %v1982_v54  ;;  %v2272_v54 = vld [vmem:[%s10719_s6 + $0x368] sm:$0xff] }
 0x24a   : > { %v6959_v14 = vpack.c.bf16 %v1989_v3, %v1987_v63  ;;  %v2274_v55 = vld [vmem:[%s10719_s6 + $0x378] sm:$0xff]  ;;  %v2271_v63 = vld [vmem:[%s10719_s6 + $0x360] sm:$0xff]  ;;  %v2273_v3 = vld [vmem:[%s10719_s6 + $0x370] sm:$0xff] }
 0x24b   : > { %v1800_v43 = vpop.f32.mrb[14].mxu0  ;;  %2073 = vmatprep.mubr.f32.mxu0 %v1883_v33  ;;  %2339 = vmatprep.mubr.f32.mxu1 %v1883_v33  ;;  %v1976_v33 = vld [vmem:[%s10718_s5 + $0x2b0] sm:$0xff] }
 0x24c   : > { %v1886_v46 = vmax.f32 %v1638_v17, %v1800_v43  ;;  %v1802_v47 = vpop.f32.mrb[15].mxu0  ;;  %2074 = vmatmul.mubr.f32.vlgmr.msra.gmra.mrb[16].mxu0 %v1882_v20  ;;  %2340 = vmatmul.mubr.f32.vlgmr.msra.gmra.mrb[24].mxu1 %v1882_v20  ;;  %v1970_v17 = vld [vmem:[%s10718_s5 + $0x280] sm:$0xff]  ;;  %v7057_v20 = vpack.c.bf16 %v2245_v22, %v2243_v23  ;;  %v6949_v42 = vpack.c.bf16 %v1976_v33, %v1974_v32  ;;  %v2264_v23 = vld [vmem:[%s10719_s6 + $0x328] sm:$0xff]  ;;  %v2266_v22 = vld [vmem:[%s10719_s6 + $0x338] sm:$0xff] }
 0x24d   : > { %v1887_v48 = vmax.f32 %v1640_v24, %v1802_v47  ;;  %6930 = vmatpush1.bf16.msra.mxu0 %v6929_v34  ;;  %7042 = vmatpush1.bf16.msra.mxu1 %v7041_v35  ;;  %v1972_v24 = vld [vmem:[%s10718_s5 + $0x290] sm:$0xff]  ;;  %v6947_v34 = vpack.c.bf16 %v1977_v29, %v1975_v28  ;;  %v7059_v35 = vpack.c.bf16 %v2250_v30, %v2248_v25  ;;  %v2251_v47 = vld [vmem:[%s10719_s6 + $0x2c0] sm:$0xff] }
 0x24e   : > { %6932 = vmatprep.subr.bf16.mxu0 %v6931_v38  ;;  %7044 = vmatprep.subr.bf16.mxu1 %v7043_v39  ;;  %v6945_v31 = vpack.c.bf16 %v1972_v24, %v1970_v17  ;;  %v1979_v38 = vld [vmem:[%s10718_s5 + $0x2c8] sm:$0xff]  ;;  %v1981_v39 = vld [vmem:[%s10718_s5 + $0x2d8] sm:$0xff]  ;;  %v7061_v43 = vpack.c.bf16 %v2249_v37, %v2247_v36  ;;  %v2259_v17 = vld [vmem:[%s10719_s6 + $0x300] sm:$0xff]  ;;  %v6961_v28 = vpack.c.bf16 %v1988_v13, %v1986_v11 }
 0x24f   : > { %2079 = vmatprep.mubr.f32.mxu0 %v1887_v48  ;;  %2345 = vmatprep.mubr.f32.mxu1 %v1887_v48  ;;  %v6951_v45 = vpack.c.bf16 %v1981_v39, %v1979_v38  ;;  %v2253_v48 = vld [vmem:[%s10719_s6 + $0x2d0] sm:$0xff]  ;;  %v1990_v30 = vld [vmem:[%s10718_s5 + $0x320] sm:$0xff]  ;;  %v1995_v37 = vld [vmem:[%s10718_s5 + $0x348] sm:$0xff] }
 0x250   : > { %2080 = vmatmul.mubr.f32.gmra.mrb[18].mxu0 %v1886_v46  ;;  %2346 = vmatmul.mubr.f32.gmra.mrb[26].mxu1 %v1886_v46  ;;  %v7063_v46 = vpack.c.bf16 %v2254_v41, %v2252_v40  ;;  %v2261_v24 = vld [vmem:[%s10719_s6 + $0x310] sm:$0xff]  ;;  %v1997_v39 = vld [vmem:[%s10718_s5 + $0x358] sm:$0xff]  ;;  %v2268_v40 = vld [vmem:[%s10719_s6 + $0x348] sm:$0xff] }
 0x251   : > { %6934 = vmatpush1.bf16.msra.mxu0 %v6933_v49  ;;  %7046 = vmatpush1.bf16.msra.mxu1 %v7045_v50  ;;  %v1983_v49 = vld [vmem:[%s10718_s5 + $0x2e8] sm:$0xff]  ;;  %v1985_v50 = vld [vmem:[%s10718_s5 + $0x2f8] sm:$0xff]  ;;  %v7073_v29 = vpack.c.bf16 %v2261_v24, %v2259_v17  ;;  %v2265_v36 = vld [vmem:[%s10719_s6 + $0x330] sm:$0xff] }
 0x252   : > { %6936 = vmatprep.subr.bf16.mxu0 %v6935_v53  ;;  %7048 = vmatprep.subr.bf16.mxu1 %v7047_v2  ;;  %v6953_v53 = vpack.c.bf16 %v1980_v44, %v1978_v61  ;;  %v7065_v2 = vpack.c.bf16 %v2253_v48, %v2251_v47  ;;  %v6955_v58 = vpack.c.bf16 %v1985_v50, %v1983_v49  ;;  %v2270_v41 = vld [vmem:[%s10719_s6 + $0x358] sm:$0xff]  ;;  %v1994_v44 = vld [vmem:[%s10718_s5 + $0x340] sm:$0xff] }
 0x253   : > { %v6967_v48 = vpack.c.bf16 %v1997_v39, %v1995_v37  ;;  %v7079_v49 = vpack.c.bf16 %v2270_v41, %v2268_v40  ;;  %v2267_v50 = vld [vmem:[%s10719_s6 + $0x340] sm:$0xff]  ;;  %v7551_v11 = vld [vmem:[%s10720_s7 + $0x208] ss:$16 sps:$4 sm:$0xff]   ;;  %v7565_v24 = vld [vmem:[%s10720_s7 + $0x24c] ss:$16 sps:$4 sm:$0xff]  }
 0x254   : > { %v7556_v13 = vld [vmem:[%s10720_s7 + $0x224] ss:$16 sps:$4 sm:$0xff]   ;;  %v7589_v37 = vld [vmem:[%s10720_s7 + $0x2cc] ss:$16 sps:$4 sm:$0xff]   ;;  %v7587_v39 = vld [vmem:[%s10720_s7 + $0x2c8] ss:$16 sps:$4 sm:$0xff]  }
 0x255   : > { %6938 = vmatpush1.bf16.msra.mxu0 %v6937_v60  ;;  %7050 = vmatpush1.bf16.msra.mxu1 %v7049_v62  ;;  %v2257_v60 = vld [vmem:[%s10719_s6 + $0x2f0] sm:$0xff]  ;;  %v7595_v41 = vld [vmem:[%s10720_s7 + $0x2ec] ss:$16 sps:$4 sm:$0xff]  }
 0x256   : > { %6940 = vmatprep.subr.bf16.mxu0 %v6939_v4  ;;  %7052 = vmatprep.subr.bf16.mxu1 %v7051_v5  ;;  %v2260_v4 = vld [vmem:[%s10719_s6 + $0x308] sm:$0xff]  ;;  %v2262_v5 = vld [vmem:[%s10719_s6 + $0x318] sm:$0xff]  ;;  %v7069_v6 = vpack.c.bf16 %v2257_v60, %v2255_v59  ;;  %v7083_v60 = vpack.c.bf16 %v2274_v55, %v2272_v54  ;;  %v7562_v17 = vld [vmem:[%s10720_s7 + $0x244] ss:$16 sps:$4 sm:$0xff]  }
 0x257   : > { %v7592_v40 = vld [vmem:[%s10720_s7 + $0x2e4] ss:$16 sps:$4 sm:$0xff]   ;;  %v7619_v55 = vld [vmem:[%s10720_s7 + $0x36c] ss:$16 sps:$4 sm:$0xff]  }
 0x258   : > { %v7616_v54 = vld [vmem:[%s10720_s7 + $0x364] ss:$16 sps:$4 sm:$0xff]  }
 0x259   : > { %6942 = vmatpush1.bf16.msra.mxu0 %v6941_v15  ;;  %7054 = vmatpush1.bf16.msra.mxu1 %v7053_v16  ;;  %v7071_v15 = vpack.c.bf16 %v2262_v5, %v2260_v4  ;;  %v7085_v5 = vpack.c.bf16 %v2273_v3, %v2271_v63  ;;  %v7628_v63 = vld [vmem:[%s10720_s7 + $0x3a4] ss:$16 sps:$4 sm:$0xff]   ;;  %v7631_v3 = vld [vmem:[%s10720_s7 + $0x3ac] ss:$16 sps:$4 sm:$0xff]  }
 0x25a   : > { %6944 = vmatprep.subr.bf16.mxu0 %v6943_v26  ;;  %7056 = vmatprep.subr.bf16.mxu1 %v7055_v27  ;;  %v1991_v26 = vld [vmem:[%s10718_s5 + $0x328] sm:$0xff]  ;;  %v1993_v27 = vld [vmem:[%s10718_s5 + $0x338] sm:$0xff] }
 0x25b   : > { %v6963_v33 = vpack.c.bf16 %v1993_v27, %v1991_v26  ;;  %v7560_v26 = vld [vmem:[%s10720_s7 + $0x240] ss:$16 sps:$4 sm:$0xff]   ;;  %v7563_v27 = vld [vmem:[%s10720_s7 + $0x248] ss:$16 sps:$4 sm:$0xff]  }
 0x25d   : > { %6946 = vmatpush1.bf16.msra.mxu0 %v6945_v31  ;;  %7058 = vmatpush1.bf16.msra.mxu1 %v7057_v20  ;;  %v1992_v31 = vld [vmem:[%s10718_s5 + $0x330] sm:$0xff] }
 0x25e   : > { %6948 = vmatprep.subr.bf16.mxu0 %v6947_v34  ;;  %7060 = vmatprep.subr.bf16.mxu1 %v7059_v35  ;;  %v7075_v34 = vpack.c.bf16 %v2266_v22, %v2264_v23  ;;  %v2263_v35 = vld [vmem:[%s10719_s6 + $0x320] sm:$0xff]  ;;  %v7571_v22 = vld [vmem:[%s10720_s7 + $0x26c] ss:$16 sps:$4 sm:$0xff]  }
 0x25f   : > { %v7568_v23 = vld [vmem:[%s10720_s7 + $0x264] ss:$16 sps:$4 sm:$0xff]  }
 0x261   : > { %6950 = vmatpush1.bf16.msra.mxu0 %v6949_v42  ;;  %7062 = vmatpush1.bf16.msra.mxu1 %v7061_v43  ;;  %v6965_v42 = vpack.c.bf16 %v1992_v31, %v1990_v30  ;;  %v7077_v43 = vpack.c.bf16 %v2265_v36, %v2263_v35  ;;  %v7577_v30 = vld [vmem:[%s10720_s7 + $0x28c] ss:$16 sps:$4 sm:$0xff]   ;;  %v7572_v31 = vld [vmem:[%s10720_s7 + $0x280] ss:$16 sps:$4 sm:$0xff]   ;;  %v7581_v35 = vld [vmem:[%s10720_s7 + $0x2a8] ss:$16 sps:$4 sm:$0xff]  }
 0x262   : > { %v1709_v56 = vpop.f32.mrb[16].mxu1  ;;  %6952 = vmatprep.subr.bf16.mxu0 %v6951_v45  ;;  %7064 = vmatprep.subr.bf16.mxu1 %v7063_v46  ;;  %v1996_v45 = vld [vmem:[%s10718_s5 + $0x350] sm:$0xff] }
 0x263   : > { %v1711_v62 = vpop.f32.mrb[17].mxu1  ;;  %v7586_v36 = vld [vmem:[%s10720_s7 + $0x2c4] ss:$16 sps:$4 sm:$0xff]  }
 0x265   : > { %6954 = vmatpush1.bf16.msra.mxu0 %v6953_v53  ;;  %7066 = vmatpush1.bf16.msra.mxu1 %v7065_v2  ;;  %v2001_v2 = vld [vmem:[%s10718_s5 + $0x378] sm:$0xff] }
 0x266   : > { %v1715_v7 = vpop.f32.mrb[18].mxu1  ;;  %6956 = vmatprep.subr.bf16.mxu0 %v6955_v58  ;;  %7068 = vmatprep.subr.bf16.mxu1 %v7067_v57  ;;  %v7081_v58 = vpack.c.bf16 %v2269_v51, %v2267_v50  ;;  %v1998_v57 = vld [vmem:[%s10718_s5 + $0x360] sm:$0xff]  ;;  %v6971_v59 = vpack.c.bf16 %v2001_v2, %v1999_v52  ;;  %v7605_v50 = vld [vmem:[%s10720_s7 + $0x328] ss:$16 sps:$4 sm:$0xff]   ;;  %v7613_v52 = vld [vmem:[%s10720_s7 + $0x34c] ss:$16 sps:$4 sm:$0xff]  }
 0x267   : > { %v1717_v16 = vpop.f32.mrb[19].mxu1  ;;  %v7610_v51 = vld [vmem:[%s10720_s7 + $0x344] ss:$16 sps:$4 sm:$0xff]   ;;  %v7611_v2 = vld [vmem:[%s10720_s7 + $0x348] ss:$16 sps:$4 sm:$0xff]  }
 0x269   : > { %6958 = vmatpush1.bf16.msra.mxu0 %v6957_v10  ;;  %7070 = vmatpush1.bf16.msra.mxu1 %v7069_v6  ;;  %v7550_v10 = vld [vmem:[%s10720_s7 + $0x204] ss:$16 sps:$4 sm:$0xff]   ;;  %v7553_v6 = vld [vmem:[%s10720_s7 + $0x20c] ss:$16 sps:$4 sm:$0xff]  }
 0x26a   : > { %v1871_v25 = vpop.f32.mrb[20].mxu1  ;;  %6960 = vmatprep.subr.bf16.mxu0 %v6959_v14  ;;  %7072 = vmatprep.subr.bf16.mxu1 %v7071_v15  ;;  %v7559_v14 = vld [vmem:[%s10720_s7 + $0x22c] ss:$16 sps:$4 sm:$0xff]   ;;  %v7554_v15 = vld [vmem:[%s10720_s7 + $0x220] ss:$16 sps:$4 sm:$0xff]  }
 0x26b   : > { %v1884_v20 = vmax.f32 %v1709_v56, %v1871_v25  ;;  %v1873_v32 = vpop.f32.mrb[21].mxu1  ;;  %v6969_v56 = vpack.c.bf16 %v1996_v45, %v1994_v44  ;;  %v7574_v25 = vld [vmem:[%s10720_s7 + $0x284] ss:$16 sps:$4 sm:$0xff]   ;;  %v7601_v44 = vld [vmem:[%s10720_s7 + $0x30c] ss:$16 sps:$4 sm:$0xff]  }
 0x26c   : > { %v1885_v38 = vmax.f32 %v1711_v62, %v1873_v32  ;;  %v2000_v62 = vld [vmem:[%s10718_s5 + $0x370] sm:$0xff] }
 0x26d   : > { %6962 = vmatpush1.bf16.msra.mxu0 %v6961_v28  ;;  %7074 = vmatpush1.bf16.msra.mxu1 %v7073_v29  ;;  %v6973_v4 = vpack.c.bf16 %v2000_v62, %v1998_v57  ;;  %v7566_v28 = vld [vmem:[%s10720_s7 + $0x260] ss:$16 sps:$4 sm:$0xff]   ;;  %v7569_v29 = vld [vmem:[%s10720_s7 + $0x268] ss:$16 sps:$4 sm:$0xff]   ;;  %v7580_v32 = vld [vmem:[%s10720_s7 + $0x2a4] ss:$16 sps:$4 sm:$0xff]  }
 0x26e   : > { %v1877_v61 = vpop.f32.mrb[22].mxu1  ;;  %6964 = vmatprep.subr.bf16.mxu0 %v6963_v33  ;;  %7076 = vmatprep.subr.bf16.mxu1 %v7075_v34  ;;  %v7583_v33 = vld [vmem:[%s10720_s7 + $0x2ac] ss:$16 sps:$4 sm:$0xff]   ;;  %v7578_v34 = vld [vmem:[%s10720_s7 + $0x2a0] ss:$16 sps:$4 sm:$0xff]  }
 0x26f   : > { %v1888_v46 = vmax.f32 %v1715_v7, %v1877_v61  ;;  %v1879_v47 = vpop.f32.mrb[23].mxu1  ;;  %6185 = vmatprep.mubr.msk.f32.mxu0 %vm2002_vm10, %v1885_v38  ;;  %6187 = vmatprep.mubr.msk.f32.mxu1 %vm2002_vm10, %v1885_v38  ;;  %v7548_v7 = vld [vmem:[%s10720_s7 + $0x200] ss:$16 sps:$4 sm:$0xff]   ;;  %v7598_v61 = vld [vmem:[%s10720_s7 + $0x304] ss:$16 sps:$4 sm:$0xff]  }
 0x270   : > { %v1889_v53 = vmax.f32 %v1717_v16, %v1879_v47  ;;  %v7557_v16 = vld [vmem:[%s10720_s7 + $0x228] ss:$16 sps:$4 sm:$0xff]   ;;  %v7584_v38 = vld [vmem:[%s10720_s7 + $0x2c0] ss:$16 sps:$4 sm:$0xff]   ;;  %v7604_v47 = vld [vmem:[%s10720_s7 + $0x324] ss:$16 sps:$4 sm:$0xff]  }
 0x271   : > { %6966 = vmatpush1.bf16.msra.mxu0 %v6965_v42  ;;  %7078 = vmatpush1.bf16.msra.mxu1 %v7077_v43  ;;  %v7590_v42 = vld [vmem:[%s10720_s7 + $0x2e0] ss:$16 sps:$4 sm:$0xff]   ;;  %v7593_v43 = vld [vmem:[%s10720_s7 + $0x2e8] ss:$16 sps:$4 sm:$0xff]   ;;  %v7625_v62 = vld [vmem:[%s10720_s7 + $0x38c] ss:$16 sps:$4 sm:$0xff]  }
 0x272   : > { %6968 = vmatprep.subr.bf16.mxu0 %v6967_v48  ;;  %7080 = vmatprep.subr.bf16.mxu1 %v7079_v49  ;;  %v7596_v45 = vld [vmem:[%s10720_s7 + $0x300] ss:$16 sps:$4 sm:$0xff]   ;;  %v7607_v48 = vld [vmem:[%s10720_s7 + $0x32c] ss:$16 sps:$4 sm:$0xff]  }
 0x273   : > { %v7602_v49 = vld [vmem:[%s10720_s7 + $0x320] ss:$16 sps:$4 sm:$0xff]  }
 0x274   : > { %v7620_v57 = vld [vmem:[%s10720_s7 + $0x380] ss:$16 sps:$4 sm:$0xff]  }
 0x275   : > { %6970 = vmatpush1.bf16.msra.mxu0 %v6969_v56  ;;  %7082 = vmatpush1.bf16.msra.mxu1 %v7081_v58  ;;  %v7614_v56 = vld [vmem:[%s10720_s7 + $0x360] ss:$16 sps:$4 sm:$0xff]   ;;  %v7617_v58 = vld [vmem:[%s10720_s7 + $0x368] ss:$16 sps:$4 sm:$0xff]  }
 0x276   : > { %6972 = vmatprep.subr.bf16.mxu0 %v6971_v59  ;;  %7084 = vmatprep.subr.bf16.mxu1 %v7083_v60  ;;  %v7622_v59 = vld [vmem:[%s10720_s7 + $0x384] ss:$16 sps:$4 sm:$0xff]   ;;  %v7623_v60 = vld [vmem:[%s10720_s7 + $0x388] ss:$16 sps:$4 sm:$0xff]  }
 0x279   : > { %6974 = vmatpush1.bf16.msra.mxu0 %v6973_v4  ;;  %7086 = vmatpush1.bf16.msra.mxu1 %v7085_v5  ;;  %v7626_v4 = vld [vmem:[%s10720_s7 + $0x3a0] ss:$16 sps:$4 sm:$0xff]   ;;  %v7629_v5 = vld [vmem:[%s10720_s7 + $0x3a8] ss:$16 sps:$4 sm:$0xff]  }
 0x27a   : > { %2900 = vmatprep.subr.bf16.mxu0 %v7550_v10  ;;  %2943 = vmatprep.subr.bf16.mxu1 %v7553_v6  ;;  %v7632_v10 = vld [vmem:[%s10720_s7 + $0x3c0] ss:$16 sps:$4 sm:$0xff]   ;;  %v7634_v6 = vld [vmem:[%s10720_s7 + $0x3c4] ss:$16 sps:$4 sm:$0xff]  }
 0x27c   : > { %2151 = vmatmul.mubr.f32.vlgmr.msra.gmra.mrb[16].mxu0 %v1884_v20  ;;  %2417 = vmatmul.mubr.f32.vlgmr.msra.gmra.mrb[24].mxu1 %v1884_v20  ;;  %v7575_v20 = vld [vmem:[%s10720_s7 + $0x288] ss:$16 sps:$4 sm:$0xff]  }
 0x27d   : > { %6186 = vmatprep.mubr.msk.f32.mxu0 %vm2002_vm10, %v1889_v53  ;;  %6188 = vmatprep.mubr.msk.f32.mxu1 %vm2002_vm10, %v1889_v53  ;;  %v7608_v53 = vld [vmem:[%s10720_s7 + $0x340] ss:$16 sps:$4 sm:$0xff]  }
 0x27e   : > { %2901 = vmatpush1.bf16.msra.mxu0 %v7548_v7  ;;  %2944 = vmatpush1.bf16.msra.mxu1 %v7551_v11  ;;  %v7635_v7 = vld [vmem:[%s10720_s7 + $0x3c8] ss:$16 sps:$4 sm:$0xff]   ;;  %v7637_v11 = vld [vmem:[%s10720_s7 + $0x3cc] ss:$16 sps:$4 sm:$0xff]  }
 0x27f   : > { %2902 = vmatprep.subr.bf16.mxu0 %v7556_v13  ;;  %2945 = vmatprep.subr.bf16.mxu1 %v7559_v14  ;;  %v7640_v13 = vld [vmem:[%s10720_s7 + $0x3e4] ss:$16 sps:$4 sm:$0xff]   ;;  %v7643_v14 = vld [vmem:[%s10720_s7 + $0x3ec] ss:$16 sps:$4 sm:$0xff]  }
 0x280   : > { %2157 = vmatmul.mubr.f32.gmra.mrb[18].mxu0 %v1888_v46  ;;  %2423 = vmatmul.mubr.f32.gmra.mrb[26].mxu1 %v1888_v46  ;;  %v7599_v46 = vld [vmem:[%s10720_s7 + $0x308] ss:$16 sps:$4 sm:$0xff]  }
 0x282   : > { %2903 = vmatpush1.bf16.msra.mxu0 %v7554_v15  ;;  %2946 = vmatpush1.bf16.msra.mxu1 %v7557_v16  ;;  %v7638_v15 = vld [vmem:[%s10720_s7 + $0x3e0] ss:$16 sps:$4 sm:$0xff]   ;;  %v7641_v16 = vld [vmem:[%s10720_s7 + $0x3e8] ss:$16 sps:$4 sm:$0xff]  }
 0x283   : > { %2904 = vmatprep.subr.bf16.mxu0 %v7562_v17  ;;  %2947 = vmatprep.subr.bf16.mxu1 %v7565_v24  ;;  %v7646_v17 = vld [vmem:[%s10720_s7 + $0x4] ss:$16 sps:$4 sm:$0xff]   ;;  %v7649_v24 = vld [vmem:[%s10720_s7 + $0xc] ss:$16 sps:$4 sm:$0xff]  }
 0x286   : > { %2905 = vmatpush1.bf16.msra.mxu0 %v7560_v26  ;;  %2948 = vmatpush1.bf16.msra.mxu1 %v7563_v27 }
 0x287   : > { %2906 = vmatprep.subr.bf16.mxu0 %v7568_v23  ;;  %2949 = vmatprep.subr.bf16.mxu1 %v7571_v22 }
 0x28a   : > { %2907 = vmatpush1.bf16.msra.mxu0 %v7566_v28  ;;  %2950 = vmatpush1.bf16.msra.mxu1 %v7569_v29 }
 0x28b   : > { %2908 = vmatprep.subr.bf16.mxu0 %v7574_v25  ;;  %2951 = vmatprep.subr.bf16.mxu1 %v7577_v30 }
 0x28e   : > { %2909 = vmatpush1.bf16.msra.mxu0 %v7572_v31  ;;  %2952 = vmatpush1.bf16.msra.mxu1 %v7575_v20 }
 0x28f   : > { %2910 = vmatprep.subr.bf16.mxu0 %v7580_v32  ;;  %2953 = vmatprep.subr.bf16.mxu1 %v7583_v33 }
 0x292   : > { %2911 = vmatpush1.bf16.msra.mxu0 %v7578_v34  ;;  %2954 = vmatpush1.bf16.msra.mxu1 %v7581_v35 }
 0x293   : > { %2912 = vmatprep.subr.bf16.mxu0 %v7586_v36  ;;  %2955 = vmatprep.subr.bf16.mxu1 %v7589_v37 }
 0x296   : > { %2913 = vmatpush1.bf16.msra.mxu0 %v7584_v38  ;;  %2956 = vmatpush1.bf16.msra.mxu1 %v7587_v39 }
 0x297   : > { %2914 = vmatprep.subr.bf16.mxu0 %v7592_v40  ;;  %2957 = vmatprep.subr.bf16.mxu1 %v7595_v41 }
 0x29a   : > { %2915 = vmatpush1.bf16.msra.mxu0 %v7590_v42  ;;  %2958 = vmatpush1.bf16.msra.mxu1 %v7593_v43  ;;  %v7644_v43 = vld [vmem:[%s10720_s7] ss:$16 sps:$4 sm:$0xff]  }
 0x29b   : > { %2916 = vmatprep.subr.bf16.mxu0 %v7598_v61  ;;  %2959 = vmatprep.subr.bf16.mxu1 %v7601_v44  ;;  %v7647_v61 = vld [vmem:[%s10720_s7 + $0x8] ss:$16 sps:$4 sm:$0xff]  }
 0x29e   : > { %2917 = vmatpush1.bf16.msra.mxu0 %v7596_v45  ;;  %2960 = vmatpush1.bf16.msra.mxu1 %v7599_v46  ;;  %v7652_v45 = vld [vmem:[%s10720_s7 + $0x24] ss:$16 sps:$4 sm:$0xff]   ;;  %v7655_v46 = vld [vmem:[%s10720_s7 + $0x2c] ss:$16 sps:$4 sm:$0xff]  }
 0x29f   : > { %2918 = vmatprep.subr.bf16.mxu0 %v7604_v47  ;;  %2961 = vmatprep.subr.bf16.mxu1 %v7607_v48  ;;  %v7650_v47 = vld [vmem:[%s10720_s7 + $0x20] ss:$16 sps:$4 sm:$0xff]   ;;  %v7653_v48 = vld [vmem:[%s10720_s7 + $0x28] ss:$16 sps:$4 sm:$0xff]  }
 0x2a2   : > { %2919 = vmatpush1.bf16.msra.mxu0 %v7602_v49  ;;  %2962 = vmatpush1.bf16.msra.mxu1 %v7605_v50  ;;  %v7658_v49 = vld [vmem:[%s10720_s7 + $0x44] ss:$16 sps:$4 sm:$0xff]   ;;  %v7661_v50 = vld [vmem:[%s10720_s7 + $0x4c] ss:$16 sps:$4 sm:$0xff]  }
 0x2a3   : > { %2920 = vmatprep.subr.bf16.mxu0 %v7610_v51  ;;  %2963 = vmatprep.subr.bf16.mxu1 %v7613_v52  ;;  %v7656_v51 = vld [vmem:[%s10720_s7 + $0x40] ss:$16 sps:$4 sm:$0xff]   ;;  %v7659_v52 = vld [vmem:[%s10720_s7 + $0x48] ss:$16 sps:$4 sm:$0xff]  }
 0x2a6   : > { %2921 = vmatpush1.bf16.msra.mxu0 %v7608_v53  ;;  %2964 = vmatpush1.bf16.msra.mxu1 %v7611_v2  ;;  %v7664_v53 = vld [vmem:[%s10720_s7 + $0x64] ss:$16 sps:$4 sm:$0xff]   ;;  %v7667_v2 = vld [vmem:[%s10720_s7 + $0x6c] ss:$16 sps:$4 sm:$0xff]  }
 0x2a7   : > { %2922 = vmatprep.subr.bf16.mxu0 %v7616_v54  ;;  %2965 = vmatprep.subr.bf16.mxu1 %v7619_v55  ;;  %v7662_v54 = vld [vmem:[%s10720_s7 + $0x60] ss:$16 sps:$4 sm:$0xff]   ;;  %v7665_v55 = vld [vmem:[%s10720_s7 + $0x68] ss:$16 sps:$4 sm:$0xff]  }
 0x2aa   : > { %2923 = vmatpush1.bf16.msra.mxu0 %v7614_v56  ;;  %2966 = vmatpush1.bf16.msra.mxu1 %v7617_v58  ;;  %v7670_v56 = vld [vmem:[%s10720_s7 + $0x84] ss:$16 sps:$4 sm:$0xff]   ;;  %v7673_v58 = vld [vmem:[%s10720_s7 + $0x8c] ss:$16 sps:$4 sm:$0xff]  }
 0x2ab   : > { %2924 = vmatprep.subr.bf16.mxu0 %v7622_v59  ;;  %2967 = vmatprep.subr.bf16.mxu1 %v7625_v62  ;;  %v7671_v59 = vld [vmem:[%s10720_s7 + $0x88] ss:$16 sps:$4 sm:$0xff]   ;;  %v7679_v62 = vld [vmem:[%s10720_s7 + $0xac] ss:$16 sps:$4 sm:$0xff]  }
 0x2ae   : > { %2925 = vmatpush1.bf16.msra.mxu0 %v7620_v57  ;;  %2968 = vmatpush1.bf16.msra.mxu1 %v7623_v60  ;;  %v7668_v57 = vld [vmem:[%s10720_s7 + $0x80] ss:$16 sps:$4 sm:$0xff]   ;;  %v7676_v60 = vld [vmem:[%s10720_s7 + $0xa4] ss:$16 sps:$4 sm:$0xff]  }
 0x2af   : > { %2926 = vmatprep.subr.bf16.mxu0 %v7628_v63  ;;  %2969 = vmatprep.subr.bf16.mxu1 %v7631_v3  ;;  %v7674_v63 = vld [vmem:[%s10720_s7 + $0xa0] ss:$16 sps:$4 sm:$0xff]   ;;  %v7677_v3 = vld [vmem:[%s10720_s7 + $0xa8] ss:$16 sps:$4 sm:$0xff]  }
 0x2b2   : > { %2927 = vmatpush1.bf16.msra.mxu0 %v7626_v4  ;;  %2970 = vmatpush1.bf16.msra.mxu1 %v7629_v5  ;;  %v7682_v4 = vld [vmem:[%s10720_s7 + $0xc4] ss:$16 sps:$4 sm:$0xff]   ;;  %v7685_v5 = vld [vmem:[%s10720_s7 + $0xcc] ss:$16 sps:$4 sm:$0xff]  }
 0x2b3   : > { %2928 = vmatprep.subr.bf16.mxu0 %v7634_v6  ;;  %2971 = vmatprep.subr.bf16.mxu1 %v7637_v11  ;;  %v7683_v6 = vld [vmem:[%s10720_s7 + $0xc8] ss:$16 sps:$4 sm:$0xff]   ;;  %v7691_v11 = vld [vmem:[%s10720_s7 + $0xec] ss:$16 sps:$4 sm:$0xff]  }
 0x2b6   : > { %2929 = vmatpush1.bf16.msra.mxu0 %v7632_v10  ;;  %2972 = vmatpush1.bf16.msra.mxu1 %v7635_v7  ;;  %v7680_v10 = vld [vmem:[%s10720_s7 + $0xc0] ss:$16 sps:$4 sm:$0xff]   ;;  %v7688_v7 = vld [vmem:[%s10720_s7 + $0xe4] ss:$16 sps:$4 sm:$0xff]  }
 0x2b7   : > { %2930 = vmatprep.subr.bf16.mxu0 %v7640_v13  ;;  %2973 = vmatprep.subr.bf16.mxu1 %v7643_v14  ;;  %v7686_v13 = vld [vmem:[%s10720_s7 + $0xe0] ss:$16 sps:$4 sm:$0xff]   ;;  %v7689_v14 = vld [vmem:[%s10720_s7 + $0xe8] ss:$16 sps:$4 sm:$0xff]  }
 0x2ba   : > { %2931 = vmatpush1.bf16.msra.mxu0 %v7638_v15  ;;  %2974 = vmatpush1.bf16.msra.mxu1 %v7641_v16  ;;  %v7694_v15 = vld [vmem:[%s10720_s7 + $0x104] ss:$16 sps:$4 sm:$0xff]   ;;  %v7697_v16 = vld [vmem:[%s10720_s7 + $0x10c] ss:$16 sps:$4 sm:$0xff]  }
 0x2bb   : > { %3306 = vmatprep.subr.bf16.mxu0 %v7646_v17  ;;  %3349 = vmatprep.subr.bf16.mxu1 %v7649_v24  ;;  %v7692_v17 = vld [vmem:[%s10720_s7 + $0x100] ss:$16 sps:$4 sm:$0xff]   ;;  %v7695_v24 = vld [vmem:[%s10720_s7 + $0x108] ss:$16 sps:$4 sm:$0xff]  }
 0x34f   : > { %v2152_v26 = vpop.f32.mrb[16].mxu0  ;;  %v2418_v27 = vpop.f32.mrb[24].mxu1 }
 0x350   : > { %v2429_v23 = vmax.f32 %v2152_v26, %v2418_v27  ;;  %v2154_v22 = vpop.f32.mrb[17].mxu0  ;;  %v2420_v28 = vpop.f32.mrb[25].mxu1  ;;  %v7700_v26 = vld [vmem:[%s10720_s7 + $0x124] ss:$16 sps:$4 sm:$0xff]   ;;  %v7703_v27 = vld [vmem:[%s10720_s7 + $0x12c] ss:$16 sps:$4 sm:$0xff]  }
 0x351   : > { %v2430_v29 = vmax.f32 %v2154_v22, %v2420_v28  ;;  %v7701_v22 = vld [vmem:[%s10720_s7 + $0x128] ss:$16 sps:$4 sm:$0xff]   ;;  %v7706_v28 = vld [vmem:[%s10720_s7 + $0x144] ss:$16 sps:$4 sm:$0xff]  }
 0x353   : > { %v2158_v25 = vpop.f32.mrb[18].mxu0  ;;  %v2424_v30 = vpop.f32.mrb[26].mxu1 }
 0x354   : > { %v2431_v31 = vmax.f32 %v2158_v25, %v2424_v30  ;;  %v2160_v20 = vpop.f32.mrb[19].mxu0  ;;  %v2426_v32 = vpop.f32.mrb[27].mxu1  ;;  %v7704_v25 = vld [vmem:[%s10720_s7 + $0x140] ss:$16 sps:$4 sm:$0xff]   ;;  %v7707_v30 = vld [vmem:[%s10720_s7 + $0x148] ss:$16 sps:$4 sm:$0xff]  }
 0x355   : > { %v2432_v33 = vmax.f32 %v2160_v20, %v2426_v32  ;;  %v7715_v20 = vld [vmem:[%s10720_s7 + $0x16c] ss:$16 sps:$4 sm:$0xff]   ;;  %v7710_v32 = vld [vmem:[%s10720_s7 + $0x160] ss:$16 sps:$4 sm:$0xff]  }
 0x356   : > { %v9412_v34 = vpack.c.bf16 %v2431_v31, %v2429_v23  ;;  %v7698_v23 = vld [vmem:[%s10720_s7 + $0x120] ss:$16 sps:$4 sm:$0xff]   ;;  %v7712_v31 = vld [vmem:[%s10720_s7 + $0x164] ss:$16 sps:$4 sm:$0xff]  }
 0x357   : > { %v9414_v35 = vpack.c.bf16 %v2432_v33, %v2430_v29  ;;  %v7709_v29 = vld [vmem:[%s10720_s7 + $0x14c] ss:$16 sps:$4 sm:$0xff]   ;;  %v7713_v33 = vld [vmem:[%s10720_s7 + $0x168] ss:$16 sps:$4 sm:$0xff]  }
 0x358   : > { %v2567_v36 = vshll.u32 %v9412_v34, 16  ;;  %v2565_v41 = vshrl.u32 %v9412_v34, 16 }
 0x359   : > { %v2574_v37 = vshll.u32 %v9414_v35, 16  ;;  %v2572_v39 = vshrl.u32 %v9414_v35, 16 }
 0x35a   : > { %v2569_v38 = vrot.slane %v2567_v36, 1  ;;  %v7718_v36 = vld [vmem:[%s10720_s7 + $0x184] ss:$16 sps:$4 sm:$0xff]  }
 0x35b   : > { %v2576_v40 = vrot.slane %v2574_v37, 1  ;;  %v7721_v37 = vld [vmem:[%s10720_s7 + $0x18c] ss:$16 sps:$4 sm:$0xff]  }
 0x35c   : > { %v2570_v44 = vor.u32 %v2569_v38, %v2565_v41  ;;  %v7716_v38 = vld [vmem:[%s10720_s7 + $0x180] ss:$16 sps:$4 sm:$0xff]   ;;  %v7727_v41 = vld [vmem:[%s10720_s7 + $0x1ac] ss:$16 sps:$4 sm:$0xff]  }
 0x35d   : > { %v2577_v42 = vor.u32 %v2576_v40, %v2572_v39  ;;  %v7719_v39 = vld [vmem:[%s10720_s7 + $0x188] ss:$16 sps:$4 sm:$0xff]   ;;  %v7724_v40 = vld [vmem:[%s10720_s7 + $0x1a4] ss:$16 sps:$4 sm:$0xff]  }
 0x35f   : > { %2932 = vmatprep.mubr.bf16.mxu0 %v2577_v42  ;;  %2975 = vmatprep.mubr.bf16.mxu1 %v2577_v42  ;;  %v7722_v42 = vld [vmem:[%s10720_s7 + $0x1a0] ss:$16 sps:$4 sm:$0xff]  }
 0x360   : > { %2933 = vmatmul.mubr.bf16.vlgmr.msra.gmra.mrb[20].mxu0 %v2570_v44  ;;  %2976 = vmatmul.mubr.bf16.vlgmr.msra.gmra.mrb[28].mxu1 %v2570_v44  ;;  %v7733_v44 = vld [vmem:[%s10720_s7 + $0x1cc] ss:$16 sps:$4 sm:$0xff]  }
 0x361   : > { %3307 = vmatpush1.bf16.msra.mxu0 %v7644_v43  ;;  %3350 = vmatpush1.bf16.msra.mxu1 %v7647_v61  ;;  %v7725_v43 = vld [vmem:[%s10720_s7 + $0x1a8] ss:$16 sps:$4 sm:$0xff]   ;;  %v7730_v61 = vld [vmem:[%s10720_s7 + $0x1c4] ss:$16 sps:$4 sm:$0xff]  }
 0x362   : > { %3338 = vmatprep.mubr.bf16.mxu0 %v9414_v35  ;;  %3381 = vmatprep.mubr.bf16.mxu1 %v9414_v35 }
 0x363   : > { %3308 = vmatprep.subr.bf16.mxu0 %v7652_v45  ;;  %3351 = vmatprep.subr.bf16.mxu1 %v7655_v46  ;;  %v7728_v45 = vld [vmem:[%s10720_s7 + $0x1c0] ss:$16 sps:$4 sm:$0xff]   ;;  %v7731_v46 = vld [vmem:[%s10720_s7 + $0x1c8] ss:$16 sps:$4 sm:$0xff]  }
 0x365   : > { %3309 = vmatpush1.bf16.msra.mxu0 %v7650_v47  ;;  %3352 = vmatpush1.bf16.msra.mxu1 %v7653_v48  ;;  %v7736_v47 = vld [vmem:[%s10720_s7 + $0x1e4] ss:$16 sps:$4 sm:$0xff]   ;;  %v7739_v48 = vld [vmem:[%s10720_s7 + $0x1ec] ss:$16 sps:$4 sm:$0xff]  }
 0x366   : > { %3310 = vmatprep.subr.bf16.mxu0 %v7658_v49  ;;  %3353 = vmatprep.subr.bf16.mxu1 %v7661_v50  ;;  %v7734_v49 = vld [vmem:[%s10720_s7 + $0x1e0] ss:$16 sps:$4 sm:$0xff]   ;;  %v7737_v50 = vld [vmem:[%s10720_s7 + $0x1e8] ss:$16 sps:$4 sm:$0xff]  }
 0x369   : > { %3311 = vmatpush1.bf16.msra.mxu0 %v7656_v51  ;;  %3354 = vmatpush1.bf16.msra.mxu1 %v7659_v52  ;;  %v7742_v51 = vld [vmem:[%s10720_s7 + $0x404] ss:$16 sps:$4 sm:$0xff]   ;;  %v7745_v52 = vld [vmem:[%s10720_s7 + $0x40c] ss:$16 sps:$4 sm:$0xff]  }
 0x36a   : > { %3312 = vmatprep.subr.bf16.mxu0 %v7664_v53  ;;  %3355 = vmatprep.subr.bf16.mxu1 %v7667_v2  ;;  %v7740_v53 = vld [vmem:[%s10720_s7 + $0x400] ss:$16 sps:$4 sm:$0xff]   ;;  %v7743_v2 = vld [vmem:[%s10720_s7 + $0x408] ss:$16 sps:$4 sm:$0xff]  }
 0x36d   : > { %3313 = vmatpush1.bf16.msra.mxu0 %v7662_v54  ;;  %3356 = vmatpush1.bf16.msra.mxu1 %v7665_v55  ;;  %v3460_v54 = vrot.slane %v9414_v35, 1  ;;  %v7748_v55 = vld [vmem:[%s10720_s7 + $0x424] ss:$16 sps:$4 sm:$0xff]   ;;  %v7749_v35 = vld [vmem:[%s10720_s7 + $0x428] ss:$16 sps:$4 sm:$0xff]  }
 0x36e   : > { %3314 = vmatprep.subr.bf16.mxu0 %v7670_v56  ;;  %3357 = vmatprep.subr.bf16.mxu1 %v7673_v58  ;;  %v7751_v56 = vld [vmem:[%s10720_s7 + $0x42c] ss:$16 sps:$4 sm:$0xff]   ;;  %v7746_v58 = vld [vmem:[%s10720_s7 + $0x420] ss:$16 sps:$4 sm:$0xff]  }
 0x371   : > { %3315 = vmatpush1.bf16.msra.mxu0 %v7668_v57  ;;  %3358 = vmatpush1.bf16.msra.mxu1 %v7671_v59  ;;  %v7754_v57 = vld [vmem:[%s10720_s7 + $0x444] ss:$16 sps:$4 sm:$0xff]   ;;  %v7757_v59 = vld [vmem:[%s10720_s7 + $0x44c] ss:$16 sps:$4 sm:$0xff]  }
 0x372   : > { %3316 = vmatprep.subr.bf16.mxu0 %v7676_v60  ;;  %3359 = vmatprep.subr.bf16.mxu1 %v7679_v62  ;;  %v7752_v60 = vld [vmem:[%s10720_s7 + $0x440] ss:$16 sps:$4 sm:$0xff]   ;;  %v7755_v62 = vld [vmem:[%s10720_s7 + $0x448] ss:$16 sps:$4 sm:$0xff]  }
 0x375   : > { %3317 = vmatpush1.bf16.msra.mxu0 %v7674_v63  ;;  %3360 = vmatpush1.bf16.msra.mxu1 %v7677_v3  ;;  %v7760_v63 = vld [vmem:[%s10720_s7 + $0x464] ss:$16 sps:$4 sm:$0xff]   ;;  %v7763_v3 = vld [vmem:[%s10720_s7 + $0x46c] ss:$16 sps:$4 sm:$0xff]  }
 0x376   : > { %3318 = vmatprep.subr.bf16.mxu0 %v7682_v4  ;;  %3361 = vmatprep.subr.bf16.mxu1 %v7685_v5  ;;  %v7758_v4 = vld [vmem:[%s10720_s7 + $0x460] ss:$16 sps:$4 sm:$0xff]   ;;  %v7761_v5 = vld [vmem:[%s10720_s7 + $0x468] ss:$16 sps:$4 sm:$0xff]  }
 0x379   : > { %3319 = vmatpush1.bf16.msra.mxu0 %v7680_v10  ;;  %3362 = vmatpush1.bf16.msra.mxu1 %v7683_v6  ;;  %v7766_v10 = vld [vmem:[%s10720_s7 + $0x484] ss:$16 sps:$4 sm:$0xff]   ;;  %v7769_v6 = vld [vmem:[%s10720_s7 + $0x48c] ss:$16 sps:$4 sm:$0xff]  }
 0x37a   : > { %3320 = vmatprep.subr.bf16.mxu0 %v7688_v7  ;;  %3363 = vmatprep.subr.bf16.mxu1 %v7691_v11  ;;  %v7764_v7 = vld [vmem:[%s10720_s7 + $0x480] ss:$16 sps:$4 sm:$0xff]   ;;  %v7767_v11 = vld [vmem:[%s10720_s7 + $0x488] ss:$16 sps:$4 sm:$0xff]  }
 0x37d   : > { %3321 = vmatpush1.bf16.msra.mxu0 %v7686_v13  ;;  %3364 = vmatpush1.bf16.msra.mxu1 %v7689_v14  ;;  %v7772_v13 = vld [vmem:[%s10720_s7 + $0x4a4] ss:$16 sps:$4 sm:$0xff]   ;;  %v7775_v14 = vld [vmem:[%s10720_s7 + $0x4ac] ss:$16 sps:$4 sm:$0xff]  }
 0x37e   : > { %3322 = vmatprep.subr.bf16.mxu0 %v7694_v15  ;;  %3365 = vmatprep.subr.bf16.mxu1 %v7697_v16  ;;  %v7770_v15 = vld [vmem:[%s10720_s7 + $0x4a0] ss:$16 sps:$4 sm:$0xff]   ;;  %v7773_v16 = vld [vmem:[%s10720_s7 + $0x4a8] ss:$16 sps:$4 sm:$0xff]  }
 0x381   : > { %3323 = vmatpush1.bf16.msra.mxu0 %v7692_v17  ;;  %3366 = vmatpush1.bf16.msra.mxu1 %v7695_v24  ;;  %v7778_v17 = vld [vmem:[%s10720_s7 + $0x4c4] ss:$16 sps:$4 sm:$0xff]   ;;  %v7781_v24 = vld [vmem:[%s10720_s7 + $0x4cc] ss:$16 sps:$4 sm:$0xff]  }
 0x382   : > { %3324 = vmatprep.subr.bf16.mxu0 %v7700_v26  ;;  %3367 = vmatprep.subr.bf16.mxu1 %v7703_v27  ;;  %v7776_v26 = vld [vmem:[%s10720_s7 + $0x4c0] ss:$16 sps:$4 sm:$0xff]   ;;  %v7779_v27 = vld [vmem:[%s10720_s7 + $0x4c8] ss:$16 sps:$4 sm:$0xff]  }
 0x385   : > { %3325 = vmatpush1.bf16.msra.mxu0 %v7698_v23  ;;  %3368 = vmatpush1.bf16.msra.mxu1 %v7701_v22  ;;  %v7784_v23 = vld [vmem:[%s10720_s7 + $0x4e4] ss:$16 sps:$4 sm:$0xff]   ;;  %v7787_v22 = vld [vmem:[%s10720_s7 + $0x4ec] ss:$16 sps:$4 sm:$0xff]  }
 0x386   : > { %3326 = vmatprep.subr.bf16.mxu0 %v7706_v28  ;;  %3369 = vmatprep.subr.bf16.mxu1 %v7709_v29  ;;  %v7782_v28 = vld [vmem:[%s10720_s7 + $0x4e0] ss:$16 sps:$4 sm:$0xff]   ;;  %v7785_v29 = vld [vmem:[%s10720_s7 + $0x4e8] ss:$16 sps:$4 sm:$0xff]  }
 0x389   : > { %3327 = vmatpush1.bf16.msra.mxu0 %v7704_v25  ;;  %3370 = vmatpush1.bf16.msra.mxu1 %v7707_v30  ;;  %v7790_v25 = vld [vmem:[%s10720_s7 + $0x504] ss:$16 sps:$4 sm:$0xff]   ;;  %v7793_v30 = vld [vmem:[%s10720_s7 + $0x50c] ss:$16 sps:$4 sm:$0xff]  }
 0x38a   : > { %3328 = vmatprep.subr.bf16.mxu0 %v7712_v31  ;;  %3371 = vmatprep.subr.bf16.mxu1 %v7715_v20  ;;  %v7788_v31 = vld [vmem:[%s10720_s7 + $0x500] ss:$16 sps:$4 sm:$0xff]   ;;  %v7791_v20 = vld [vmem:[%s10720_s7 + $0x508] ss:$16 sps:$4 sm:$0xff]  }
 0x38d   : > { %3329 = vmatpush1.bf16.msra.mxu0 %v7710_v32  ;;  %3372 = vmatpush1.bf16.msra.mxu1 %v7713_v33  ;;  %v7796_v32 = vld [vmem:[%s10720_s7 + $0x524] ss:$16 sps:$4 sm:$0xff]   ;;  %v7799_v33 = vld [vmem:[%s10720_s7 + $0x52c] ss:$16 sps:$4 sm:$0xff]  }
 0x38e   : > { %3330 = vmatprep.subr.bf16.mxu0 %v7718_v36  ;;  %3373 = vmatprep.subr.bf16.mxu1 %v7721_v37  ;;  %v7794_v36 = vld [vmem:[%s10720_s7 + $0x520] ss:$16 sps:$4 sm:$0xff]   ;;  %v7797_v37 = vld [vmem:[%s10720_s7 + $0x528] ss:$16 sps:$4 sm:$0xff]  }
 0x391   : > { %3331 = vmatpush1.bf16.msra.mxu0 %v7716_v38  ;;  %3374 = vmatpush1.bf16.msra.mxu1 %v7719_v39  ;;  %v7802_v38 = vld [vmem:[%s10720_s7 + $0x544] ss:$16 sps:$4 sm:$0xff]   ;;  %v7805_v39 = vld [vmem:[%s10720_s7 + $0x54c] ss:$16 sps:$4 sm:$0xff]  }
 0x392   : > { %3332 = vmatprep.subr.bf16.mxu0 %v7724_v40  ;;  %3375 = vmatprep.subr.bf16.mxu1 %v7727_v41  ;;  %v7800_v40 = vld [vmem:[%s10720_s7 + $0x540] ss:$16 sps:$4 sm:$0xff]   ;;  %v7803_v41 = vld [vmem:[%s10720_s7 + $0x548] ss:$16 sps:$4 sm:$0xff]  }
 0x395   : > { %3333 = vmatpush1.bf16.msra.mxu0 %v7722_v42  ;;  %3376 = vmatpush1.bf16.msra.mxu1 %v7725_v43  ;;  %v7808_v42 = vld [vmem:[%s10720_s7 + $0x564] ss:$16 sps:$4 sm:$0xff]   ;;  %v7811_v43 = vld [vmem:[%s10720_s7 + $0x56c] ss:$16 sps:$4 sm:$0xff]  }
 0x396   : > { %3334 = vmatprep.subr.bf16.mxu0 %v7730_v61  ;;  %3377 = vmatprep.subr.bf16.mxu1 %v7733_v44  ;;  %v7806_v61 = vld [vmem:[%s10720_s7 + $0x560] ss:$16 sps:$4 sm:$0xff]   ;;  %v7809_v44 = vld [vmem:[%s10720_s7 + $0x568] ss:$16 sps:$4 sm:$0xff]  }
 0x399   : > { %3335 = vmatpush1.bf16.msra.mxu0 %v7728_v45  ;;  %3378 = vmatpush1.bf16.msra.mxu1 %v7731_v46  ;;  %v7814_v45 = vld [vmem:[%s10720_s7 + $0x584] ss:$16 sps:$4 sm:$0xff]   ;;  %v7817_v46 = vld [vmem:[%s10720_s7 + $0x58c] ss:$16 sps:$4 sm:$0xff]  }
 0x39a   : > { %3336 = vmatprep.subr.bf16.mxu0 %v7736_v47  ;;  %3379 = vmatprep.subr.bf16.mxu1 %v7739_v48  ;;  %v7812_v47 = vld [vmem:[%s10720_s7 + $0x580] ss:$16 sps:$4 sm:$0xff]   ;;  %v7815_v48 = vld [vmem:[%s10720_s7 + $0x588] ss:$16 sps:$4 sm:$0xff]  }
 0x39d   : > { %3337 = vmatpush1.bf16.msra.mxu0 %v7734_v49  ;;  %3380 = vmatpush1.bf16.msra.mxu1 %v7737_v50  ;;  %v7820_v49 = vld [vmem:[%s10720_s7 + $0x5a4] ss:$16 sps:$4 sm:$0xff]   ;;  %v7823_v50 = vld [vmem:[%s10720_s7 + $0x5ac] ss:$16 sps:$4 sm:$0xff]  }
 0x39e   : > { %3783 = vmatprep.subr.bf16.mxu0 %v7742_v51  ;;  %3826 = vmatprep.subr.bf16.mxu1 %v7745_v52  ;;  %v7818_v51 = vld [vmem:[%s10720_s7 + $0x5a0] ss:$16 sps:$4 sm:$0xff]   ;;  %v7821_v52 = vld [vmem:[%s10720_s7 + $0x5a8] ss:$16 sps:$4 sm:$0xff]  }
 0x3a0   : > { %3339 = vmatmul.mubr.bf16.vlgmr.msra.gmra.mrb[20].mxu0 %v9412_v34  ;;  %3382 = vmatmul.mubr.bf16.vlgmr.msra.gmra.mrb[28].mxu1 %v9412_v34 }
 0x3a1   : > { %3784 = vmatpush1.bf16.msra.mxu0 %v7740_v53  ;;  %3815 = vmatprep.mubr.bf16.mxu0 %v3460_v54  ;;  %v7826_v53 = vld [vmem:[%s10720_s7 + $0x5c4] ss:$16 sps:$4 sm:$0xff]  }
 0x3a2   : > { %3827 = vmatpush1.bf16.msra.mxu1 %v7743_v2  ;;  %3858 = vmatprep.mubr.bf16.mxu1 %v3460_v54  ;;  %v7829_v2 = vld [vmem:[%s10720_s7 + $0x5cc] ss:$16 sps:$4 sm:$0xff]   ;;  %v7824_v54 = vld [vmem:[%s10720_s7 + $0x5c0] ss:$16 sps:$4 sm:$0xff]  }
 0x3a3   : > { %3785 = vmatprep.subr.bf16.mxu0 %v7748_v55  ;;  %3828 = vmatprep.subr.bf16.mxu1 %v7751_v56  ;;  %v7827_v55 = vld [vmem:[%s10720_s7 + $0x5c8] ss:$16 sps:$4 sm:$0xff]   ;;  %v7832_v56 = vld [vmem:[%s10720_s7 + $0x5e4] ss:$16 sps:$4 sm:$0xff]  }
 0x3a5   : > { %3786 = vmatpush1.bf16.msra.mxu0 %v7746_v58  ;;  %v7835_v58 = vld [vmem:[%s10720_s7 + $0x5ec] ss:$16 sps:$4 sm:$0xff]  }
 0x3a6   : > { %3829 = vmatpush1.bf16.msra.mxu1 %v7749_v35  ;;  %3787 = vmatprep.subr.bf16.mxu0 %v7754_v57  ;;  %v7830_v35 = vld [vmem:[%s10720_s7 + $0x5e0] ss:$16 sps:$4 sm:$0xff]   ;;  %v7833_v57 = vld [vmem:[%s10720_s7 + $0x5e8] ss:$16 sps:$4 sm:$0xff]  }
 0x3a7   : > { %3830 = vmatprep.subr.bf16.mxu1 %v7757_v59  ;;  %v3459_v59 = vrot.slane %v9412_v34, 1 }
 0x3a9   : > { %3788 = vmatpush1.bf16.msra.mxu0 %v7752_v60  ;;  %v3877_v60 = vld [vmem:[%s10721_s8] sm:$0xf] }
 0x3aa   : > { %3831 = vmatpush1.bf16.msra.mxu1 %v7755_v62  ;;  %3789 = vmatprep.subr.bf16.mxu0 %v7760_v63  ;;  %v3882_v62 = vrot.slane %v3877_v60, %v1494_v19  ;;  %v3890_v63 = vrot.slane %v3877_v60, %v1502_v9  ;;  %v3894_v34 = vrot.slane %v3877_v60, %v1506_v12  ;;  %v4228_v12 = vld [vmem:[%s10724_s11 + $0x18] sm:$0xff] }
 0x3ab   : > { %3832 = vmatprep.subr.bf16.mxu1 %v7763_v3  ;;  %v3886_v3 = vrot.slane %v3877_v60, %v1498_v21 }
 0x3ad   : > { %3790 = vmatpush1.bf16.msra.mxu0 %v7758_v4 }
 0x3ae   : > { %3833 = vmatpush1.bf16.msra.mxu1 %v7761_v5  ;;  %3791 = vmatprep.subr.bf16.mxu0 %v7766_v10 }
 0x3af   : > { %3834 = vmatprep.subr.bf16.mxu1 %v7769_v6 }
 0x3b1   : > { %3792 = vmatpush1.bf16.msra.mxu0 %v7764_v7 }
 0x3b2   : > { %3835 = vmatpush1.bf16.msra.mxu1 %v7767_v11  ;;  %3793 = vmatprep.subr.bf16.mxu0 %v7772_v13 }
 0x3b3   : > { %3836 = vmatprep.subr.bf16.mxu1 %v7775_v14 }
 0x3b5   : > { %3794 = vmatpush1.bf16.msra.mxu0 %v7770_v15 }
 0x3b6   : > { %3837 = vmatpush1.bf16.msra.mxu1 %v7773_v16  ;;  %3795 = vmatprep.subr.bf16.mxu0 %v7778_v17 }
 0x3b7   : > { %3838 = vmatprep.subr.bf16.mxu1 %v7781_v24 }
 0x3b9   : > { %3796 = vmatpush1.bf16.msra.mxu0 %v7776_v26 }
 0x3ba   : > { %3839 = vmatpush1.bf16.msra.mxu1 %v7779_v27  ;;  %3797 = vmatprep.subr.bf16.mxu0 %v7784_v23 }
 0x3bb   : > { %3840 = vmatprep.subr.bf16.mxu1 %v7787_v22 }
 0x3bd   : > { %3798 = vmatpush1.bf16.msra.mxu0 %v7782_v28 }
 0x3be   : > { %3841 = vmatpush1.bf16.msra.mxu1 %v7785_v29  ;;  %3799 = vmatprep.subr.bf16.mxu0 %v7790_v25 }
 0x3bf   : > { %3842 = vmatprep.subr.bf16.mxu1 %v7793_v30 }
 0x3c1   : > { %3800 = vmatpush1.bf16.msra.mxu0 %v7788_v31 }
 0x3c2   : > { %3843 = vmatpush1.bf16.msra.mxu1 %v7791_v20  ;;  %3801 = vmatprep.subr.bf16.mxu0 %v7796_v32 }
 0x3c3   : > { %3844 = vmatprep.subr.bf16.mxu1 %v7799_v33 }
 0x3c5   : > { %3802 = vmatpush1.bf16.msra.mxu0 %v7794_v36  ;;  %v7111_v36 = vpack.c.bf16 %v4228_v12, %v4226_v18 }
 0x3c6   : > { %3845 = vmatpush1.bf16.msra.mxu1 %v7797_v37  ;;  %3803 = vmatprep.subr.bf16.mxu0 %v7802_v38  ;;  %v4225_v38 = vld [vmem:[%s10724_s11] sm:$0xff] }
 0x3c7   : > { %3846 = vmatprep.subr.bf16.mxu1 %v7805_v39  ;;  %v4227_v39 = vld [vmem:[%s10724_s11 + $0x10] sm:$0xff] }
 0x3c9   : > { %3804 = vmatpush1.bf16.msra.mxu0 %v7800_v40  ;;  %v4230_v40 = vld [vmem:[%s10724_s11 + $0x28] sm:$0xff] }
 0x3ca   : > { %3847 = vmatpush1.bf16.msra.mxu1 %v7803_v41  ;;  %3805 = vmatprep.subr.bf16.mxu0 %v7808_v42  ;;  %v4232_v41 = vld [vmem:[%s10724_s11 + $0x38] sm:$0xff]  ;;  %v3915_v42 = vld [vmem:[%s10722_s9] sm:$0x7f] }
 0x3cb   : > { %3848 = vmatprep.subr.bf16.mxu1 %v7811_v43  ;;  %v4075_v43 = vld [vmem:[%s10723_s10] sm:$0x7f] }
 0x3cd   : > { %3806 = vmatpush1.bf16.msra.mxu0 %v7806_v61  ;;  %v4483_v61 = vld [vmem:[#allocation2 + $0x8] sm:$0xff] }
 0x3ce   : > { %3849 = vmatpush1.bf16.msra.mxu1 %v7809_v44  ;;  %3807 = vmatprep.subr.bf16.mxu0 %v7814_v45  ;;  %v7113_v44 = vpack.c.bf16 %v4227_v39, %v4225_v38  ;;  %v4485_v45 = vld [vmem:[#allocation2 + $0x18] sm:$0xff]  ;;  %v4498_v39 = vld [vmem:[#allocation2 + $0x80] sm:$0xff] }
 0x3cf   : > { %3850 = vmatprep.subr.bf16.mxu1 %v7817_v46  ;;  %v7115_v46 = vpack.c.bf16 %v4232_v41, %v4230_v40  ;;  %v4500_v40 = vld [vmem:[#allocation2 + $0x90] sm:$0xff]  ;;  %v4503_v41 = vld [vmem:[#allocation2 + $0xa8] sm:$0xff] }
 0x3d1   : > { %3808 = vmatpush1.bf16.msra.mxu0 %v7812_v47  ;;  %v4229_v47 = vld [vmem:[%s10724_s11 + $0x20] sm:$0xff] }
 0x3d2   : > { %3851 = vmatpush1.bf16.msra.mxu1 %v7815_v48  ;;  %3809 = vmatprep.subr.bf16.mxu0 %v7820_v49  ;;  %v4231_v48 = vld [vmem:[%s10724_s11 + $0x30] sm:$0xff]  ;;  %v4234_v49 = vld [vmem:[%s10724_s11 + $0x48] sm:$0xff] }
 0x3d3   : > { %3852 = vmatprep.subr.bf16.mxu1 %v7823_v50  ;;  %v4236_v50 = vld [vmem:[%s10724_s11 + $0x58] sm:$0xff] }
 0x3d5   : > { %3810 = vmatpush1.bf16.msra.mxu0 %v7818_v51  ;;  %v7223_v51 = vpack.c.bf16 %v4485_v45, %v4483_v61  ;;  %v4251_v45 = vld [vmem:[%s10724_s11 + $0xd0] sm:$0xff] }
 0x3d6   : > { %3853 = vmatpush1.bf16.msra.mxu1 %v7821_v52  ;;  %3811 = vmatprep.subr.bf16.mxu0 %v7826_v53  ;;  %v4482_v52 = vld [vmem:[#allocation2] sm:$0xff]  ;;  %v4484_v53 = vld [vmem:[#allocation2 + $0x10] sm:$0xff] }
 0x3d7   : > { %3854 = vmatprep.subr.bf16.mxu1 %v7829_v2  ;;  %v4487_v2 = vld [vmem:[#allocation2 + $0x28] sm:$0xff]  ;;  %v7225_v60 = vpack.c.bf16 %v4484_v53, %v4482_v52 }
 0x3d8   : > { %v4507_v52 = vld [vmem:[#allocation2 + $0xc8] sm:$0xff] }
 0x3d9   : > { %3812 = vmatpush1.bf16.msra.mxu0 %v7824_v54  ;;  %v7117_v54 = vpack.c.bf16 %v4231_v48, %v4229_v47  ;;  %v4256_v47 = vld [vmem:[%s10724_s11 + $0xf8] sm:$0xff]  ;;  %v7241_v48 = vpack.c.bf16 %v4500_v40, %v4498_v39  ;;  %v4523_v39 = vld [vmem:[#allocation2 + $0x148] sm:$0xff] }
 0x3da   : > { %3855 = vmatpush1.bf16.msra.mxu1 %v7827_v55  ;;  %3813 = vmatprep.subr.bf16.mxu0 %v7832_v56  ;;  %v4489_v55 = vld [vmem:[#allocation2 + $0x38] sm:$0xff]  ;;  %v7119_v56 = vpack.c.bf16 %v4236_v50, %v4234_v49  ;;  %v4502_v50 = vld [vmem:[#allocation2 + $0xa0] sm:$0xff] }
 0x3db   : > { %3856 = vmatprep.subr.bf16.mxu1 %v7835_v58  ;;  %v4233_v58 = vld [vmem:[%s10724_s11 + $0x40] sm:$0xff] }
 0x3dd   : > { %3814 = vmatpush1.bf16.msra.mxu0 %v7830_v35  ;;  %v4235_v35 = vld [vmem:[%s10724_s11 + $0x50] sm:$0xff] }
 0x3de   : > { %3857 = vmatpush1.bf16.msra.mxu1 %v7833_v57  ;;  %v4238_v57 = vld [vmem:[%s10724_s11 + $0x68] sm:$0xff] }
 0x3e0   : > { %3816 = vmatmul.mubr.bf16.vlgmr.msra.gmra.mrb[20].mxu0 %v3459_v59 }
 0x3e1   : > { %3859 = vmatmul.mubr.bf16.vlgmr.msra.gmra.mrb[28].mxu1 %v3459_v59  ;;  %4143 = vmatprep.mubr.f32.mxu0 %v8071_v8  ;;  %v4240_v59 = vld [vmem:[%s10724_s11 + $0x78] sm:$0xff] }
 0x3e2   : > { %3997 = vmatprep.mubr.f32.mxu1 %v8071_v8 }
 0x4b3   : > { %v3817_v4 = vpop.f32.mrb[20].mxu0 }
 0x4b4   : > { %v3899_v5 = vadd.f32 %v3882_v62, %v3817_v4  ;;  %v3860_v10 = vpop.f32.mrb[28].mxu1  ;;  %v3819_v6 = vpop.f32.mrb[21].mxu0  ;;  %v7121_v4 = vpack.c.bf16 %v4235_v35, %v4233_v58  ;;  %v4258_v58 = vld [vmem:[%s10724_s11 + $0x108] sm:$0xff]  ;;  %v4260_v35 = vld [vmem:[%s10724_s11 + $0x118] sm:$0xff] }
 0x4b5   : > { %v3901_v7 = vadd.f32 %v3890_v63, %v3860_v10  ;;  %v3900_v11 = vadd.f32 %v3886_v3, %v3819_v6  ;;  %v3862_v13 = vpop.f32.mrb[29].mxu1  ;;  %v3821_v14 = vpop.f32.mrb[22].mxu0  ;;  %v7123_v10 = vpack.c.bf16 %v4240_v59, %v4238_v57  ;;  %v4237_v6 = vld [vmem:[%s10724_s11 + $0x60] sm:$0xff] }
 0x4b6   : > { %v3902_v15 = vadd.f32 %v3894_v34, %v3862_v13  ;;  %v3903_v16 = vadd.f32 %v3882_v62, %v3821_v14  ;;  %v3864_v19 = vpop.f32.mrb[30].mxu1  ;;  %v3823_v17 = vpop.f32.mrb[23].mxu0  ;;  %v3907_v27 = vmax.f32 %v3899_v5, 0.0  ;;  %v7227_v62 = vpack.c.bf16 %v4489_v55, %v4487_v2  ;;  %v4493_v5 = vld [vmem:[#allocation2 + $0x58] sm:$0xff]  ;;  %v4253_v55 = vld [vmem:[%s10724_s11 + $0xe0] sm:$0xff] }
 0x4b7   : > { %v3905_v24 = vadd.f32 %v3890_v63, %v3864_v19  ;;  %v3904_v9 = vadd.f32 %v3886_v3, %v3823_v17  ;;  %v3866_v26 = vpop.f32.mrb[31].mxu1  ;;  %v3909_v22 = vmax.f32 %v3901_v7, 0.0  ;;  %v3908_v28 = vmax.f32 %v3900_v11, 0.0  ;;  %v4486_v63 = vld [vmem:[#allocation2 + $0x20] sm:$0xff]  ;;  %v4488_v3 = vld [vmem:[#allocation2 + $0x30] sm:$0xff]  ;;  %v4242_v7 = vld [vmem:[%s10724_s11 + $0x88] sm:$0xff] }
 0x4b8   : > { %v3911_v21 = vmax.f32 %v3903_v16, 0.0  ;;  %v3906_v23 = vadd.f32 %v3894_v34, %v3866_v26  ;;  %v3910_v30 = vmax.f32 %v3902_v15, 0.0  ;;  %v4491_v34 = vld [vmem:[#allocation2 + $0x48] sm:$0xff]  ;;  %v4244_v11 = vld [vmem:[%s10724_s11 + $0x98] sm:$0xff]  ;;  %v7229_v13 = vpack.c.bf16 %v4488_v3, %v4486_v63  ;;  %v4490_v15 = vld [vmem:[#allocation2 + $0x40] sm:$0xff] }
 0x4b9   : > { %v3913_v29 = vmax.f32 %v3905_v24, 0.0  ;;  %v3912_v25 = vmax.f32 %v3904_v9, 0.0  ;;  %v7231_v14 = vpack.c.bf16 %v4493_v5, %v4491_v34  ;;  %v4492_v16 = vld [vmem:[#allocation2 + $0x50] sm:$0xff]  ;;  %v4495_v19 = vld [vmem:[#allocation2 + $0x68] sm:$0xff]  ;;  %v7125_v17 = vpack.c.bf16 %v4239_v1, %v4237_v6  ;;  %v4497_v24 = vld [vmem:[#allocation2 + $0x78] sm:$0xff] }
 0x4ba   : > { %v7090_v31 = vpack.c.bf16 %v3911_v21, %v3907_v27  ;;  %v3914_v20 = vmax.f32 %v3906_v23, 0.0  ;;  %v7127_v9 = vpack.c.bf16 %v4244_v11, %v4242_v7  ;;  %v4241_v26 = vld [vmem:[%s10724_s11 + $0x80] sm:$0xff]  ;;  %v4243_v27 = vld [vmem:[%s10724_s11 + $0x90] sm:$0xff]  ;;  %v4246_v21 = vld [vmem:[%s10724_s11 + $0xa8] sm:$0xff]  ;;  %v7233_v18 = vpack.c.bf16 %v4492_v16, %v4490_v15 }
 0x4bb   : > { %v7096_v32 = vpack.c.bf16 %v3913_v29, %v3909_v22  ;;  %v7087_v33 = vpack.c.bf16 %v3912_v25, %v3908_v28  ;;  %v4248_v23 = vld [vmem:[%s10724_s11 + $0xb8] sm:$0xff]  ;;  %v7235_v12 = vpack.c.bf16 %v4497_v24, %v4495_v19  ;;  %v4494_v22 = vld [vmem:[#allocation2 + $0x60] sm:$0xff]  ;;  %v4496_v28 = vld [vmem:[#allocation2 + $0x70] sm:$0xff]  ;;  %v7129_v25 = vpack.c.bf16 %v4243_v27, %v4241_v26 }
 0x4bc   : > { %v7093_v37 = vpack.c.bf16 %v3914_v20, %v3910_v30  ;;  %v4499_v29 = vld [vmem:[#allocation2 + $0x88] sm:$0xff]  ;;  %v4501_v30 = vld [vmem:[#allocation2 + $0x98] sm:$0xff]  ;;  %v4245_v20 = vld [vmem:[%s10724_s11 + $0xa0] sm:$0xff] }
 0x4bd   : > { %7089 = vmatprep.subr.msk.bf16.mxu1 %vm8259_vm2, %v7087_v33  ;;  %7101 = vmatprep.subr.msk.bf16.mxu0 %vm8259_vm2, %v7087_v33  ;;  %v4250_v33 = vld [vmem:[%s10724_s11 + $0xc8] sm:$0xff]  ;;  %v7239_v38 = vpack.c.bf16 %v4501_v30, %v4499_v29  ;;  %v4509_v2 = vld [vmem:[#allocation2 + $0xd8] sm:$0xff]  ;;  %v4257_v5 = vld [vmem:[%s10724_s11 + $0x100] sm:$0xff] }
 0x4be   : > { %7092 = vmatpush1.bf16.msk.msra.mxu1 %vm8259_vm2, %v7090_v31  ;;  %7104 = vmatpush1.bf16.msk.msra.mxu0 %vm8259_vm2, %v7090_v31  ;;  %v7131_v31 = vpack.c.bf16 %v4248_v23, %v4246_v21  ;;  %v7247_v59 = vpack.c.bf16 %v4509_v2, %v4507_v52  ;;  %v4511_v63 = vld [vmem:[#allocation2 + $0xe8] sm:$0xff]  ;;  %v4513_v34 = vld [vmem:[#allocation2 + $0xf8] sm:$0xff]  ;;  %v4261_v24 = vld [vmem:[%s10724_s11 + $0x120] sm:$0xff] }
 0x4bf   : > { %7095 = vmatprep.subr.msk.bf16.mxu1 %vm8259_vm2, %v7093_v37  ;;  %7112 = vmatprep.subr.bf16.mxu0 %v7111_v36  ;;  %v4252_v36 = vld [vmem:[%s10724_s11 + $0xd8] sm:$0xff]  ;;  %v4262_v6 = vld [vmem:[%s10724_s11 + $0x128] sm:$0xff]  ;;  %v7251_v11 = vpack.c.bf16 %v4513_v34, %v4511_v63  ;;  %v4265_v30 = vld [vmem:[%s10724_s11 + $0x140] sm:$0xff] }
 0x4c0   : > { %v7135_v61 = vpack.c.bf16 %v4252_v36, %v4250_v33  ;;  %v4264_v1 = vld [vmem:[%s10724_s11 + $0x138] sm:$0xff]  ;;  %v4515_v15 = vld [vmem:[#allocation2 + $0x108] sm:$0xff]  ;;  %v4273_v2 = vld [vmem:[%s10724_s11 + $0x180] sm:$0xff] }
 0x4c1   : > { %6511 = vmatmul.mubr.msk.f32.vlgmr.msra.gmra.mrb[32].mxu1 %vm3916_vm11, %v3915_v42  ;;  %6517 = vmatmul.mubr.msk.f32.vlgmr.msra.gmra.mrb[24].mxu0 %vm3916_vm11, %v4075_v43  ;;  %v4517_v19 = vld [vmem:[#allocation2 + $0x118] sm:$0xff]  ;;  %v4266_v26 = vld [vmem:[%s10724_s11 + $0x148] sm:$0xff]  ;;  %v4277_v34 = vld [vmem:[%s10724_s11 + $0x1a0] sm:$0xff] }
 0x4c2   : > { %7098 = vmatpush1.bf16.msk.msra.mxu1 %vm8259_vm2, %v7096_v32  ;;  %4068 = vmatprep.mubr.f32.mxu1 %v8071_v8  ;;  %v4268_v27 = vld [vmem:[%s10724_s11 + $0x158] sm:$0xff]  ;;  %v7255_v23 = vpack.c.bf16 %v4517_v19, %v4515_v15  ;;  %v4281_v19 = vld [vmem:[%s10724_s11 + $0x1c0] sm:$0xff] }
 0x4c3   : > { %7107 = vmatprep.subr.msk.bf16.mxu1 %vm8259_vm2, %v7093_v37  ;;  %7114 = vmatpush1.bf16.msra.mxu0 %v7113_v44  ;;  %v7237_v37 = vpack.c.bf16 %v4496_v28, %v4494_v22  ;;  %v4249_v44 = vld [vmem:[%s10724_s11 + $0xc0] sm:$0xff]  ;;  %v4519_v22 = vld [vmem:[#allocation2 + $0x128] sm:$0xff]  ;;  %v4521_v29 = vld [vmem:[#allocation2 + $0x138] sm:$0xff] }
 0x4c4   : > { %7116 = vmatprep.subr.bf16.mxu0 %v7115_v46  ;;  %v4254_v46 = vld [vmem:[%s10724_s11 + $0xe8] sm:$0xff]  ;;  %v7137_v53 = vpack.c.bf16 %v4251_v45, %v4249_v44  ;;  %v7259_v36 = vpack.c.bf16 %v4521_v29, %v4519_v22  ;;  %v4276_v45 = vld [vmem:[%s10724_s11 + $0x198] sm:$0xff]  ;;  %v4540_v29 = vld [vmem:[#allocation2 + $0x1d0] sm:$0xff] }
 0x4c5   : > { %6514 = vmatmul.mubr.msk.f32.vlgmr.msra.gmra.mrb[34].mxu1 %vm3916_vm11, %v3915_v42  ;;  %v4274_v44 = vld [vmem:[%s10724_s11 + $0x188] sm:$0xff]  ;;  %v4529_v52 = vld [vmem:[#allocation2 + $0x178] sm:$0xff] }
 0x4c6   : > { %7110 = vmatpush1.bf16.msk.msra.mxu1 %vm8259_vm2, %v7096_v32  ;;  %4214 = vmatprep.mubr.f32.mxu1 %v8071_v8  ;;  %v4247_v32 = vld [vmem:[%s10724_s11 + $0xb0] sm:$0xff]  ;;  %v4533_v63 = vld [vmem:[#allocation2 + $0x198] sm:$0xff] }
 0x4c7   : > { %7224 = vmatprep.subr.bf16.mxu1 %v7223_v51  ;;  %7118 = vmatpush1.bf16.msra.mxu0 %v7117_v54  ;;  %v7133_v42 = vpack.c.bf16 %v4247_v32, %v4245_v20  ;;  %v4504_v51 = vld [vmem:[#allocation2 + $0xb0] sm:$0xff]  ;;  %v7139_v54 = vpack.c.bf16 %v4256_v47, %v4254_v46  ;;  %v4270_v20 = vld [vmem:[%s10724_s11 + $0x168] sm:$0xff]  ;;  %v4272_v32 = vld [vmem:[%s10724_s11 + $0x178] sm:$0xff] }
 0x4c8   : > { %7120 = vmatprep.subr.bf16.mxu0 %v7119_v56  ;;  %v4255_v56 = vld [vmem:[%s10724_s11 + $0xf0] sm:$0xff]  ;;  %v7245_v57 = vpack.c.bf16 %v4504_v51, %v4502_v50  ;;  %v4527_v50 = vld [vmem:[#allocation2 + $0x168] sm:$0xff]  ;;  %v4537_v15 = vld [vmem:[#allocation2 + $0x1b8] sm:$0xff] }
 0x4c9   : > { %6520 = vmatmul.mubr.msk.f32.vlgmr.msra.gmra.mrb[36].mxu1 %vm3916_vm11, %v4075_v43  ;;  %v4505_v43 = vld [vmem:[#allocation2 + $0xb8] sm:$0xff]  ;;  %v7141_v3 = vpack.c.bf16 %v4255_v56, %v4253_v55  ;;  %v4278_v55 = vld [vmem:[%s10724_s11 + $0x1a8] sm:$0xff] }
 0x4ca   : > { %7226 = vmatpush1.bf16.msra.mxu1 %v7225_v60  ;;  %v7243_v49 = vpack.c.bf16 %v4505_v43, %v4503_v41  ;;  %v4506_v60 = vld [vmem:[#allocation2 + $0xc0] sm:$0xff]  ;;  %v4525_v41 = vld [vmem:[#allocation2 + $0x158] sm:$0xff] }
 0x4cb   : > { %7228 = vmatprep.subr.bf16.mxu1 %v7227_v62  ;;  %7122 = vmatpush1.bf16.msra.mxu0 %v7121_v4  ;;  %v4508_v62 = vld [vmem:[#allocation2 + $0xd0] sm:$0xff]  ;;  %v7143_v4 = vpack.c.bf16 %v4260_v35, %v4258_v58  ;;  %v4269_v43 = vld [vmem:[%s10724_s11 + $0x160] sm:$0xff]  ;;  %v7263_v47 = vpack.c.bf16 %v4525_v41, %v4523_v39  ;;  %v4280_v56 = vld [vmem:[%s10724_s11 + $0x1b8] sm:$0xff]  ;;  %v7267_v35 = vpack.c.bf16 %v4529_v52, %v4527_v50 }
 0x4cc   : > { %7124 = vmatprep.subr.bf16.mxu0 %v7123_v10  ;;  %v4259_v10 = vld [vmem:[%s10724_s11 + $0x110] sm:$0xff]  ;;  %v7249_v7 = vpack.c.bf16 %v4508_v62, %v4506_v60  ;;  %v4531_v60 = vld [vmem:[#allocation2 + $0x188] sm:$0xff]  ;;  %v4546_v50 = vld [vmem:[#allocation2 + $0x200] sm:$0xff] }
 0x4cd   : > { %v7145_v16 = vpack.c.bf16 %v4259_v10, %v4257_v5  ;;  %v4282_v5 = vld [vmem:[%s10724_s11 + $0x1c8] sm:$0xff]  ;;  %v4284_v10 = vld [vmem:[%s10724_s11 + $0x1d8] sm:$0xff]  ;;  %v4544_v41 = vld [vmem:[#allocation2 + $0x1f0] sm:$0xff] }
 0x4ce   : > { %7230 = vmatpush1.bf16.msra.mxu1 %v7229_v13  ;;  %v4510_v13 = vld [vmem:[#allocation2 + $0xe0] sm:$0xff]  ;;  %v4294_v52 = vld [vmem:[%s10724_s11 + $0x228] sm:$0xff] }
 0x4cf   : > { %7232 = vmatprep.subr.bf16.mxu1 %v7231_v14  ;;  %7126 = vmatpush1.bf16.msra.mxu0 %v7125_v17  ;;  %v4512_v14 = vld [vmem:[#allocation2 + $0xf0] sm:$0xff]  ;;  %v7147_v17 = vpack.c.bf16 %v4264_v1, %v4262_v6  ;;  %v7271_v1 = vpack.c.bf16 %v4533_v63, %v4531_v60  ;;  %v4293_v63 = vld [vmem:[%s10724_s11 + $0x220] sm:$0xff] }
 0x4d0   : > { %7128 = vmatprep.subr.bf16.mxu0 %v7127_v9  ;;  %v4263_v9 = vld [vmem:[%s10724_s11 + $0x130] sm:$0xff]  ;;  %v7253_v21 = vpack.c.bf16 %v4512_v14, %v4510_v13  ;;  %v4535_v13 = vld [vmem:[#allocation2 + $0x1a8] sm:$0xff] }
 0x4d1   : > { %v7149_v28 = vpack.c.bf16 %v4263_v9, %v4261_v24  ;;  %v7275_v9 = vpack.c.bf16 %v4537_v15, %v4535_v13 }
 0x4d2   : > { %7234 = vmatpush1.bf16.msra.mxu1 %v7233_v18  ;;  %v4514_v18 = vld [vmem:[#allocation2 + $0x100] sm:$0xff] }
 0x4d3   : > { %7236 = vmatprep.subr.bf16.mxu1 %v7235_v12  ;;  %7130 = vmatpush1.bf16.msra.mxu0 %v7129_v25  ;;  %v4516_v12 = vld [vmem:[#allocation2 + $0x110] sm:$0xff]  ;;  %v7151_v25 = vpack.c.bf16 %v4268_v27, %v4266_v26  ;;  %v4534_v26 = vld [vmem:[#allocation2 + $0x1a0] sm:$0xff] }
 0x4d4   : > { %7132 = vmatprep.subr.bf16.mxu0 %v7131_v31  ;;  %v4267_v31 = vld [vmem:[%s10724_s11 + $0x150] sm:$0xff]  ;;  %v7257_v33 = vpack.c.bf16 %v4516_v12, %v4514_v18  ;;  %v4541_v18 = vld [vmem:[#allocation2 + $0x1d8] sm:$0xff] }
 0x4d5   : > { %v7153_v40 = vpack.c.bf16 %v4267_v31, %v4265_v30  ;;  %v4536_v27 = vld [vmem:[#allocation2 + $0x1b0] sm:$0xff]  ;;  %v4286_v30 = vld [vmem:[%s10724_s11 + $0x1e8] sm:$0xff]  ;;  %v4288_v31 = vld [vmem:[%s10724_s11 + $0x1f8] sm:$0xff] }
 0x4d6   : > { %7238 = vmatpush1.bf16.msra.mxu1 %v7237_v37  ;;  %v4518_v37 = vld [vmem:[#allocation2 + $0x120] sm:$0xff]  ;;  %v7277_v12 = vpack.c.bf16 %v4536_v27, %v4534_v26  ;;  %v4556_v27 = vld [vmem:[#allocation2 + $0x250] sm:$0xff] }
 0x4d7   : > { %7240 = vmatprep.subr.bf16.mxu1 %v7239_v38  ;;  %7134 = vmatpush1.bf16.msra.mxu0 %v7133_v42  ;;  %v4520_v38 = vld [vmem:[#allocation2 + $0x130] sm:$0xff]  ;;  %v7155_v42 = vpack.c.bf16 %v4272_v32, %v4270_v20  ;;  %v4543_v20 = vld [vmem:[#allocation2 + $0x1e8] sm:$0xff]  ;;  %v7171_v32 = vpack.c.bf16 %v4288_v31, %v4286_v30  ;;  %v4554_v26 = vld [vmem:[#allocation2 + $0x240] sm:$0xff] }
 0x4d8   : > { %7136 = vmatprep.subr.bf16.mxu0 %v7135_v61  ;;  %v4271_v61 = vld [vmem:[%s10724_s11 + $0x170] sm:$0xff]  ;;  %v7261_v46 = vpack.c.bf16 %v4520_v38, %v4518_v37  ;;  %v7297_v30 = vpack.c.bf16 %v4556_v27, %v4554_v26  ;;  %v4301_v31 = vld [vmem:[%s10724_s11 + $0x260] sm:$0xff] }
 0x4d9   : > { %v7157_v51 = vpack.c.bf16 %v4271_v61, %v4269_v43  ;;  %v4287_v37 = vld [vmem:[%s10724_s11 + $0x1f0] sm:$0xff]  ;;  %v4290_v43 = vld [vmem:[%s10724_s11 + $0x208] sm:$0xff]  ;;  %v4292_v61 = vld [vmem:[%s10724_s11 + $0x218] sm:$0xff] }
 0x4da   : > { %7242 = vmatpush1.bf16.msra.mxu1 %v7241_v48  ;;  %v4522_v48 = vld [vmem:[#allocation2 + $0x140] sm:$0xff] }
 0x4db   : > { %7244 = vmatprep.subr.bf16.mxu1 %v7243_v49  ;;  %7138 = vmatpush1.bf16.msra.mxu0 %v7137_v53  ;;  %v4524_v49 = vld [vmem:[#allocation2 + $0x150] sm:$0xff]  ;;  %v7159_v53 = vpack.c.bf16 %v4276_v45, %v4274_v44  ;;  %v4547_v44 = vld [vmem:[#allocation2 + $0x208] sm:$0xff]  ;;  %v7175_v45 = vpack.c.bf16 %v4292_v61, %v4290_v43 }
 0x4dc   : > { %7140 = vmatprep.subr.bf16.mxu0 %v7139_v54  ;;  %v4275_v54 = vld [vmem:[%s10724_s11 + $0x190] sm:$0xff]  ;;  %v7265_v58 = vpack.c.bf16 %v4524_v49, %v4522_v48  ;;  %v4289_v48 = vld [vmem:[%s10724_s11 + $0x200] sm:$0xff] }
 0x4dd   : > { %v7161_v62 = vpack.c.bf16 %v4275_v54, %v4273_v2  ;;  %v4291_v49 = vld [vmem:[%s10724_s11 + $0x210] sm:$0xff]  ;;  %v4296_v54 = vld [vmem:[%s10724_s11 + $0x238] sm:$0xff] }
 0x4de   : > { %7246 = vmatpush1.bf16.msra.mxu1 %v7245_v57  ;;  %v4526_v57 = vld [vmem:[#allocation2 + $0x160] sm:$0xff]  ;;  %v7177_v60 = vpack.c.bf16 %v4291_v49, %v4289_v48  ;;  %v4564_v49 = vld [vmem:[#allocation2 + $0x290] sm:$0xff] }
 0x4df   : > { %7248 = vmatprep.subr.bf16.mxu1 %v7247_v59  ;;  %7142 = vmatpush1.bf16.msra.mxu0 %v7141_v3  ;;  %v4528_v59 = vld [vmem:[#allocation2 + $0x170] sm:$0xff]  ;;  %v7163_v3 = vpack.c.bf16 %v4280_v56, %v4278_v55  ;;  %v4551_v55 = vld [vmem:[#allocation2 + $0x228] sm:$0xff]  ;;  %v4553_v56 = vld [vmem:[#allocation2 + $0x238] sm:$0xff] }
 0x4e0   : > { %7144 = vmatprep.subr.bf16.mxu0 %v7143_v4  ;;  %v4279_v4 = vld [vmem:[%s10724_s11 + $0x1b0] sm:$0xff]  ;;  %v7269_v6 = vpack.c.bf16 %v4528_v59, %v4526_v57  ;;  %v4562_v48 = vld [vmem:[#allocation2 + $0x280] sm:$0xff] }
 0x4e1   : > { %v7165_v14 = vpack.c.bf16 %v4279_v4, %v4277_v34  ;;  %v7179_v34 = vpack.c.bf16 %v4296_v54, %v4294_v52  ;;  %v7291_v4 = vpack.c.bf16 %v4553_v56, %v4551_v55  ;;  %v4567_v52 = vld [vmem:[#allocation2 + $0x2a8] sm:$0xff]  ;;  %v7305_v54 = vpack.c.bf16 %v4564_v49, %v4562_v48  ;;  %v4309_v55 = vld [vmem:[%s10724_s11 + $0x2a0] sm:$0xff]  ;;  %v4311_v56 = vld [vmem:[%s10724_s11 + $0x2b0] sm:$0xff] }
 0x4e2   : > { %7250 = vmatpush1.bf16.msra.mxu1 %v7249_v7  ;;  %v4530_v7 = vld [vmem:[#allocation2 + $0x180] sm:$0xff]  ;;  %v4584_v48 = vld [vmem:[#allocation2 + $0x330] sm:$0xff]  ;;  %v4330_v49 = vld [vmem:[%s10724_s11 + $0x348] sm:$0xff] }
 0x4e3   : > { %7252 = vmatprep.subr.bf16.mxu1 %v7251_v11  ;;  %7146 = vmatpush1.bf16.msra.mxu0 %v7145_v16  ;;  %v4532_v11 = vld [vmem:[#allocation2 + $0x190] sm:$0xff]  ;;  %v7167_v16 = vpack.c.bf16 %v4284_v10, %v4282_v5  ;;  %v4550_v5 = vld [vmem:[#allocation2 + $0x220] sm:$0xff] }
 0x4e4   : > { %7148 = vmatprep.subr.bf16.mxu0 %v7147_v17  ;;  %v4283_v17 = vld [vmem:[%s10724_s11 + $0x1d0] sm:$0xff]  ;;  %v7273_v24 = vpack.c.bf16 %v4532_v11, %v4530_v7  ;;  %v4555_v7 = vld [vmem:[#allocation2 + $0x248] sm:$0xff]  ;;  %v4557_v11 = vld [vmem:[#allocation2 + $0x258] sm:$0xff] }
 0x4e5   : > { %v4552_v10 = vld [vmem:[#allocation2 + $0x230] sm:$0xff] }
 0x4e6   : > { %7254 = vmatpush1.bf16.msra.mxu1 %v7253_v21  ;;  %v7169_v21 = vpack.c.bf16 %v4283_v17, %v4281_v19  ;;  %v4297_v19 = vld [vmem:[%s10724_s11 + $0x240] sm:$0xff]  ;;  %v4299_v17 = vld [vmem:[%s10724_s11 + $0x250] sm:$0xff] }
 0x4e7   : > { %7256 = vmatprep.subr.bf16.mxu1 %v7255_v23  ;;  %7150 = vmatpush1.bf16.msra.mxu0 %v7149_v28  ;;  %v4539_v23 = vld [vmem:[#allocation2 + $0x1c8] sm:$0xff]  ;;  %v4538_v28 = vld [vmem:[#allocation2 + $0x1c0] sm:$0xff] }
 0x4e8   : > { %7152 = vmatprep.subr.bf16.mxu0 %v7151_v25  ;;  %v7279_v22 = vpack.c.bf16 %v4541_v18, %v4539_v23  ;;  %v7281_v25 = vpack.c.bf16 %v4540_v29, %v4538_v28  ;;  %v4304_v23 = vld [vmem:[%s10724_s11 + $0x278] sm:$0xff]  ;;  %v4559_v18 = vld [vmem:[#allocation2 + $0x268] sm:$0xff] }
 0x4ea   : > { %7258 = vmatpush1.bf16.msra.mxu1 %v7257_v33  ;;  %v4545_v33 = vld [vmem:[#allocation2 + $0x1f8] sm:$0xff] }
 0x4eb   : > { %7260 = vmatprep.subr.bf16.mxu1 %v7259_v36  ;;  %7154 = vmatpush1.bf16.msra.mxu0 %v7153_v40  ;;  %v4285_v36 = vld [vmem:[%s10724_s11 + $0x1e0] sm:$0xff]  ;;  %v7283_v38 = vpack.c.bf16 %v4545_v33, %v4543_v20  ;;  %v4303_v20 = vld [vmem:[%s10724_s11 + $0x270] sm:$0xff] }
 0x4ec   : > { %7156 = vmatprep.subr.bf16.mxu0 %v7155_v42  ;;  %v7173_v39 = vpack.c.bf16 %v4287_v37, %v4285_v36  ;;  %v4542_v40 = vld [vmem:[#allocation2 + $0x1e0] sm:$0xff]  ;;  %v7189_v43 = vpack.c.bf16 %v4303_v20, %v4301_v31  ;;  %v4323_v20 = vld [vmem:[%s10724_s11 + $0x310] sm:$0xff] }
 0x4ed   : > { %v7285_v42 = vpack.c.bf16 %v4544_v41, %v4542_v40  ;;  %v4558_v37 = vld [vmem:[#allocation2 + $0x260] sm:$0xff]  ;;  %v4308_v40 = vld [vmem:[%s10724_s11 + $0x298] sm:$0xff]  ;;  %v4563_v41 = vld [vmem:[#allocation2 + $0x288] sm:$0xff] }
 0x4ee   : > { %7262 = vmatpush1.bf16.msra.mxu1 %v7261_v46  ;;  %v4549_v46 = vld [vmem:[#allocation2 + $0x218] sm:$0xff]  ;;  %v4321_v31 = vld [vmem:[%s10724_s11 + $0x300] sm:$0xff] }
 0x4ef   : > { %7264 = vmatprep.subr.bf16.mxu1 %v7263_v47  ;;  %7158 = vmatpush1.bf16.msra.mxu0 %v7157_v51  ;;  %v7287_v47 = vpack.c.bf16 %v4549_v46, %v4547_v44  ;;  %v4548_v51 = vld [vmem:[#allocation2 + $0x210] sm:$0xff]  ;;  %v4305_v44 = vld [vmem:[%s10724_s11 + $0x280] sm:$0xff] }
 0x4f0   : > { %7160 = vmatprep.subr.bf16.mxu0 %v7159_v53 }
 0x4f2   : > { %7266 = vmatpush1.bf16.msra.mxu1 %v7265_v58 }
 0x4f3   : > { %7268 = vmatprep.subr.bf16.mxu1 %v7267_v35  ;;  %7162 = vmatpush1.bf16.msra.mxu0 %v7161_v62  ;;  %v7289_v62 = vpack.c.bf16 %v4548_v51, %v4546_v50  ;;  %v4310_v50 = vld [vmem:[%s10724_s11 + $0x2a8] sm:$0xff]  ;;  %v4312_v51 = vld [vmem:[%s10724_s11 + $0x2b8] sm:$0xff] }
 0x4f4   : > { %7164 = vmatprep.subr.bf16.mxu0 %v7163_v3  ;;  %v4295_v3 = vld [vmem:[%s10724_s11 + $0x230] sm:$0xff] }
 0x4f5   : > { %v7181_v15 = vpack.c.bf16 %v4295_v3, %v4293_v63  ;;  %v4571_v63 = vld [vmem:[#allocation2 + $0x2c8] sm:$0xff]  ;;  %v4573_v3 = vld [vmem:[#allocation2 + $0x2d8] sm:$0xff] }
 0x4f6   : > { %7270 = vmatpush1.bf16.msra.mxu1 %v7269_v6  ;;  %v4298_v6 = vld [vmem:[%s10724_s11 + $0x248] sm:$0xff] }
 0x4f7   : > { %7272 = vmatprep.subr.bf16.mxu1 %v7271_v1  ;;  %7166 = vmatpush1.bf16.msra.mxu0 %v7165_v14  ;;  %v4300_v1 = vld [vmem:[%s10724_s11 + $0x258] sm:$0xff] }
 0x4f8   : > { %7168 = vmatprep.subr.bf16.mxu0 %v7167_v16  ;;  %v7293_v16 = vpack.c.bf16 %v4552_v10, %v4550_v5  ;;  %v4313_v5 = vld [vmem:[%s10724_s11 + $0x2c0] sm:$0xff]  ;;  %v4315_v10 = vld [vmem:[%s10724_s11 + $0x2d0] sm:$0xff] }
 0x4fa   : > { %7274 = vmatpush1.bf16.msra.mxu1 %v7273_v24  ;;  %v7183_v24 = vpack.c.bf16 %v4300_v1, %v4298_v6  ;;  %v7311_v1 = vpack.c.bf16 %v4573_v3, %v4571_v63  ;;  %v4593_v63 = vld [vmem:[#allocation2 + $0x378] sm:$0xff] }
 0x4fb   : > { %7276 = vmatprep.subr.bf16.mxu1 %v7275_v9  ;;  %7170 = vmatpush1.bf16.msra.mxu0 %v7169_v21  ;;  %v7295_v9 = vpack.c.bf16 %v4557_v11, %v4555_v7  ;;  %v4302_v21 = vld [vmem:[%s10724_s11 + $0x268] sm:$0xff]  ;;  %v4570_v7 = vld [vmem:[#allocation2 + $0x2c0] sm:$0xff]  ;;  %v4572_v11 = vld [vmem:[#allocation2 + $0x2d0] sm:$0xff] }
 0x4fc   : > { %7172 = vmatprep.subr.bf16.mxu0 %v7171_v32  ;;  %v7187_v33 = vpack.c.bf16 %v4304_v23, %v4302_v21  ;;  %v4574_v21 = vld [vmem:[#allocation2 + $0x2e0] sm:$0xff]  ;;  %v4576_v23 = vld [vmem:[#allocation2 + $0x2f0] sm:$0xff] }
 0x4fe   : > { %7278 = vmatpush1.bf16.msra.mxu1 %v7277_v12  ;;  %v4561_v12 = vld [vmem:[#allocation2 + $0x278] sm:$0xff] }
 0x4ff   : > { %7280 = vmatprep.subr.bf16.mxu1 %v7279_v22  ;;  %7174 = vmatpush1.bf16.msra.mxu0 %v7173_v39  ;;  %v7299_v36 = vpack.c.bf16 %v4561_v12, %v4559_v18  ;;  %v4306_v39 = vld [vmem:[%s10724_s11 + $0x288] sm:$0xff]  ;;  %v4324_v12 = vld [vmem:[%s10724_s11 + $0x318] sm:$0xff] }
 0x500   : > { %7176 = vmatprep.subr.bf16.mxu0 %v7175_v45  ;;  %v4307_v45 = vld [vmem:[%s10724_s11 + $0x290] sm:$0xff]  ;;  %v7191_v46 = vpack.c.bf16 %v4308_v40, %v4306_v39  ;;  %v4322_v18 = vld [vmem:[%s10724_s11 + $0x308] sm:$0xff]  ;;  %v4328_v39 = vld [vmem:[%s10724_s11 + $0x338] sm:$0xff] }
 0x501   : > { %v4583_v40 = vld [vmem:[#allocation2 + $0x328] sm:$0xff] }
 0x502   : > { %7282 = vmatpush1.bf16.msra.mxu1 %v7281_v25  ;;  %v7185_v25 = vpack.c.bf16 %v4299_v17, %v4297_v19  ;;  %v7201_v19 = vpack.c.bf16 %v4315_v10, %v4313_v5  ;;  %v7313_v17 = vpack.c.bf16 %v4572_v11, %v4570_v7  ;;  %v4592_v7 = vld [vmem:[#allocation2 + $0x370] sm:$0xff] }
 0x503   : > { %7284 = vmatprep.subr.bf16.mxu1 %v7283_v38  ;;  %v4560_v38 = vld [vmem:[#allocation2 + $0x270] sm:$0xff] }
 0x504   : > { %v7301_v61 = vpack.c.bf16 %v4560_v38, %v4558_v37  ;;  %v4580_v37 = vld [vmem:[#allocation2 + $0x310] sm:$0xff]  ;;  %v4326_v38 = vld [vmem:[%s10724_s11 + $0x328] sm:$0xff] }
 0x506   : > { %7286 = vmatpush1.bf16.msra.mxu1 %v7285_v42  ;;  %v4565_v42 = vld [vmem:[#allocation2 + $0x298] sm:$0xff] }
 0x507   : > { %7288 = vmatprep.subr.bf16.mxu1 %v7287_v47  ;;  %v7303_v47 = vpack.c.bf16 %v4565_v42, %v4563_v41  ;;  %v4585_v41 = vld [vmem:[#allocation2 + $0x338] sm:$0xff]  ;;  %v7209_v42 = vpack.c.bf16 %v4323_v20, %v4321_v31  ;;  %v7854_v31 = vld [vmem:[%s10726_s13 + $0x48] sm:$0xff]  }
 0x508   : > { %v7855_v20 = vld [vmem:[%s10726_s13 + $0xb8] sm:$0xff]  }
 0x594   : > { %v3999_v53 = vpop.f32.mrb[32].mxu1  ;;  %v4145_v2 = vpop.f32.mrb[24].mxu0 }
 0x595   : > { %v4221_v58 = vmax.f32 %v3999_v53, %v4145_v2  ;;  %v4001_v35 = vpop.f32.mrb[33].mxu1  ;;  %v4147_v57 = vpop.f32.mrb[25].mxu0  ;;  %v4569_v53 = vld [vmem:[#allocation2 + $0x2b8] sm:$0xff]  ;;  %v7193_v2 = vpack.c.bf16 %v4307_v45, %v4305_v44  ;;  %v4327_v44 = vld [vmem:[%s10724_s11 + $0x330] sm:$0xff]  ;;  %v7211_v45 = vpack.c.bf16 %v4328_v39, %v4326_v38  ;;  %v7860_v38 = vld [vmem:[%s10726_s13 + $0x60] sm:$0xff]  }
 0x596   : > { %v4222_v59 = vmax.f32 %v4001_v35, %v4147_v57  ;;  %v7307_v35 = vpack.c.bf16 %v4569_v53, %v4567_v52  ;;  %v4566_v57 = vld [vmem:[#allocation2 + $0x2a0] sm:$0xff]  ;;  %v4589_v52 = vld [vmem:[#allocation2 + $0x358] sm:$0xff]  ;;  %v7861_v39 = vld [vmem:[%s10726_s13 + $0xd0] sm:$0xff]  }
 0x598   : > { %4404 = vmatprep.mubr.f32.mxu0 %v4222_v59  ;;  %4658 = vmatprep.mubr.f32.mxu1 %v4222_v59  ;;  %v4070_v13 = vpop.f32.mrb[34].mxu1  ;;  %v4568_v59 = vld [vmem:[#allocation2 + $0x2b0] sm:$0xff] }
 0x599   : > { %4405 = vmatmul.mubr.f32.vlgmr.msra.gmra.mrb[26].mxu0 %v4221_v58  ;;  %4659 = vmatmul.mubr.f32.vlgmr.msra.gmra.mrb[38].mxu1 %v4221_v58  ;;  %v4072_v14 = vpop.f32.mrb[35].mxu1  ;;  %v7195_v58 = vpack.c.bf16 %v4312_v51, %v4310_v50  ;;  %v4332_v50 = vld [vmem:[%s10724_s11 + $0x358] sm:$0xff]  ;;  %v4587_v51 = vld [vmem:[#allocation2 + $0x348] sm:$0xff] }
 0x59a   : > { %7178 = vmatpush1.bf16.msra.mxu0 %v7177_v60  ;;  %7290 = vmatpush1.bf16.msra.mxu1 %v7289_v62  ;;  %v4314_v60 = vld [vmem:[%s10724_s11 + $0x2c8] sm:$0xff]  ;;  %v4316_v62 = vld [vmem:[%s10724_s11 + $0x2d8] sm:$0xff] }
 0x59b   : > { %7180 = vmatprep.subr.bf16.mxu0 %v7179_v34  ;;  %7292 = vmatprep.subr.bf16.mxu1 %v7291_v4  ;;  %v7197_v34 = vpack.c.bf16 %v4311_v56, %v4309_v55  ;;  %v7309_v4 = vpack.c.bf16 %v4568_v59, %v4566_v57  ;;  %v7199_v6 = vpack.c.bf16 %v4316_v62, %v4314_v60  ;;  %v4331_v55 = vld [vmem:[%s10724_s11 + $0x350] sm:$0xff]  ;;  %v4334_v59 = vld [vmem:[%s10724_s11 + $0x368] sm:$0xff]  ;;  %v4336_v60 = vld [vmem:[%s10724_s11 + $0x378] sm:$0xff] }
 0x59c   : > { %v4216_v22 = vpop.f32.mrb[36].mxu1  ;;  %v7215_v56 = vpack.c.bf16 %v4332_v50, %v4330_v49  ;;  %v4588_v57 = vld [vmem:[#allocation2 + $0x350] sm:$0xff]  ;;  %v4591_v62 = vld [vmem:[#allocation2 + $0x368] sm:$0xff]  ;;  %v7219_v5 = vpack.c.bf16 %v4336_v60, %v4334_v59  ;;  %v7873_v60 = vld [vmem:[%s10726_s13 + $0x100] sm:$0xff]  }
 0x59d   : > { %v10079_v28 = vmax.f32 %v4070_v13, %v4216_v22  ;;  %v4218_v29 = vpop.f32.mrb[37].mxu1  ;;  %v4318_v13 = vld [vmem:[%s10724_s11 + $0x2e8] sm:$0xff]  ;;  %v7331_v10 = vpack.c.bf16 %v4593_v63, %v4591_v62  ;;  %v7864_v49 = vld [vmem:[%s10726_s13 + $0x150] sm:$0xff]   ;;  %v7874_v62 = vld [vmem:[%s10726_s13 + $0x178] sm:$0xff]  }
 0x59e   : > { %7182 = vmatpush1.bf16.msra.mxu0 %v7181_v15  ;;  %7294 = vmatpush1.bf16.msra.mxu1 %v7293_v16  ;;  %v4224_v32 = vmax.f32 %v4072_v14, %v4218_v29  ;;  %v4320_v14 = vld [vmem:[%s10724_s11 + $0x2f8] sm:$0xff]  ;;  %v4575_v15 = vld [vmem:[#allocation2 + $0x2e8] sm:$0xff]  ;;  %v7872_v59 = vld [vmem:[%s10726_s13 + $0x170] sm:$0xff]  }
 0x59f   : > { %7184 = vmatprep.subr.bf16.mxu0 %v7183_v24  ;;  %7296 = vmatprep.subr.bf16.mxu1 %v7295_v9  ;;  %v4577_v16 = vld [vmem:[#allocation2 + $0x2f8] sm:$0xff]  ;;  %v4317_v24 = vld [vmem:[%s10724_s11 + $0x2e0] sm:$0xff]  ;;  %v4319_v9 = vld [vmem:[%s10724_s11 + $0x2f0] sm:$0xff]  ;;  %v7203_v26 = vpack.c.bf16 %v4320_v14, %v4318_v13 }
 0x5a0   : > { %6521 = vmatprep.mubr.msk.f32.mxu0 %vm2002_vm10, %v4224_v32  ;;  %6522 = vmatprep.mubr.msk.f32.mxu1 %vm2002_vm10, %v4224_v32  ;;  %v7315_v27 = vpack.c.bf16 %v4577_v16, %v4575_v15  ;;  %v4579_v22 = vld [vmem:[#allocation2 + $0x308] sm:$0xff]  ;;  %v4581_v29 = vld [vmem:[#allocation2 + $0x318] sm:$0xff]  ;;  %v7207_v32 = vpack.c.bf16 %v4324_v12, %v4322_v18  ;;  %v7836_v14 = vld [vmem:[%s10726_s13] sm:$0xff]  }
 0x5a1   : > { %v7837_v15 = vld [vmem:[%s10726_s13 + $0x70] sm:$0xff]   ;;  %v7838_v16 = vld [vmem:[%s10726_s13 + $0x8] sm:$0xff]   ;;  %v7849_v12 = vld [vmem:[%s10726_s13 + $0xa0] sm:$0xff]  }
 0x5a2   : > { %7186 = vmatpush1.bf16.msra.mxu0 %v7185_v25  ;;  %7298 = vmatpush1.bf16.msra.mxu1 %v7297_v30  ;;  %v7205_v25 = vpack.c.bf16 %v4319_v9, %v4317_v24  ;;  %v7317_v30 = vpack.c.bf16 %v4576_v23, %v4574_v21  ;;  %v7842_v24 = vld [vmem:[%s10726_s13 + $0x18] sm:$0xff]   ;;  %v7843_v9 = vld [vmem:[%s10726_s13 + $0x88] sm:$0xff]   ;;  %v7848_v18 = vld [vmem:[%s10726_s13 + $0x30] sm:$0xff]  }
 0x5a3   : > { %7188 = vmatprep.subr.bf16.mxu0 %v7187_v33  ;;  %7300 = vmatprep.subr.bf16.mxu1 %v7299_v36  ;;  %v7319_v33 = vpack.c.bf16 %v4581_v29, %v4579_v22  ;;  %v4578_v36 = vld [vmem:[#allocation2 + $0x300] sm:$0xff]  ;;  %v7846_v21 = vld [vmem:[%s10726_s13 + $0x28] sm:$0xff]   ;;  %v7847_v23 = vld [vmem:[%s10726_s13 + $0x98] sm:$0xff]  }
 0x5a4   : > { %v7850_v22 = vld [vmem:[%s10726_s13 + $0x38] sm:$0xff]   ;;  %v7851_v29 = vld [vmem:[%s10726_s13 + $0xa8] sm:$0xff]  }
 0x5a5   : > { %v7875_v63 = vld [vmem:[%s10726_s13 + $0x108] sm:$0xff]  }
 0x5a6   : > { %7190 = vmatpush1.bf16.msra.mxu0 %v7189_v43  ;;  %7302 = vmatpush1.bf16.msra.mxu1 %v7301_v61  ;;  %v7321_v43 = vpack.c.bf16 %v4580_v37, %v4578_v36  ;;  %v4325_v61 = vld [vmem:[%s10724_s11 + $0x320] sm:$0xff]  ;;  %v7858_v36 = vld [vmem:[%s10726_s13 + $0x58] sm:$0xff]   ;;  %v7859_v37 = vld [vmem:[%s10726_s13 + $0xc8] sm:$0xff]  }
 0x5a7   : > { %7192 = vmatprep.subr.bf16.mxu0 %v7191_v46  ;;  %7304 = vmatprep.subr.bf16.mxu1 %v7303_v47  ;;  %v7323_v46 = vpack.c.bf16 %v4585_v41, %v4583_v40  ;;  %v4582_v47 = vld [vmem:[#allocation2 + $0x320] sm:$0xff]  ;;  %v7213_v53 = vpack.c.bf16 %v4327_v44, %v4325_v61  ;;  %v7862_v40 = vld [vmem:[%s10726_s13 + $0x68] sm:$0xff]   ;;  %v7863_v41 = vld [vmem:[%s10726_s13 + $0xd8] sm:$0xff]  }
 0x5aa   : > { %7194 = vmatpush1.bf16.msra.mxu0 %v7193_v2  ;;  %7306 = vmatpush1.bf16.msra.mxu1 %v7305_v54  ;;  %v7325_v2 = vpack.c.bf16 %v4584_v48, %v4582_v47  ;;  %v4329_v54 = vld [vmem:[%s10724_s11 + $0x340] sm:$0xff] }
 0x5ab   : > { %7196 = vmatprep.subr.bf16.mxu0 %v7195_v58  ;;  %7308 = vmatprep.subr.bf16.mxu1 %v7307_v35  ;;  %v7327_v58 = vpack.c.bf16 %v4589_v52, %v4587_v51  ;;  %v4586_v35 = vld [vmem:[#allocation2 + $0x340] sm:$0xff]  ;;  %v7217_v3 = vpack.c.bf16 %v4331_v55, %v4329_v54  ;;  %v7866_v54 = vld [vmem:[%s10726_s13 + $0x158] sm:$0xff]   ;;  %v7867_v55 = vld [vmem:[%s10726_s13 + $0xe8] sm:$0xff]  }
 0x5ac   : > { %v7865_v51 = vld [vmem:[%s10726_s13 + $0xe0] sm:$0xff]  }
 0x5ae   : > { %7198 = vmatpush1.bf16.msra.mxu0 %v7197_v34  ;;  %7310 = vmatpush1.bf16.msra.mxu1 %v7309_v4  ;;  %v7329_v34 = vpack.c.bf16 %v4588_v57, %v4586_v35  ;;  %v4333_v4 = vld [vmem:[%s10724_s11 + $0x360] sm:$0xff]  ;;  %v7870_v35 = vld [vmem:[%s10726_s13 + $0x168] sm:$0xff]   ;;  %v7871_v57 = vld [vmem:[%s10726_s13 + $0xf8] sm:$0xff]  }
 0x5af   : > { %7200 = vmatprep.subr.bf16.mxu0 %v7199_v6  ;;  %7312 = vmatprep.subr.bf16.mxu1 %v7311_v1  ;;  %v4335_v6 = vld [vmem:[%s10724_s11 + $0x370] sm:$0xff]  ;;  %v4590_v1 = vld [vmem:[#allocation2 + $0x360] sm:$0xff] }
 0x5b0   : > { %v7221_v11 = vpack.c.bf16 %v4335_v6, %v4333_v4  ;;  %v7333_v13 = vpack.c.bf16 %v4592_v7, %v4590_v1  ;;  %v7878_v4 = vld [vmem:[%s10726_s13 + $0x188] sm:$0xff]   ;;  %v7881_v6 = vld [vmem:[%s10726_s13 + $0x120] sm:$0xff]   ;;  %v7882_v1 = vld [vmem:[%s10726_s13 + $0x198] sm:$0xff]  }
 0x5b1   : > { %v7883_v7 = vld [vmem:[%s10726_s13 + $0x128] sm:$0xff]  }
 0x5b2   : > { %7202 = vmatpush1.bf16.msra.mxu0 %v7201_v19  ;;  %7314 = vmatpush1.bf16.msra.mxu1 %v7313_v17  ;;  %v7839_v19 = vld [vmem:[%s10726_s13 + $0x78] sm:$0xff]   ;;  %v7841_v17 = vld [vmem:[%s10726_s13 + $0x80] sm:$0xff]  }
 0x5b3   : > { %7204 = vmatprep.subr.bf16.mxu0 %v7203_v26  ;;  %7316 = vmatprep.subr.bf16.mxu1 %v7315_v27  ;;  %v7844_v26 = vld [vmem:[%s10726_s13 + $0x20] sm:$0xff]   ;;  %v7845_v27 = vld [vmem:[%s10726_s13 + $0x90] sm:$0xff]  }
 0x5b6   : > { %7206 = vmatpush1.bf16.msra.mxu0 %v7205_v25  ;;  %7318 = vmatpush1.bf16.msra.mxu1 %v7317_v30  ;;  %v7852_v25 = vld [vmem:[%s10726_s13 + $0x40] sm:$0xff]   ;;  %v7853_v30 = vld [vmem:[%s10726_s13 + $0xb0] sm:$0xff]  }
 0x5b7   : > { %7208 = vmatprep.subr.bf16.mxu0 %v7207_v32  ;;  %7320 = vmatprep.subr.bf16.mxu1 %v7319_v33  ;;  %v7856_v32 = vld [vmem:[%s10726_s13 + $0x50] sm:$0xff]   ;;  %v7857_v33 = vld [vmem:[%s10726_s13 + $0xc0] sm:$0xff]  }
 0x5ba   : > { %7210 = vmatpush1.bf16.msra.mxu0 %v7209_v42  ;;  %7322 = vmatpush1.bf16.msra.mxu1 %v7321_v43 }
 0x5bb   : > { %7212 = vmatprep.subr.bf16.mxu0 %v7211_v45  ;;  %7324 = vmatprep.subr.bf16.mxu1 %v7323_v46 }
 0x5be   : > { %7214 = vmatpush1.bf16.msra.mxu0 %v7213_v53  ;;  %7326 = vmatpush1.bf16.msra.mxu1 %v7325_v2 }
 0x5bf   : > { %7216 = vmatprep.subr.bf16.mxu0 %v7215_v56  ;;  %7328 = vmatprep.subr.bf16.mxu1 %v7327_v58  ;;  %v7868_v56 = vld [vmem:[%s10726_s13 + $0x160] sm:$0xff]   ;;  %v7869_v58 = vld [vmem:[%s10726_s13 + $0xf0] sm:$0xff]  }
 0x5c2   : > { %7218 = vmatpush1.bf16.msra.mxu0 %v7217_v3  ;;  %7330 = vmatpush1.bf16.msra.mxu1 %v7329_v34  ;;  %v7876_v3 = vld [vmem:[%s10726_s13 + $0x180] sm:$0xff]   ;;  %v7877_v34 = vld [vmem:[%s10726_s13 + $0x110] sm:$0xff]  }
 0x5c3   : > { %7220 = vmatprep.subr.bf16.mxu0 %v7219_v5  ;;  %7332 = vmatprep.subr.bf16.mxu1 %v7331_v10  ;;  %v7879_v5 = vld [vmem:[%s10726_s13 + $0x118] sm:$0xff]   ;;  %v7880_v10 = vld [vmem:[%s10726_s13 + $0x190] sm:$0xff]  }
 0x5c6   : > { %7222 = vmatpush1.bf16.msra.mxu0 %v7221_v11  ;;  %7334 = vmatpush1.bf16.msra.mxu1 %v7333_v13  ;;  %v7884_v11 = vld [vmem:[%s10726_s13 + $0x1a0] sm:$0xff]   ;;  %v7885_v13 = vld [vmem:[%s10726_s13 + $0x130] sm:$0xff]  }
 0x5c7   : > { %5018 = vmatprep.subr.bf16.mxu1 %v8069_v0  ;;  %4892 = vmatprep.subr.bf16.mxu0 %v8069_v0 }
 0x5c9   : > { %4476 = vmatmul.mubr.f32.vlgmr.msra.gmra.mrb[26].mxu0 %v10079_v28  ;;  %4730 = vmatmul.mubr.f32.vlgmr.msra.gmra.mrb[38].mxu1 %v10079_v28  ;;  %v7840_v28 = vld [vmem:[%s10726_s13 + $0x10] sm:$0xff]  }
 0x5ca   : > { %5019 = vmatpush1.bf16.msra.mxu1 %v7836_v14  ;;  %4893 = vmatpush1.bf16.msra.mxu0 %v7837_v15  ;;  %v7886_v14 = vld [vmem:[%s10726_s13 + $0x1a8] sm:$0xff]   ;;  %v7887_v15 = vld [vmem:[%s10726_s13 + $0x138] sm:$0xff]  }
 0x5cb   : > { %5020 = vmatprep.subr.bf16.mxu1 %v8069_v0  ;;  %4894 = vmatprep.subr.bf16.mxu0 %v8069_v0 }
 0x5ce   : > { %5021 = vmatpush1.bf16.msra.mxu1 %v7838_v16  ;;  %4895 = vmatpush1.bf16.msra.mxu0 %v7839_v19  ;;  %v7888_v16 = vld [vmem:[%s10726_s13 + $0x1b0] sm:$0xff]   ;;  %v7889_v19 = vld [vmem:[%s10726_s13 + $0x140] sm:$0xff]  }
 0x5cf   : > { %5022 = vmatprep.subr.bf16.mxu1 %v8069_v0  ;;  %4896 = vmatprep.subr.bf16.mxu0 %v8069_v0 }
 0x5d2   : > { %5023 = vmatpush1.bf16.msra.mxu1 %v7840_v28  ;;  %4897 = vmatpush1.bf16.msra.mxu0 %v7841_v17  ;;  %v7890_v28 = vld [vmem:[%s10726_s13 + $0x1b8] sm:$0xff]   ;;  %v7891_v17 = vld [vmem:[%s10726_s13 + $0x148] sm:$0xff]  }
 0x5d3   : > { %5024 = vmatprep.subr.bf16.mxu1 %v8069_v0  ;;  %4898 = vmatprep.subr.bf16.mxu0 %v8069_v0 }
 0x5d6   : > { %5025 = vmatpush1.bf16.msra.mxu1 %v7842_v24  ;;  %4899 = vmatpush1.bf16.msra.mxu0 %v7843_v9  ;;  %v7892_v24 = vld [vmem:[%s10726_s13 + $0x230] sm:$0xff]  }
 0x5d7   : > { %5026 = vmatprep.subr.bf16.mxu1 %v8069_v0  ;;  %4900 = vmatprep.subr.bf16.mxu0 %v8069_v0 }
 0x5da   : > { %5027 = vmatpush1.bf16.msra.mxu1 %v7844_v26  ;;  %4901 = vmatpush1.bf16.msra.mxu0 %v7845_v27  ;;  %v7893_v27 = vld [vmem:[%s10726_s13 + $0x1c0] sm:$0xff]  }
 0x5db   : > { %5028 = vmatprep.subr.bf16.mxu1 %v8069_v0  ;;  %4902 = vmatprep.subr.bf16.mxu0 %v8069_v0 }
 0x5de   : > { %5029 = vmatpush1.bf16.msra.mxu1 %v7846_v21  ;;  %4903 = vmatpush1.bf16.msra.mxu0 %v7847_v23 }
 0x5df   : > { %5030 = vmatprep.subr.bf16.mxu1 %v8069_v0  ;;  %4904 = vmatprep.subr.bf16.mxu0 %v8069_v0 }
 0x5e2   : > { %5031 = vmatpush1.bf16.msra.mxu1 %v7848_v18  ;;  %4905 = vmatpush1.bf16.msra.mxu0 %v7849_v12  ;;  %v7894_v18 = vld [vmem:[%s10726_s13 + $0x238] sm:$0xff]   ;;  %v7895_v12 = vld [vmem:[%s10726_s13 + $0x1c8] sm:$0xff]  }
 0x5e3   : > { %5032 = vmatprep.subr.bf16.mxu1 %v8069_v0  ;;  %4906 = vmatprep.subr.bf16.mxu0 %v8069_v0 }
 0x5e6   : > { %5033 = vmatpush1.bf16.msra.mxu1 %v7850_v22  ;;  %4907 = vmatpush1.bf16.msra.mxu0 %v7851_v29  ;;  %v7896_v22 = vld [vmem:[%s10726_s13 + $0x240] sm:$0xff]   ;;  %v7897_v29 = vld [vmem:[%s10726_s13 + $0x1d0] sm:$0xff]  }
 0x5e7   : > { %5034 = vmatprep.subr.bf16.mxu1 %v8069_v0  ;;  %4908 = vmatprep.subr.bf16.mxu0 %v8069_v0 }
 0x5ea   : > { %5035 = vmatpush1.bf16.msra.mxu1 %v7852_v25  ;;  %4909 = vmatpush1.bf16.msra.mxu0 %v7853_v30  ;;  %v7898_v25 = vld [vmem:[%s10726_s13 + $0x248] sm:$0xff]   ;;  %v7899_v30 = vld [vmem:[%s10726_s13 + $0x1d8] sm:$0xff]  }
 0x5eb   : > { %5036 = vmatprep.subr.bf16.mxu1 %v8069_v0  ;;  %4910 = vmatprep.subr.bf16.mxu0 %v8069_v0 }
 0x5ee   : > { %5037 = vmatpush1.bf16.msra.mxu1 %v7854_v31  ;;  %4911 = vmatpush1.bf16.msra.mxu0 %v7855_v20  ;;  %v7900_v31 = vld [vmem:[%s10726_s13 + $0x250] sm:$0xff]   ;;  %v7901_v20 = vld [vmem:[%s10726_s13 + $0x1e0] sm:$0xff]  }
 0x5ef   : > { %5038 = vmatprep.subr.bf16.mxu1 %v8069_v0  ;;  %4912 = vmatprep.subr.bf16.mxu0 %v8069_v0 }
 0x5f2   : > { %5039 = vmatpush1.bf16.msra.mxu1 %v7856_v32  ;;  %4913 = vmatpush1.bf16.msra.mxu0 %v7857_v33  ;;  %v7902_v32 = vld [vmem:[%s10726_s13 + $0x258] sm:$0xff]   ;;  %v7903_v33 = vld [vmem:[%s10726_s13 + $0x1e8] sm:$0xff]  }
 0x5f3   : > { %5040 = vmatprep.subr.bf16.mxu1 %v8069_v0  ;;  %4914 = vmatprep.subr.bf16.mxu0 %v8069_v0 }
 0x5f6   : > { %5041 = vmatpush1.bf16.msra.mxu1 %v7858_v36  ;;  %4915 = vmatpush1.bf16.msra.mxu0 %v7859_v37  ;;  %v7904_v36 = vld [vmem:[%s10726_s13 + $0x260] sm:$0xff]   ;;  %v7905_v37 = vld [vmem:[%s10726_s13 + $0x1f0] sm:$0xff]  }
 0x5f7   : > { %5042 = vmatprep.subr.bf16.mxu1 %v8069_v0  ;;  %4916 = vmatprep.subr.bf16.mxu0 %v8069_v0 }
 0x5fa   : > { %5043 = vmatpush1.bf16.msra.mxu1 %v7860_v38  ;;  %4917 = vmatpush1.bf16.msra.mxu0 %v7861_v39  ;;  %v7906_v38 = vld [vmem:[%s10726_s13 + $0x268] sm:$0xff]   ;;  %v7907_v39 = vld [vmem:[%s10726_s13 + $0x1f8] sm:$0xff]  }
 0x5fb   : > { %5044 = vmatprep.subr.bf16.mxu1 %v8069_v0  ;;  %4918 = vmatprep.subr.bf16.mxu0 %v8069_v0 }
 0x5fe   : > { %5045 = vmatpush1.bf16.msra.mxu1 %v7862_v40  ;;  %4919 = vmatpush1.bf16.msra.mxu0 %v7863_v41  ;;  %v7908_v40 = vld [vmem:[%s10726_s13 + $0x270] sm:$0xff]   ;;  %v7909_v41 = vld [vmem:[%s10726_s13 + $0x200] sm:$0xff]  }
 0x5ff   : > { %5339 = vmatprep.subr.bf16.mxu1 %v8069_v0  ;;  %5179 = vmatprep.subr.bf16.mxu0 %v8069_v0 }
 0x69c   : > { %v4477_v42 = vpop.f32.mrb[26].mxu0  ;;  %v4731_v43 = vpop.f32.mrb[38].mxu1 }
 0x69d   : > { %v4736_v61 = vmax.f32 %v4477_v42, %v4731_v43  ;;  %v4479_v44 = vpop.f32.mrb[27].mxu0  ;;  %v4733_v45 = vpop.f32.mrb[39].mxu1  ;;  %v7910_v42 = vld [vmem:[%s10726_s13 + $0x278] sm:$0xff]   ;;  %v7911_v43 = vld [vmem:[%s10726_s13 + $0x208] sm:$0xff]  }
 0x69e   : > { %v4737_v46 = vmax.f32 %v4479_v44, %v4733_v45  ;;  %v7913_v44 = vld [vmem:[%s10726_s13 + $0x210] sm:$0xff]   ;;  %v7914_v45 = vld [vmem:[%s10726_s13 + $0x288] sm:$0xff]  }
 0x69f   : > { %v10301_v47 = vpack.c.bf16 %v4736_v61, %v4736_v61  ;;  %v7912_v61 = vld [vmem:[%s10726_s13 + $0x280] sm:$0xff]  }
 0x6a0   : > { %v10303_v48 = vpack.c.bf16 %v4737_v46, %v4737_v46  ;;  %v7915_v46 = vld [vmem:[%s10726_s13 + $0x218] sm:$0xff]  }
 0x6a1   : > { %v10318_v52 = vshrl.u32 %v10301_v47, 16  ;;  %v5089_v21 = vrot.slane %v10301_v47, 1 }
 0x6a2   : > { %6580 = vmatprep.mubr.msk.bf16.mxu1 %vm4888_vm12, %v10303_v48  ;;  %v10311_v50 = vshrl.u32 %v10303_v48, 16  ;;  %v5090_v53 = vrot.slane %v10303_v48, 1  ;;  %v5410_v23 = vrot.slane %v10303_v48, 2 }
 0x6a3   : > { %5051 = vmatmul.mubr.bf16.vlgmr.msra.gmra.mrb[40].mxu1 %v10301_v47  ;;  %v5249_v9 = vrot.slane %v10318_v52, 1 }
 0x6a4   : > { %5340 = vmatpush1.bf16.msra.mxu1 %v7864_v49  ;;  %6565 = vmatprep.mubr.msk.bf16.mxu0 %vm4888_vm12, %v10311_v50  ;;  %v5250_v2 = vrot.slane %v10311_v50, 1  ;;  %v5570_v26 = vrot.slane %v10311_v50, 2  ;;  %v7916_v49 = vld [vmem:[%s10726_s13 + $0x290] sm:$0xff]   ;;  %v7917_v50 = vld [vmem:[%s10726_s13 + $0x220] sm:$0xff]  }
 0x6a5   : > { %4925 = vmatmul.mubr.bf16.vlgmr.msra.gmra.mrb[28].mxu0 %v10318_v52  ;;  %5341 = vmatprep.subr.bf16.mxu1 %v8069_v0 }
 0x6a6   : > { %5180 = vmatpush1.bf16.msra.mxu0 %v7865_v51  ;;  %6623 = vmatprep.mubr.msk.bf16.mxu0 %vm4888_vm12, %v5090_v53  ;;  %v7918_v51 = vld [vmem:[%s10726_s13 + $0x298] sm:$0xff]   ;;  %v7919_v53 = vld [vmem:[%s10726_s13 + $0x228] sm:$0xff]  }
 0x6a7   : > { %6666 = vmatprep.mubr.msk.bf16.mxu1 %vm4888_vm12, %v5250_v2  ;;  %5181 = vmatprep.subr.bf16.mxu0 %v8069_v0  ;;  %v5569_v2 = vrot.slane %v10318_v52, 2  ;;  %v7921_v52 = vld [vmem:[%s10726_s13 + $0x2a8] sm:$0xff]  }
 0x6a8   : > { %5342 = vmatpush1.bf16.msra.mxu1 %v7866_v54  ;;  %v7920_v54 = vld [vmem:[%s10726_s13 + $0x2a0] sm:$0xff]  }
 0x6a9   : > { %5343 = vmatprep.subr.bf16.mxu1 %v8069_v0 }
 0x6aa   : > { %5182 = vmatpush1.bf16.msra.mxu0 %v7867_v55  ;;  %v5409_v55 = vrot.slane %v10301_v47, 2 }
 0x6ab   : > { %5183 = vmatprep.subr.bf16.mxu0 %v8069_v0 }
 0x6ac   : > { %5344 = vmatpush1.bf16.msra.mxu1 %v7868_v56  ;;  %v5730_v56 = vrot.slane %v10303_v48, 3  ;;  %v7923_v48 = vld [vmem:[%s10726_s13 + $0x2b8] sm:$0xff]  }
 0x6ad   : > { %5345 = vmatprep.subr.bf16.mxu1 %v8069_v0 }
 0x6ae   : > { %5184 = vmatpush1.bf16.msra.mxu0 %v7869_v58  ;;  %v7922_v58 = vld [vmem:[%s10726_s13 + $0x2b0] sm:$0xff]  }
 0x6af   : > { %5185 = vmatprep.subr.bf16.mxu0 %v8069_v0 }
 0x6b0   : > { %5346 = vmatpush1.bf16.msra.mxu1 %v7870_v35  ;;  %v7924_v35 = vld [vmem:[%s10726_s13 + $0x2c0] sm:$0xff]  }
 0x6b1   : > { %5347 = vmatprep.subr.bf16.mxu1 %v8069_v0 }
 0x6b2   : > { %5186 = vmatpush1.bf16.msra.mxu0 %v7871_v57  ;;  %v7925_v57 = vld [vmem:[%s10726_s13 + $0x2c8] sm:$0xff]  }
 0x6b3   : > { %5187 = vmatprep.subr.bf16.mxu0 %v8069_v0 }
 0x6b4   : > { %5348 = vmatpush1.bf16.msra.mxu1 %v7872_v59  ;;  %v7926_v59 = vld [vmem:[%s10726_s13 + $0x2d0] sm:$0xff]  }
 0x6b5   : > { %5349 = vmatprep.subr.bf16.mxu1 %v8069_v0 }
 0x6b6   : > { %5188 = vmatpush1.bf16.msra.mxu0 %v7873_v60  ;;  %v7927_v60 = vld [vmem:[%s10726_s13 + $0x2d8] sm:$0xff]  }
 0x6b7   : > { %5189 = vmatprep.subr.bf16.mxu0 %v8069_v0 }
 0x6b8   : > { %5350 = vmatpush1.bf16.msra.mxu1 %v7874_v62  ;;  %v7928_v62 = vld [vmem:[%s10726_s13 + $0x2e0] sm:$0xff]  }
 0x6b9   : > { %5351 = vmatprep.subr.bf16.mxu1 %v8069_v0 }
 0x6ba   : > { %5190 = vmatpush1.bf16.msra.mxu0 %v7875_v63  ;;  %v7929_v63 = vld [vmem:[%s10726_s13 + $0x2e8] sm:$0xff]  }
 0x6bb   : > { %5191 = vmatprep.subr.bf16.mxu0 %v8069_v0 }
 0x6bc   : > { %5352 = vmatpush1.bf16.msra.mxu1 %v7876_v3  ;;  %v7930_v3 = vld [vmem:[%s10726_s13 + $0x2f0] sm:$0xff]  }
 0x6bd   : > { %5353 = vmatprep.subr.bf16.mxu1 %v8069_v0 }
 0x6be   : > { %5192 = vmatpush1.bf16.msra.mxu0 %v7877_v34  ;;  %v7931_v34 = vld [vmem:[%s10726_s13 + $0x2f8] sm:$0xff]  }
 0x6bf   : > { %5193 = vmatprep.subr.bf16.mxu0 %v8069_v0 }
 0x6c0   : > { %5354 = vmatpush1.bf16.msra.mxu1 %v7878_v4  ;;  %v7932_v4 = vld [vmem:[%s10726_s13 + $0x300] sm:$0xff]  }
 0x6c1   : > { %5355 = vmatprep.subr.bf16.mxu1 %v8069_v0 }
 0x6c2   : > { %5194 = vmatpush1.bf16.msra.mxu0 %v7879_v5  ;;  %v7933_v5 = vld [vmem:[%s10726_s13 + $0x308] sm:$0xff]  }
 0x6c3   : > { %5195 = vmatprep.subr.bf16.mxu0 %v8069_v0 }
 0x6c4   : > { %5356 = vmatpush1.bf16.msra.mxu1 %v7880_v10  ;;  %v5729_v10 = vrot.slane %v10301_v47, 3 }
 0x6c5   : > { %5357 = vmatprep.subr.bf16.mxu1 %v8069_v0 }
 0x6c6   : > { %5196 = vmatpush1.bf16.msra.mxu0 %v7881_v6  ;;  %v7934_v6 = vld [vmem:[%s10728_s15] sm:$0xff]  }
 0x6c7   : > { %5197 = vmatprep.subr.bf16.mxu0 %v8069_v0 }
 0x6c8   : > { %5358 = vmatpush1.bf16.msra.mxu1 %v7882_v1  ;;  %v7935_v1 = vld [vmem:[%s10728_s15 + $0x8] sm:$0xff]  }
 0x6c9   : > { %5359 = vmatprep.subr.bf16.mxu1 %v8069_v0 }
 0x6ca   : > { %5198 = vmatpush1.bf16.msra.mxu0 %v7883_v7 }
 0x6cb   : > { %5199 = vmatprep.subr.bf16.mxu0 %v8069_v0 }
 0x6cc   : > { %5360 = vmatpush1.bf16.msra.mxu1 %v7884_v11 }
 0x6cd   : > { %5361 = vmatprep.subr.bf16.mxu1 %v8069_v0 }
 0x6ce   : > { %5200 = vmatpush1.bf16.msra.mxu0 %v7885_v13 }
 0x6cf   : > { %5201 = vmatprep.subr.bf16.mxu0 %v8069_v0 }
 0x6d0   : > { %5362 = vmatpush1.bf16.msra.mxu1 %v7886_v14 }
 0x6d1   : > { %5363 = vmatprep.subr.bf16.mxu1 %v8069_v0 }
 0x6d2   : > { %5202 = vmatpush1.bf16.msra.mxu0 %v7887_v15 }
 0x6d3   : > { %5203 = vmatprep.subr.bf16.mxu0 %v8069_v0 }
 0x6d4   : > { %5364 = vmatpush1.bf16.msra.mxu1 %v7888_v16 }
 0x6d5   : > { %5365 = vmatprep.subr.bf16.mxu1 %v8069_v0 }
 0x6d6   : > { %5204 = vmatpush1.bf16.msra.mxu0 %v7889_v19 }
 0x6d7   : > { %5205 = vmatprep.subr.bf16.mxu0 %v8069_v0 }
 0x6d8   : > { %5366 = vmatpush1.bf16.msra.mxu1 %v7890_v28  ;;  %v7936_v28 = vld [vmem:[%s10728_s15 + $0x10] sm:$0xff]  }
 0x6d9   : > { %5659 = vmatprep.subr.bf16.mxu1 %v8069_v0 }
 0x6da   : > { %5206 = vmatpush1.bf16.msra.mxu0 %v7891_v17  ;;  %v7937_v17 = vld [vmem:[%s10728_s15 + $0x18] sm:$0xff]  }
 0x6db   : > { %5372 = vmatmul.mubr.bf16.vlgmr.msra.gmra.mrb[44].mxu1 %v5249_v9  ;;  %5499 = vmatprep.subr.bf16.mxu0 %v8069_v0 }
 0x6dc   : > { %5660 = vmatpush1.bf16.msra.mxu1 %v7892_v24  ;;  %6752 = vmatprep.mubr.msk.bf16.mxu1 %vm4888_vm12, %v5570_v26 }
 0x6dd   : > { %5212 = vmatmul.mubr.bf16.vlgmr.msra.gmra.mrb[32].mxu0 %v5089_v21  ;;  %5661 = vmatprep.subr.bf16.mxu1 %v8069_v0 }
 0x6de   : > { %5500 = vmatpush1.bf16.msra.mxu0 %v7893_v27  ;;  %6709 = vmatprep.mubr.msk.bf16.mxu0 %vm4888_vm12, %v5410_v23 }
 0x6df   : > { %5501 = vmatprep.subr.bf16.mxu0 %v8069_v0 }
 0x6e0   : > { %5662 = vmatpush1.bf16.msra.mxu1 %v7894_v18 }
 0x6e1   : > { %5663 = vmatprep.subr.bf16.mxu1 %v8069_v0 }
 0x6e2   : > { %5502 = vmatpush1.bf16.msra.mxu0 %v7895_v12 }
 0x6e3   : > { %5503 = vmatprep.subr.bf16.mxu0 %v8069_v0 }
 0x6e4   : > { %5664 = vmatpush1.bf16.msra.mxu1 %v7896_v22 }
 0x6e5   : > { %5665 = vmatprep.subr.bf16.mxu1 %v8069_v0 }
 0x6e6   : > { %5504 = vmatpush1.bf16.msra.mxu0 %v7897_v29 }
 0x6e7   : > { %5505 = vmatprep.subr.bf16.mxu0 %v8069_v0 }
 0x6e8   : > { %5666 = vmatpush1.bf16.msra.mxu1 %v7898_v25 }
 0x6e9   : > { %5667 = vmatprep.subr.bf16.mxu1 %v8069_v0 }
 0x6ea   : > { %5506 = vmatpush1.bf16.msra.mxu0 %v7899_v30 }
 0x6eb   : > { %5507 = vmatprep.subr.bf16.mxu0 %v8069_v0 }
 0x6ec   : > { %5668 = vmatpush1.bf16.msra.mxu1 %v7900_v31 }
 0x6ed   : > { %5669 = vmatprep.subr.bf16.mxu1 %v8069_v0 }
 0x6ee   : > { %5508 = vmatpush1.bf16.msra.mxu0 %v7901_v20 }
 0x6ef   : > { %5509 = vmatprep.subr.bf16.mxu0 %v8069_v0 }
 0x6f0   : > { %5670 = vmatpush1.bf16.msra.mxu1 %v7902_v32 }
 0x6f1   : > { %5671 = vmatprep.subr.bf16.mxu1 %v8069_v0 }
 0x6f2   : > { %5510 = vmatpush1.bf16.msra.mxu0 %v7903_v33 }
 0x6f3   : > { %5511 = vmatprep.subr.bf16.mxu0 %v8069_v0 }
 0x6f4   : > { %5672 = vmatpush1.bf16.msra.mxu1 %v7904_v36 }
 0x6f5   : > { %5673 = vmatprep.subr.bf16.mxu1 %v8069_v0 }
 0x6f6   : > { %5512 = vmatpush1.bf16.msra.mxu0 %v7905_v37 }
 0x6f7   : > { %5513 = vmatprep.subr.bf16.mxu0 %v8069_v0 }
 0x6f8   : > { %5674 = vmatpush1.bf16.msra.mxu1 %v7906_v38 }
 0x6f9   : > { %5675 = vmatprep.subr.bf16.mxu1 %v8069_v0 }
 0x6fa   : > { %5514 = vmatpush1.bf16.msra.mxu0 %v7907_v39 }
 0x6fb   : > { %5515 = vmatprep.subr.bf16.mxu0 %v8069_v0 }
 0x6fc   : > { %5676 = vmatpush1.bf16.msra.mxu1 %v7908_v40  ;;  %v5860_v40 = vld [vmem:[%s10727_s14] sm:$0x1] }
 0x6fd   : > { %5677 = vmatprep.subr.bf16.mxu1 %v8069_v0 }
 0x6fe   : > { %5516 = vmatpush1.bf16.msra.mxu0 %v7909_v41 }
 0x6ff   : > { %5517 = vmatprep.subr.bf16.mxu0 %v8069_v0 }
 0x700   : > { %5678 = vmatpush1.bf16.msra.mxu1 %v7910_v42 }
 0x701   : > { %5679 = vmatprep.subr.bf16.mxu1 %v8069_v0 }
 0x702   : > { %5518 = vmatpush1.bf16.msra.mxu0 %v7911_v43 }
 0x703   : > { %5519 = vmatprep.subr.bf16.mxu0 %v8069_v0 }
 0x704   : > { %5680 = vmatpush1.bf16.msra.mxu1 %v7912_v61 }
 0x705   : > { %5681 = vmatprep.subr.bf16.mxu1 %v8069_v0 }
 0x706   : > { %5520 = vmatpush1.bf16.msra.mxu0 %v7913_v44 }
 0x707   : > { %5521 = vmatprep.subr.bf16.mxu0 %v8069_v0 }
 0x708   : > { %5682 = vmatpush1.bf16.msra.mxu1 %v7914_v45 }
 0x709   : > { %5683 = vmatprep.subr.bf16.mxu1 %v8069_v0 }
 0x70a   : > { %5522 = vmatpush1.bf16.msra.mxu0 %v7915_v46 }
 0x70b   : > { %5523 = vmatprep.subr.bf16.mxu0 %v8069_v0 }
 0x70c   : > { %5684 = vmatpush1.bf16.msra.mxu1 %v7916_v49 }
 0x70d   : > { %5685 = vmatprep.subr.bf16.mxu1 %v8069_v0 }
 0x70e   : > { %5524 = vmatpush1.bf16.msra.mxu0 %v7917_v50 }
 0x70f   : > { %5525 = vmatprep.subr.bf16.mxu0 %v8069_v0 }
 0x710   : > { %5686 = vmatpush1.bf16.msra.mxu1 %v7918_v51 }
 0x711   : > { %6811 = vmatprep.subr.bf16.mxu1 %v8071_v8 }
 0x712   : > { %5526 = vmatpush1.bf16.msra.mxu0 %v7919_v53 }
 0x713   : > { %5692 = vmatmul.mubr.bf16.vlgmr.msra.gmra.mrb[48].mxu1 %v5569_v2  ;;  %5819 = vmatprep.subr.bf16.mxu0 %v8069_v0 }
 0x714   : > { %6812 = vmatpush3.bf16.msra.mxu1 %v7934_v6  ;;  %6819 = vmatprep.mubr.msk.bf16.mxu1 %vm8072_vm13, %v8071_v8 }
 0x715   : > { %5532 = vmatmul.mubr.bf16.vlgmr.msra.gmra.mrb[36].mxu0 %v5409_v55  ;;  %6813 = vmatprep.subr.bf16.mxu1 %v8071_v8 }
 0x716   : > { %5820 = vmatpush1.bf16.msra.mxu0 %v7920_v54  ;;  %6795 = vmatprep.mubr.msk.bf16.mxu0 %vm4888_vm12, %v5730_v56 }
 0x717   : > { %5821 = vmatprep.subr.bf16.mxu0 %v8069_v0 }
 0x718   : > { %6814 = vmatpush3.bf16.msra.mxu1 %v7935_v1 }
 0x719   : > { %6815 = vmatprep.subr.bf16.mxu1 %v8071_v8 }
 0x71a   : > { %5822 = vmatpush1.bf16.msra.mxu0 %v7921_v52 }
 0x71b   : > { %5823 = vmatprep.subr.bf16.mxu0 %v8069_v0 }
 0x71c   : > { %6816 = vmatpush3.bf16.msra.mxu1 %v7936_v28 }
 0x71d   : > { %6817 = vmatprep.subr.bf16.mxu1 %v8071_v8 }
 0x71e   : > { %5824 = vmatpush1.bf16.msra.mxu0 %v7922_v58 }
 0x71f   : > { %5825 = vmatprep.subr.bf16.mxu0 %v8069_v0 }
 0x720   : > { %6818 = vmatpush3.bf16.msra.mxu1 %v7937_v17 }
 0x722   : > { %5826 = vmatpush1.bf16.msra.mxu0 %v7923_v48 }
 0x723   : > { %5827 = vmatprep.subr.bf16.mxu0 %v8069_v0 }
 0x726   : > { %5828 = vmatpush1.bf16.msra.mxu0 %v7924_v35 }
 0x727   : > { %5829 = vmatprep.subr.bf16.mxu0 %v8069_v0 }
 0x72a   : > { %5830 = vmatpush1.bf16.msra.mxu0 %v7925_v57 }
 0x72b   : > { %5831 = vmatprep.subr.bf16.mxu0 %v8069_v0 }
 0x72e   : > { %5832 = vmatpush1.bf16.msra.mxu0 %v7926_v59 }
 0x72f   : > { %5833 = vmatprep.subr.bf16.mxu0 %v8069_v0 }
 0x732   : > { %5834 = vmatpush1.bf16.msra.mxu0 %v7927_v60 }
 0x733   : > { %5835 = vmatprep.subr.bf16.mxu0 %v8069_v0 }
 0x736   : > { %5836 = vmatpush1.bf16.msra.mxu0 %v7928_v62 }
 0x737   : > { %5837 = vmatprep.subr.bf16.mxu0 %v8069_v0 }
 0x73a   : > { %5838 = vmatpush1.bf16.msra.mxu0 %v7929_v63 }
 0x73b   : > { %5839 = vmatprep.subr.bf16.mxu0 %v8069_v0 }
 0x73e   : > { %5840 = vmatpush1.bf16.msra.mxu0 %v7930_v3 }
 0x73f   : > { %5841 = vmatprep.subr.bf16.mxu0 %v8069_v0 }
 0x742   : > { %5842 = vmatpush1.bf16.msra.mxu0 %v7931_v34 }
 0x743   : > { %5843 = vmatprep.subr.bf16.mxu0 %v8069_v0 }
 0x746   : > { %5844 = vmatpush1.bf16.msra.mxu0 %v7932_v4 }
 0x747   : > { %5845 = vmatprep.subr.bf16.mxu0 %v8069_v0 }
 0x74a   : > { %5846 = vmatpush1.bf16.msra.mxu0 %v7933_v5 }
 0x74d   : > { %5852 = vmatmul.mubr.bf16.vlgmr.msra.gmra.mrb[40].mxu0 %v5729_v10 }
 0x776   : > { %v5052_v7 = vpop.f32.mrb[40].mxu1 }
 0x777   : > { %v5054_v0 = vpop.f32.mrb[41].mxu1 }
 0x778   : > { %v4926_v11 = vpop.f32.mrb[28].mxu0  ;;  %v5055_v13 = vpop.f32.mrb[42].mxu1 }
 0x779   : > { %v5053_v47 = vadd.f32 %v5052_v7, %v4926_v11  ;;  %v4928_v14 = vpop.f32.mrb[29].mxu0  ;;  %v5056_v15 = vpop.f32.mrb[43].mxu1 }
 0x77a   : > { %v4929_v16 = vpop.f32.mrb[30].mxu0 }
 0x77b   : > { %v4930_v19 = vpop.f32.mrb[31].mxu0 }
 0x7ae   : > { %v5373_v24 = vpop.f32.mrb[44].mxu1 }
 0x7af   : > { %v5375_v9 = vpop.f32.mrb[45].mxu1 }
 0x7b0   : > { %v5213_v26 = vpop.f32.mrb[32].mxu0  ;;  %v5376_v27 = vpop.f32.mrb[46].mxu1 }
 0x7b1   : > { %v5219_v21 = vadd.f32 %v5213_v26, %v5053_v47  ;;  %v5215_v23 = vpop.f32.mrb[33].mxu0  ;;  %v5377_v18 = vpop.f32.mrb[47].mxu1 }
 0x7b2   : > { %v5216_v12 = vpop.f32.mrb[34].mxu0 }
 0x7b3   : > { %v5217_v22 = vpop.f32.mrb[35].mxu0  ;;  %v5379_v29 = vadd.f32 %v5373_v24, %v5219_v21 }
 0x7e6   : > { %v5693_v25 = vpop.f32.mrb[48].mxu1 }
 0x7e7   : > { %v5695_v30 = vpop.f32.mrb[49].mxu1 }
 0x7e8   : > { %v5533_v31 = vpop.f32.mrb[36].mxu0  ;;  %v5696_v20 = vpop.f32.mrb[50].mxu1 }
 0x7e9   : > { %v5539_v32 = vadd.f32 %v5533_v31, %v5379_v29  ;;  %v5535_v33 = vpop.f32.mrb[37].mxu0  ;;  %v5697_v36 = vpop.f32.mrb[51].mxu1 }
 0x7ea   : > { %v5536_v37 = vpop.f32.mrb[38].mxu0 }
 0x7eb   : > { %v5537_v8 = vpop.f32.mrb[39].mxu0  ;;  %v5699_v38 = vadd.f32 %v5693_v25, %v5539_v32 }
 0x820   : > { %v5853_v39 = vpop.f32.mrb[40].mxu0 }
 0x821   : > { %v5859_v41 = vadd.f32 %v5853_v39, %v5699_v38  ;;  %v5855_v42 = vpop.f32.mrb[41].mxu0 }
 0x822   : > { %v5856_v43 = vpop.f32.mrb[42].mxu0 }
 0x823   : > { %v5861_v61 = vadd.f32 %v5860_v40, %v5859_v41  ;;  %v5857_v44 = vpop.f32.mrb[43].mxu0 }
 0x825   : > { %v5862_v45 = vmax.f32 %v5861_v61, 0.0 }
 0x827   : > { %v5865_v46 = vpack.c.bf16 %v5862_v45, %v5862_v45  ;;  %5864 = vst.msk [vmem:[%s592_s23] sm:$0x1] %vm5863_vm14, %v5862_v45 }
 0x829   : > { %6820 = vmatmul.mubr.msk.bf16.vlgmr.msra.gmra.mrb[52].mxu1 %vm2002_vm10, %v5865_v46 }
 0x82a   : > { %7979 = shalt.err (!%p7976_p7)
}
 0x82b   : > { %s7980_s27 = scalar_lea.hbm %s10641_s29, 16  ;;  %s7984_s25 = scalar_lea.hbm %s10731_s18, 32 }
 0x82c   : > { %p7981_p8 = scmp.ne.s32.totalorder %s10641_s29, %s7980_s27  ;;  %p7985_p1 = scmp.lt.u32.totalorder %s10641_s29, %s10731_s18 }
 0x82d   : > { %p7986_p0 = scmp.lt.u32.totalorder %s7984_s25, %s7980_s27  ;;  %p7988_p6 = scmp.lt.u32.totalorder %s7980_s27, %s10641_s29 }
 0x82e   : > { %p7982_p11 = pnand %p7981_p8, %p10769_p9 }
 0x82f   : > { %p7987_p5 = por %p7986_p0, %p7985_p1 }
 0x830   : > { %p7983_p13 = pneg %p7982_p11 }
 0x831   : > { %p7989_p10 = por %p7988_p6, %p7987_p5 }
 0x833   : > { %p7990_p12 = pnand %p7989_p10, %p7983_p13 }
 0x835   : > { %7993 = shalt.err (!%p7990_p12)
}
 0x836   : > { %7432 = dma.vmem_to_hbm [thread:$0]  (%p10769_p9), %s5975_s1, 16, %s10641_s29, %s5949_s20   ;;  %v5874_v49 = vld [vmem:[%s10729_s16] sm:$0x1]  ;;  %vm5942_vm15 = vcmask 73728  }
 0x837   : > { %s586_s23 = scalar_lea.vmem [#allocation5], %s10631_s17  ;;  %s10770_s12 = sld [smem:[#allocation21_spill]] }
 0x838   : > { %s5961_s19 = sshll.u32 %s586_s23, 4  ;;  %s5945_s29 = scalar_lea.sflag [#allocation4], %s10631_s17  ;;  %s10672_s19 = int_to_ptr.vmem [resolvable:$true] %s5961_s19 }
 0x839   : > { %s7994_s1 = scalar_lea.vmem %s10672_s19, 16  ;;  %s8074_s0 = smov [#allocation5]  }
 0x83a   : > { %p7995_p2 = scmp.ne.s32.totalorder %s10672_s19, %s7994_s1  ;;  %s7998_s20 = sshll.u32 %s8074_s0, 4  ;;  %s7999_s20 = int_to_ptr.vmem [resolvable:$false] %s7998_s20 }
 0x83b   : > { %s8000_s21 = scalar_lea.vmem %s7999_s20, 32  ;;  %p8001_p7 = scmp.lt.s32.totalorder %s10672_s19, %s7999_s20 }
 0x83c   : > { %p7996_p3 = pnand %p7995_p2, %p10769_p9  ;;  %p8002_p8 = scmp.lt.s32.totalorder %s8000_s21, %s7994_s1 }
 0x83d   : > { %s10670_s30 = scalar_lea.hbm %s10770_s12, %s6801_s24 }
 0x83e   : > { %p7997_p4 = pneg %p7996_p3  ;;  %p8003_p11 = por %p8002_p8, %p8001_p7 }
 0x840   : > { %p8004_p13 = pnand %p8003_p11, %p7997_p4 }
 0x8fc   : > { %v5936_v50 = vpop.f32.mrb[52].mxu1 }
 0x8fd   : > { %v5937_v51 = vadd.f32 %v5936_v50, %v5874_v49  ;;  %v6821_v53 = vpop.f32.mrb[53].mxu1 }
 0x8fe   : > { %v5939_v2 = vpop.f32.mrb[54].mxu1 }
 0x8ff   : > { %v6822_v54 = vpop.f32.mrb[55].mxu1  ;;  %5943 = vst.msk [vmem:[%s586_s23] sm:$0x1] %vm5942_vm15, %v5937_v51 }
 0x900   : > { %8007 = shalt.err (!%p8004_p13)
}
 0x901   : > { %s8008_s17 = scalar_lea.hbm %s10670_s30, 16  ;;  %s8012_s23 = scalar_lea.hbm %s10770_s12, 32 }
 0x902   : > { %p8009_p1 = scmp.ne.s32.totalorder %s10670_s30, %s8008_s17  ;;  %p8013_p6 = scmp.lt.u32.totalorder %s10670_s30, %s10770_s12 }
 0x903   : > { %p8014_p10 = scmp.lt.u32.totalorder %s8012_s23, %s8008_s17  ;;  %p8016_p2 = scmp.lt.u32.totalorder %s8008_s17, %s10670_s30 }
 0x904   : > { %p8010_p0 = pnand %p8009_p1, %p10769_p9 }
 0x905   : > { %p8015_p12 = por %p8014_p10, %p8013_p6 }
 0x906   : > { %p8011_p5 = pneg %p8010_p0 }
 0x907   : > { %p8017_p3 = por %p8016_p2, %p8015_p12 }
 0x909   : > { %p8018_p4 = pnand %p8017_p3, %p8011_p5 }
 0x90b   : > { %8021 = shalt.err (!%p8018_p4)
}
 0x90c   : > { %7431 = dma.vmem_to_hbm [thread:$0]  (%p10769_p9), %s10672_s19, 16, %s10670_s30, %s5945_s29  }
 0x90d PF: > { %s10771_s1 = sld [smem:[#allocation13_spill]]  ;;  %s10772_s0 = sld [smem:[#allocation11_spill]] }
 0x90e   : > { %s10773_s20 = sld [smem:[#allocation16_spill]] }
 0x913   : > { %p7448_p7 = scmp.ge.s32.totalorder %s10771_s1, 2  ;;  %s5986_s21 = sand.u32 1, %s10772_s0  }
 0x914   : > { %p10774_p8 = scmp.ne.s32.totalorder %s10773_s20, 0  ;;  %s5987_s24 = scalar_lea.sflag [#allocation4], %s5986_s21 }
 0x916   : > { %p7440_p11 = pnand %p7448_p7, %p10774_p8 }
 0x918   : > { %8043 = dma.done.wait (!%p7440_p11), %s5987_s24, 16  }
 0x919   : > { %8045 = vsyncadd (!%p7440_p11), %s5987_s24, 4294967280  ;;  %s5995_s17 = scalar_lea.sflag [#allocation7], %s5986_s21 }
 0x91a   : > { %8047 = dma.done.wait (!%p7440_p11), %s5995_s17, 16  }
 0x91b   : > { %8049 = vsyncadd (!%p7440_p11), %s5995_s17, 4294967280  ;;  %s10775_s30 = sld [smem:[#allocation14_spill]]  ;;  %s10776_s2 = sld [smem:[#allocation12_spill]] }
 0x91c   : > { %s10777_s29 = sld [smem:[#allocation15_spill]]  ;;  %s10778_s27 = smov %s8056_s28 }
 0x921   : > { %p33_p9 = scmp.ge.s32.totalorder %s10775_s30, 4   ;;  %s10779_s28 = smov %s10776_s2 }
 0x923   :  { %35 = sbr.rel (!%p33_p9) target bundleno = 12 (0xc), region = 157 }
 0x92a   :  { %5999 = vsyncpa [#allocation3], 1 }
 0x92b   :  { %6001 = vsyncpa [#allocation3 + $0x1], 1 }
 0x92c   :  { %6002 = vsyncpa [#allocation4], 1 }
 0x92d   :  { %6004 = vsyncpa [#allocation4 + $0x1], 1 }
 0x92e   :  { %6005 = vsyncpa [#allocation7], 1 }
 0x92f   :  { %6007 = vsyncpa [#allocation7 + $0x1], 1 }

</bundles_post_ra>
